<compile_context>
chip_gen: v6e
topology: v6e:2x2x1
jax: 0.10.0
libtpu: 0.0.40
codegen_flags: <defaults>
</compile_context>

<pallas_src>
import jax
import jax.numpy as jnp
from jax.experimental import pallas as pl
from jax.experimental.pallas import tpu as pltpu

P = 2.0                      # p of the p-norm (specialized to p == 2 below)
LANES = 128                  # vreg lane width
SUBL = 8                     # f32 sublane tile
CHUNK_ROWS = 2048            # per-loop-iteration chunk (256 (8,128) tiles/input)
MAX_BLOCK_ROWS = 8192        # 8192*128*4B = 4 MiB per f32 input block
MIN_KERNEL_ELEMS = 1 << 18   # below this, plain XLA beats a kernel launch
VMEM_LIMIT_BYTES = 48 * 1024 * 1024   # > all scoped defaults, < v7x physical


def _sum_sq_diff_jnp(a, b):
    d = a.astype(jnp.float32) - b.astype(jnp.float32)
    return jnp.sum(d * d)


def _make_pnorm_kernel(rows, block_rows, nblocks, need_row_mask):
    """Build the kernel with static tiling parameters closed over."""
    assert block_rows % CHUNK_ROWS == 0
    n_chunks = block_rows // CHUNK_ROWS

    def _chunk_partial(a_ref, b_ref, c, row0, masked):
        # Dynamic-start, static-size slice of the current VMEM block.
        start = pl.multiple_of(c * CHUNK_ROWS, CHUNK_ROWS)
        av = a_ref[pl.ds(start, CHUNK_ROWS), :].astype(jnp.float32)
        bv = b_ref[pl.ds(start, CHUNK_ROWS), :].astype(jnp.float32)
        d = av - bv
        sq = d * d               # p == 2: one VPU multiply, no pow / EUP
        if masked:
            # Zero rows past the logical end of the data (only the final,
            # partial block ever takes this path).
            ridx = row0 + start + jax.lax.broadcasted_iota(
                jnp.int32, (CHUNK_ROWS, 1), 0)
            sq = jnp.where(ridx < rows, sq, 0.0)
        # (CHUNK_ROWS,128) -> (8,128): leading-axis fold = pure vreg VPU adds.
        return jnp.sum(sq.reshape(CHUNK_ROWS // SUBL, SUBL, LANES), axis=0)

    def kernel(a_ref, b_ref, o_ref):
        i = pl.program_id(0)

        # o_ref is the single (8,128) partial-sum block, resident in VMEM
        # across the whole grid.
        @pl.when(i == 0)
        def _init():
            o_ref[...] = jnp.zeros_like(o_ref)

        def _accumulate(masked):
            row0 = i * block_rows

            def body(c, carry):
                o_ref[...] += _chunk_partial(a_ref, b_ref, c, row0, masked)
                return carry

            jax.lax.fori_loop(0, n_chunks, body, 0)

        if need_row_mask:
            # Only the final block contains rows past the end of the data;
            # every other block runs the mask-free path.
            @pl.when(i == nblocks - 1)
            def _tail():
                _accumulate(True)

            @pl.when(i != nblocks - 1)
            def _body():
                _accumulate(False)
        else:
            _accumulate(False)

    return kernel


def pnorm_loss(adv_patch, patched_img):
    """p-norm (p=2) of (adv_patch - patched_img) via a Pallas TPU kernel.

    Inputs must have identical shapes. Returns a scalar float32.  Streaming
    dtype is the input dtype (bf16 inputs stream half the HBM bytes);
    accumulation is always f32 inside the kernel.
    """
    assert adv_patch.shape == patched_img.shape, "shapes must match"

    a = adv_patch.reshape(-1)
    b = patched_img.reshape(-1)
    n = a.shape[0]

    # Tiny inputs: kernel launch + tiling overhead dominates; plain XLA wins.
    if n < MIN_KERNEL_ELEMS:
        return jnp.sqrt(_sum_sq_diff_jnp(a, b))

    tail_sq = jnp.float32(0.0)

    # Lane-ragged tail (n % 128 != 0): fold the < 128 leftover elements with a
    # fused jnp reduce instead of jnp.pad-ing the whole array.
    rem = n % LANES
    if rem:
        tail_sq = tail_sq + _sum_sq_diff_jnp(a[n - rem:], b[n - rem:])
        # TODO(synk): this prefix slice still costs one HBM copy of the bulk
        # when n % 128 != 0; a fully in-kernel lane mask would be zero-copy.
        a = a[: n - rem]
        b = b[: n - rem]

    rows = (n - rem) // LANES
    a2 = a.reshape(rows, LANES)   # zero-copy when rem == 0 (the common case)
    b2 = b.reshape(rows, LANES)

    # Block: as many 2048-row chunks as fit, capped at 8192 rows.  Always a
    # multiple of 2048, which satisfies the sublane tile for every dtype.
    block_rows = min(MAX_BLOCK_ROWS, (rows // CHUNK_ROWS) * CHUNK_ROWS)
    nblocks = -(-rows // block_rows)
    need_row_mask = (rows % block_rows) != 0

    kernel = _make_pnorm_kernel(rows, block_rows, nblocks, need_row_mask)

    cost = pl.CostEstimate(
        flops=3 * n,
        transcendentals=0,
        bytes_accessed=n * (a2.dtype.itemsize + b2.dtype.itemsize)
        + SUBL * LANES * 4,
    )

    partials = pl.pallas_call(
        kernel,
        out_shape=jax.ShapeDtypeStruct((SUBL, LANES), jnp.float32),
        grid=(nblocks,),
        in_specs=[
            pl.BlockSpec((block_rows, LANES), lambda i: (i, 0)),
            pl.BlockSpec((block_rows, LANES), lambda i: (i, 0)),
        ],
        out_specs=pl.BlockSpec((SUBL, LANES), lambda i: (0, 0)),
        compiler_params=pltpu.CompilerParams(
            dimension_semantics=("arbitrary",),
            vmem_limit_bytes=VMEM_LIMIT_BYTES,
        ),
        cost_estimate=cost,
    )(a2, b2)

    # Final tiny cross-lane reduce and the p-root (p = 2 -> sqrt) on host side
    # of the kernel, over a single (8,128) array.
    return jnp.sqrt(jnp.sum(partials) + tail_sq)


if __name__ == "__main__":
    key = jax.random.PRNGKey(0)
    k1, k2, k3, k4 = jax.random.split(key, 4)

    # Small case matching the module's patch/image signature (jnp fast path).
    adv_small = jax.random.uniform(k1, (2, 4, 16, 16), dtype=jnp.float32)
    img_small = jax.random.uniform(k2, (2, 4, 16, 16), dtype=jnp.float32)

    # Medium case: takes the Pallas kernel path (3072 rows -> one full
    # 2048-row block + one masked ragged tail block).
    adv_big = jax.random.uniform(k3, (2, 3, 256, 256), dtype=jnp.float32)
    img_big = jax.random.uniform(k4, (2, 3, 256, 256), dtype=jnp.float32)

    for x, y in ((adv_small, img_small), (adv_big, img_big)):
        loss = pnorm_loss(x, y)
        jax.block_until_ready(loss)

        # Reference check in plain JAX.
        d = x.astype(jnp.float32) - y.astype(jnp.float32)
        ref = jnp.sqrt(jnp.sum(d * d))
        assert jnp.allclose(loss, ref, rtol=1e-4, atol=1e-4), (loss, ref)

    print("KERNEL_OK")
</pallas_src>

<mosaic_0001>
module attributes {stable_mosaic.version = 11 : i64} {
  func.func @kernel(%arg0: i32, %arg1: memref<2048x128xf32, #tpu.memory_space<vmem>>, %arg2: memref<2048x128xf32, #tpu.memory_space<vmem>>, %arg3: memref<8x128xf32, #tpu.memory_space<vmem>>) attributes {dimension_semantics = [#tpu.dimension_semantics<arbitrary>], iteration_bounds = array<i64: 2>, scalar_prefetch = 0 : i64, scratch_operands = 0 : i64, tpu.core_type = #tpu.core_type<tc>, window_params = [{transform_indices = @transform_0, window_bounds = array<i64: 2048, 128>}, {transform_indices = @transform_1, window_bounds = array<i64: 2048, 128>}, {pipeline_mode = #tpu.pipeline_mode<synchronous>, transform_indices = @transform_2, window_bounds = array<i64: 8, 128>}]} {
    %c0_i32 = arith.constant 0 : i32
    %0 = arith.cmpi eq, %arg0, %c0_i32 : i32
    %1 = arith.extui %0 : i1 to i32
    %c0_i32_0 = arith.constant 0 : i32
    %2 = arith.cmpi ne, %1, %c0_i32_0 : i32
    scf.if %2 {
      %cst = arith.constant 0.000000e+00 : f32
      %9 = vector.broadcast %cst : f32 to vector<8x128xf32>
      %c0 = arith.constant 0 : index
      %c0_4 = arith.constant 0 : index
      %10 = vector.load %arg3[%c0, %c0_4] : memref<8x128xf32, #tpu.memory_space<vmem>>, vector<8x128xf32>
      tpu.vector_store %arg3[%c0, %c0_4], %9 {strides = array<i32>} : memref<8x128xf32, #tpu.memory_space<vmem>>, vector<8x128xf32>,
    } else {
    }
    %c1_i32 = arith.constant 1 : i32
    %3 = arith.cmpi eq, %arg0, %c1_i32 : i32
    %4 = arith.extui %3 : i1 to i32
    %c0_i32_1 = arith.constant 0 : i32
    %5 = arith.cmpi ne, %4, %c0_i32_1 : i32
    scf.if %5 {
      %c2048_i32 = arith.constant 2048 : i32
      %9 = arith.muli %arg0, %c2048_i32 : i32
      %c0_i32_4 = arith.constant 0 : i32
      %c0 = arith.constant 0 : index
      %c0_5 = arith.constant 0 : index
      %10 = vector.load %arg3[%c0, %c0_5] : memref<8x128xf32, #tpu.memory_space<vmem>>, vector<8x128xf32>
      %c2048_i32_6 = arith.constant 2048 : i32
      %11 = arith.muli %c0_i32_4, %c2048_i32_6 : i32
      %12 = tpu.assume_multiple %11, 2048 : i32
      %13 = arith.index_cast %12 : i32 to index
      %c0_7 = arith.constant 0 : index
      %14 = vector.load %arg1[%13, %c0_7] : memref<2048x128xf32, #tpu.memory_space<vmem>>, vector<2048x128xf32>
      %15 = arith.index_cast %12 : i32 to index
      %c0_8 = arith.constant 0 : index
      %16 = vector.load %arg2[%15, %c0_8] : memref<2048x128xf32, #tpu.memory_space<vmem>>, vector<2048x128xf32>
      %17 = arith.subf %14, %16 : vector<2048x128xf32>
      %18 = arith.mulf %17, %17 : vector<2048x128xf32>
      %19 = arith.addi %9, %12 : i32
      %20 = tpu.iota {dimensions = array<i32: 0>} : vector<2048x1xi32>
      %21 = vector.broadcast %19 : i32 to vector<2048x1xi32>
      %22 = arith.addi %21, %20 : vector<2048x1xi32>
      %c3072_i32 = arith.constant 3072 : i32
      %23 = vector.broadcast %c3072_i32 : i32 to vector<2048x1xi32>
      %24 = arith.cmpi slt, %22, %23 : vector<2048x1xi32>
      %cst = arith.constant 0.000000e+00 : f32
      %25 = vector.shape_cast %24 : vector<2048x1xi1> to vector<2048x1xi1>
      %26 = vector.broadcast %25 : vector<2048x1xi1> to vector<2048x128xi1>
      %27 = vector.broadcast %cst : f32 to vector<2048x128xf32>
      %28 = arith.select %26, %18, %27 : vector<2048x128xi1>, vector<2048x128xf32>
      %29 = vector.shape_cast %28 : vector<2048x128xf32> to vector<256x8x128xf32>
      %cst_9 = arith.constant dense<0.000000e+00> : vector<8x128xf32>
      %30 = vector.multi_reduction <add>, %29, %cst_9 [0] : vector<256x8x128xf32> to vector<8x128xf32>
      %31 = arith.addf %10, %30 : vector<8x128xf32>
      %c0_10 = arith.constant 0 : index
      %c0_11 = arith.constant 0 : index
      %32 = vector.load %arg3[%c0_10, %c0_11] : memref<8x128xf32, #tpu.memory_space<vmem>>, vector<8x128xf32>
      tpu.vector_store %arg3[%c0_10, %c0_11], %31 {strides = array<i32>} : memref<8x128xf32, #tpu.memory_space<vmem>>, vector<8x128xf32>,
      %c1_i32_12 = arith.constant 1 : i32
    } else {
    }
    %c1_i32_2 = arith.constant 1 : i32
    %6 = arith.cmpi ne, %arg0, %c1_i32_2 : i32
    %7 = arith.extui %6 : i1 to i32
    %c0_i32_3 = arith.constant 0 : i32
    %8 = arith.cmpi ne, %7, %c0_i32_3 : i32
    scf.if %8 {
      %c0_i32_4 = arith.constant 0 : i32
      %c0 = arith.constant 0 : index
      %c0_5 = arith.constant 0 : index
      %9 = vector.load %arg3[%c0, %c0_5] : memref<8x128xf32, #tpu.memory_space<vmem>>, vector<8x128xf32>
      %c2048_i32 = arith.constant 2048 : i32
      %10 = arith.muli %c0_i32_4, %c2048_i32 : i32
      %11 = tpu.assume_multiple %10, 2048 : i32
      %12 = arith.index_cast %11 : i32 to index
      %c0_6 = arith.constant 0 : index
      %13 = vector.load %arg1[%12, %c0_6] : memref<2048x128xf32, #tpu.memory_space<vmem>>, vector<2048x128xf32>
      %14 = arith.index_cast %11 : i32 to index
      %c0_7 = arith.constant 0 : index
      %15 = vector.load %arg2[%14, %c0_7] : memref<2048x128xf32, #tpu.memory_space<vmem>>, vector<2048x128xf32>
      %16 = arith.subf %13, %15 : vector<2048x128xf32>
      %17 = arith.mulf %16, %16 : vector<2048x128xf32>
      %18 = vector.shape_cast %17 : vector<2048x128xf32> to vector<256x8x128xf32>
      %cst = arith.constant dense<0.000000e+00> : vector<8x128xf32>
      %19 = vector.multi_reduction <add>, %18, %cst [0] : vector<256x8x128xf32> to vector<8x128xf32>
      %20 = arith.addf %9, %19 : vector<8x128xf32>
      %c0_8 = arith.constant 0 : index
      %c0_9 = arith.constant 0 : index
      %21 = vector.load %arg3[%c0_8, %c0_9] : memref<8x128xf32, #tpu.memory_space<vmem>>, vector<8x128xf32>
      tpu.vector_store %arg3[%c0_8, %c0_9], %20 {strides = array<i32>} : memref<8x128xf32, #tpu.memory_space<vmem>>, vector<8x128xf32>,
      %c1_i32_10 = arith.constant 1 : i32
    } else {
    }
    return
  }
  func.func @transform_0(%arg0: i32) -> (i32, i32) {
    %c0_i32 = arith.constant 0 : i32
    %c0_i32_0 = arith.constant 0 : i32
    return %arg0, %c0_i32 : i32, i32
  }
  func.func @transform_1(%arg0: i32) -> (i32, i32) {
    %c0_i32 = arith.constant 0 : i32
    %c0_i32_0 = arith.constant 0 : i32
    return %arg0, %c0_i32 : i32, i32
  }
  func.func @transform_2(%arg0: i32) -> (i32, i32) {
    %c0_i32 = arith.constant 0 : i32
    %c0_i32_0 = arith.constant 0 : i32
    %c0_i32_1 = arith.constant 0 : i32
    return %c0_i32, %c0_i32_0 : i32, i32
  }
}

</mosaic_0001>

<bundles_post_ra>
// kernel: tpu_custom_call.1
= control target key start
LH: loop header
LB: loop body
LE: loop exit
PB: predicated region body
PF: predicated region fallthrough
CT: control target
= control target key end

     0   :  { %7 = vsyncpa [#allocation3], 0  ;;  %s6343_s0 = inlined_call_operand.hbm [shape: f32[3072,128], index: 0, kind: input, shape index: {}]   ;;  %s6344_s1 = inlined_call_operand.hbm [shape: f32[3072,128], index: 1, kind: input, shape index: {}]   ;;  %s6345_s2 = inlined_call_operand.hbm [shape: f32[8,128], index: 2, kind: output, shape index: {}]  }
   0x1   :  { %9 = vsyncpa [#allocation3 + $0x1], 0 }
   0x2   :  { %10 = vsyncpa [#allocation6], 0 }
   0x3   :  { %12 = vsyncpa [#allocation6 + $0x1], 0 }
   0x4   :  { %13 = vsyncpa [#allocation4], 0  ;;  %s4628_s9 = smov 0   ;;  %s4630_s10 = smov 0  }
   0x5   :  { %s4632_s11 = smov 0   ;;  %s4634_s12 = smov 0  }
   0x6 LB: > { %s4647_s13 = sadd.s32 4294967295, %s4603_s12   ;;  %s4650_s14 = sadd.s32 1, %s4603_s12   ;;  %s4603_s12 = sphi %s4634_s12, %s6351_s12   ;;  %s4599_s11 = sphi %s4632_s11, %s6350_s11   ;;  %s4595_s10 = sphi %s4630_s10, %s6349_s10   ;;  %s4591_s9 = sphi %s4628_s9, %s6348_s9  }
   0x7   : > { %s23_s15 = ssub.s32 %s4603_s12, %s4650_s14  ;;  %s26_s16 = sadd.s32 1, %s4599_s11 }
   0x8   : > { %p24_p0 = scmp.eq.s32.totalorder %s23_s15, 0  ;;  %p33_p1 = scmp.ne.s32.totalorder %s4599_s11, %s4595_s10 }
   0x9   : > { %p34_p2 = scmp.eq.s32.totalorder %s4603_s12, 0  ;;  %p39_p3 = scmp.ne.s32.totalorder %s4595_s10, %s4591_s9 }
   0xa   : > { %s4660_s17 = scalar_select %p24_p0, %s4599_s11, %s26_s16  }
   0xb   : > { %p4662_p4 = por %p34_p2, %p33_p1  ;;  %p40_p5 = scmp.eq.s32.totalorder %s4647_s13, 0 }
   0xc   : > { %p4411_p7 = scmp.ge.s32.totalorder %s4603_s12, 2 }
   0xd   : > { %p4667_p6 = por %p40_p5, %p39_p3 }
   0xe   : > { %106 = sbr.rel (%p4411_p7) target bundleno = 83 (0x53), region = 16 }
  0x13   : > { %109 = sbr.rel (!%p4662_p4) target bundleno = 51 (0x33), region = 20  ;;  %s110_s20 = sand.u32 (%p4662_p4), 1, %s4599_s11  }
  0x14   : > { %s4413_s21 = sshll.u32 (%p4662_p4), %s4603_s12, 8  ;;  %s4412_s22 = sshll.u32 (%p4662_p4), %s110_s20, 11 }
  0x15   : > { %s116_s23 = ssub.s32 (%p4662_p4), 384, %s4413_s21  ;;  %s4679_s26 = scalar_lea.sflag (%p4662_p4), [#allocation3], %s110_s20 }
  0x16   : > { %p117_p8 = scmp.lt.s32.totalorder (%p4662_p4), %s116_s23, 256  ;;  %s114_s27 = scalar_lea.vmem (%p4662_p4), [#allocation2], %s4412_s22 }
  0x18   : > { %s6353_s23 = smov (!%p117_p8, %s116_s23), 256 }
  0x19   : > { %s4676_s24 = sshll.u32 %s6353_s23, 7 }
  0x1a   : > { %s121_s25 = ssub.s32 32768, %s4676_s24 }
  0x1b   : > { %122 = vsyncadd %s4679_s26, %s121_s25  ;;  %p4415_p9 = scmp.ne.s32.totalorder %s4676_s24, 0  ;;  %s4437_s28 = sshll.u32 %s4603_s12, 15 }
  0x1c   : > { %s4687_s3 = scalar_lea.hbm %s6343_s0, %s4437_s28  ;;  %s127_s4 = sshll.u32 %s114_s27, 4  ;;  %s4689_s4 = int_to_ptr.vmem [resolvable:$true] %s127_s4 }
  0x1d   : > { %s4485_s5 = scalar_lea.hbm %s4687_s3, %s4676_s24  ;;  %s4489_s8 = scalar_lea.hbm %s6343_s0, 49152 }
  0x1e   : > { %p4486_p10 = scmp.ne.s32.totalorder %s4687_s3, %s4485_s5  ;;  %p4490_p13 = scmp.lt.s32.totalorder %s4687_s3, %s6343_s0 }
  0x1f   : > { %p4491_p0 = scmp.lt.s32.totalorder %s4489_s8, %s4485_s5 }
  0x20   : > { %p4487_p11 = pnand %p4486_p10, %p4415_p9 }
  0x21   : > { %p4492_p1 = por %p4491_p0, %p4490_p13 }
  0x22   : > { %p4488_p12 = pneg %p4487_p11 }
  0x24   : > { %p4493_p2 = pnand %p4492_p1, %p4488_p12 }
  0x26   : > { %4496 = shalt.err (!%p4493_p2)
}
  0x27   : > { %s4497_s16 = scalar_lea.vmem %s4689_s4, %s4676_s24  ;;  %s4605_s20 = smov [#allocation2]  }
  0x28   : > { %p4498_p3 = scmp.ne.s32.totalorder %s4689_s4, %s4497_s16  ;;  %s4501_s21 = sshll.u32 %s4605_s20, 4  ;;  %s4502_s21 = int_to_ptr.vmem [resolvable:$false] %s4501_s21 }
  0x29   : > { %s4503_s22 = scalar_lea.vmem %s4502_s21, 65536  ;;  %p4504_p8 = scmp.lt.s32.totalorder %s4689_s4, %s4502_s21 }
  0x2a   : > { %p4499_p5 = pnand %p4498_p3, %p4415_p9  ;;  %p4505_p10 = scmp.lt.s32.totalorder %s4503_s22, %s4497_s16 }
  0x2c   : > { %p4500_p7 = pneg %p4499_p5  ;;  %p4506_p11 = por %p4505_p10, %p4504_p8 }
  0x2e   : > { %p4507_p13 = pnand %p4506_p11, %p4500_p7 }
  0x30   : > { %4510 = shalt.err (!%p4507_p13)
}
  0x31   : > { %s4606_s23 = smov 128   ;;  %s4607_s25 = smov 8  }
  0x32   : > { %133 = dma.hbm_to_vmem [thread:$0]  (%p4415_p9), %s4687_s3, %s4676_s24, %s4689_s4, %s4679_s26, %s4606_s23, %s4606_s23, %s4607_s25  }
  0x33 PF: > { %136 = sbr.rel (!%p4662_p4) target bundleno = 83 (0x53), region = 24  ;;  %s137_s27 = sand.u32 (%p4662_p4), 1, %s4599_s11  }
  0x34   : > { %s4420_s28 = sshll.u32 (%p4662_p4), %s4603_s12, 8  ;;  %s4419_s29 = sshll.u32 (%p4662_p4), %s137_s27, 11 }
  0x35   : > { %s143_s30 = ssub.s32 (%p4662_p4), 384, %s4420_s28  ;;  %s4722_s7 = scalar_lea.sflag (%p4662_p4), [#allocation6], %s137_s27 }
  0x36   : > { %p144_p12 = scmp.lt.s32.totalorder (%p4662_p4), %s143_s30, 256  ;;  %s141_s24 = scalar_lea.vmem (%p4662_p4), [#allocation5], %s4419_s29 }
  0x38   : > { %s6355_s30 = smov (!%p144_p12, %s143_s30), 256 }
  0x39   : > { %s4719_s5 = sshll.u32 %s6355_s30, 7 }
  0x3a   : > { %s148_s6 = ssub.s32 32768, %s4719_s5 }
  0x3b   : > { %149 = vsyncadd %s4722_s7, %s148_s6  ;;  %p4422_p4 = scmp.ne.s32.totalorder %s4719_s5, 0  ;;  %s4438_s18 = sshll.u32 %s4603_s12, 15 }
  0x3c   : > { %s4730_s4 = scalar_lea.hbm %s6344_s1, %s4438_s18  ;;  %s154_s8 = sshll.u32 %s141_s24, 4  ;;  %s4732_s8 = int_to_ptr.vmem [resolvable:$true] %s154_s8 }
  0x3d   : > { %s4511_s9 = scalar_lea.hbm %s4730_s4, %s4719_s5  ;;  %s4515_s20 = scalar_lea.hbm %s6344_s1, 49152 }
  0x3e   : > { %p4512_p9 = scmp.ne.s32.totalorder %s4730_s4, %s4511_s9  ;;  %p4516_p2 = scmp.lt.s32.totalorder %s4730_s4, %s6344_s1 }
  0x3f   : > { %p4517_p3 = scmp.lt.s32.totalorder %s4515_s20, %s4511_s9 }
  0x40   : > { %p4513_p0 = pnand %p4512_p9, %p4422_p4 }
  0x41   : > { %p4518_p5 = por %p4517_p3, %p4516_p2 }
  0x42   : > { %p4514_p1 = pneg %p4513_p0 }
  0x44   : > { %p4519_p7 = pnand %p4518_p5, %p4514_p1 }
  0x46   : > { %4522 = shalt.err (!%p4519_p7)
}
  0x47   : > { %s4523_s23 = scalar_lea.vmem %s4732_s8, %s4719_s5  ;;  %s4608_s25 = smov [#allocation5]  }
  0x48   : > { %p4524_p8 = scmp.ne.s32.totalorder %s4732_s8, %s4523_s23  ;;  %s4527_s27 = sshll.u32 %s4608_s25, 4  ;;  %s4528_s27 = int_to_ptr.vmem [resolvable:$false] %s4527_s27 }
  0x49   : > { %s4529_s28 = scalar_lea.vmem %s4528_s27, 65536  ;;  %p4530_p13 = scmp.lt.s32.totalorder %s4732_s8, %s4528_s27 }
  0x4a   : > { %p4525_p10 = pnand %p4524_p8, %p4422_p4  ;;  %p4531_p12 = scmp.lt.s32.totalorder %s4529_s28, %s4523_s23 }
  0x4c   : > { %p4526_p11 = pneg %p4525_p10  ;;  %p4532_p9 = por %p4531_p12, %p4530_p13 }
  0x4e   : > { %p4533_p0 = pnand %p4532_p9, %p4526_p11 }
  0x50   : > { %4536 = shalt.err (!%p4533_p0)
}
  0x51   : > { %s4609_s29 = smov 128   ;;  %s4610_s30 = smov 8  }
  0x52   : > { %160 = dma.hbm_to_vmem [thread:$0]  (%p4422_p4), %s4730_s4, %s4719_s5, %s4732_s8, %s4722_s7, %s4609_s29, %s4609_s29, %s4610_s30  }
  0x53 PF: > { %p4426_p1 = scmp.ge.s32.totalorder %s4603_s12, 1  ;;  %p162_p2 = scmp.lt.s32.totalorder %s4603_s12, 3 }
  0x55   : > { %p163_p3 = pnand %p4426_p1, %p162_p2 }
  0x56   : > { %s168_s6 = sand.u32 (!%p163_p3), 1, %s4595_s10  }
  0x57   : > { %166 = sbr.rel (%p163_p3) target bundleno = 1177 (0x499), region = 28  ;;  %s4427_s24 = sshll.u32 (!%p163_p3), %s168_s6, 11 }
  0x58   : > { %s169_s18 = scalar_lea.sflag (!%p163_p3), [#allocation3], %s168_s6  ;;  %s4761_s26 = scalar_lea.vmem (!%p163_p3), [#allocation2], %s4427_s24 }
  0x5c   : > { %4578 = dma.done.wait (%p4667_p6), %s169_s18, 32768  }
  0x5d   : > { %4580 = vsyncadd (%p4667_p6), %s169_s18, 4294934528  ;;  %s178_s5 = scalar_lea.sflag [#allocation6], %s168_s6  ;;  %s4767_s7 = scalar_lea.vmem [#allocation5], %s4427_s24 }
  0x5e   : > { %4582 = dma.done.wait (%p4667_p6), %s178_s5, 32768  }
  0x5f   : > { %4584 = vsyncadd (%p4667_p6), %s178_s5, 4294934528  ;;  %p4429_p4 = scmp.ne.s32.totalorder %s4647_s13, 0 }
  0x61   : > { %215 = sbr.rel (%p4429_p4) target bundleno = 104 (0x68), region = 40 }
  0x66   : > { %v4611_v0 = vmov 0.0  }
  0x67   : > { %216 = vst [vmem:[#allocation7] sm:$0xff] %v4611_v0 }
  0x68 PF: > { %p4430_p5 = scmp.ne.s32.totalorder %s4647_s13, 1 }
  0x69   : > { %s4431_s12 = sshll.u32 (!%p4430_p5), %s4647_s13, 11 }
  0x6a   : > { %220 = sbr.rel (%p4430_p5) target bundleno = 636 (0x27c), region = 44 }
  0x6f   : > { %v1248_v1 = vlaneseq  ;;  %v223_v3 = vld [vmem:[%s4761_s26] sm:$0xff]  ;;  %v224_v4 = vld [vmem:[%s4761_s26 + $0x8] sm:$0xff]  ;;  %v4783_v8 = vstv %s4431_s12  ;;  %v225_v9 = vld [vmem:[%s4761_s26 + $0x10] sm:$0xff] }
  0x70   : > { %v479_v5 = vld [vmem:[%s4767_s7] sm:$0xff]  ;;  %v480_v6 = vld [vmem:[%s4767_s7 + $0x8] sm:$0xff]  ;;  %v481_v10 = vld [vmem:[%s4767_s7 + $0x10] sm:$0xff] }
  0x71   : > { %v4775_v2 = vshrl.u32 %v1248_v1, 7  ;;  %v735_v12 = vsub.f32 %v223_v3, %v479_v5  ;;  %v736_v13 = vsub.f32 %v224_v4, %v480_v6  ;;  %v226_v14 = vld [vmem:[%s4761_s26 + $0x18] sm:$0xff]  ;;  %v737_v19 = vsub.f32 %v225_v9, %v481_v10  ;;  %v227_v20 = vld [vmem:[%s4761_s26 + $0x20] sm:$0xff]  ;;  %v228_v27 = vld [vmem:[%s4761_s26 + $0x28] sm:$0xff] }
  0x72   : > { %v482_v15 = vld [vmem:[%s4767_s7 + $0x18] sm:$0xff]  ;;  %v483_v21 = vld [vmem:[%s4767_s7 + $0x20] sm:$0xff]  ;;  %v484_v28 = vld [vmem:[%s4767_s7 + $0x28] sm:$0xff] }
  0x73   : > { %v1250_v7 = vadd.s32 8, %v4775_v2  ;;  %v1251_v11 = vadd.s32 16, %v4775_v2  ;;  %v1252_v16 = vadd.s32 24, %v4775_v2  ;;  %v1506_v17 = vadd.s32 %v4783_v8, %v4775_v2  ;;  %v229_v33 = vld [vmem:[%s4761_s26 + $0x30] sm:$0xff]  ;;  %v230_v41 = vld [vmem:[%s4761_s26 + $0x38] sm:$0xff]  ;;  %v231_v48 = vld [vmem:[%s4761_s26 + $0x40] sm:$0xff] }
  0x74   : > { %v1253_v22 = vadd.s32 32, %v4775_v2  ;;  %v738_v24 = vsub.f32 %v226_v14, %v482_v15  ;;  %v991_v25 = vmul.f32 %v735_v12, %v735_v12  ;;  %v992_v26 = vmul.f32 %v736_v13, %v736_v13  ;;  %v485_v34 = vld [vmem:[%s4767_s7 + $0x30] sm:$0xff]  ;;  %v486_v42 = vld [vmem:[%s4767_s7 + $0x38] sm:$0xff]  ;;  %v487_v49 = vld [vmem:[%s4767_s7 + $0x40] sm:$0xff] }
  0x75   : > { %v1507_v18 = vadd.s32 %v4783_v8, %v1250_v7  ;;  %v1508_v23 = vadd.s32 %v4783_v8, %v1251_v11  ;;  %v1254_v29 = vadd.s32 40, %v4775_v2  ;;  %v1509_v30 = vadd.s32 %v4783_v8, %v1252_v16  ;;  %v232_v56 = vld [vmem:[%s4761_s26 + $0x48] sm:$0xff]  ;;  %v233_v0 = vld [vmem:[%s4761_s26 + $0x50] sm:$0xff]  ;;  %v234_v10 = vld [vmem:[%s4761_s26 + $0x58] sm:$0xff] }
  0x76   : > { %vm1762_vm0 = vcmp.lt.s32.totalorder %v1506_v17, 3072  ;;  %v739_v31 = vsub.f32 %v227_v20, %v483_v21  ;;  %v993_v32 = vmul.f32 %v737_v19, %v737_v19  ;;  %v1255_v35 = vadd.s32 48, %v4775_v2  ;;  %v488_v57 = vld [vmem:[%s4767_s7 + $0x48] sm:$0xff]  ;;  %v489_v1 = vld [vmem:[%s4767_s7 + $0x50] sm:$0xff]  ;;  %v490_v11 = vld [vmem:[%s4767_s7 + $0x58] sm:$0xff] }
  0x77   : > { %vm1763_vm1 = vcmp.lt.s32.totalorder %v1507_v18, 3072  ;;  %v1510_v36 = vadd.s32 %v4783_v8, %v1253_v22  ;;  %vm1764_vm2 = vcmp.lt.s32.totalorder %v1508_v23, 3072  ;;  %v740_v37 = vsub.f32 %v228_v27, %v484_v28  ;;  %v235_v18 = vld [vmem:[%s4761_s26 + $0x60] sm:$0xff]  ;;  %v492_v27 = vld [vmem:[%s4767_s7 + $0x68] sm:$0xff] }
  0x78   : > { %v994_v38 = vmul.f32 %v738_v24, %v738_v24  ;;  %v2530_v39 = vsel %vm1762_vm0, %v991_v25, 0.0  ;;  %v2531_v40 = vsel %vm1763_vm1, %v992_v26, 0.0  ;;  %v1256_v43 = vadd.s32 56, %v4775_v2  ;;  %v491_v19 = vld [vmem:[%s4767_s7 + $0x60] sm:$0xff]  ;;  %v236_v26 = vld [vmem:[%s4761_s26 + $0x68] sm:$0xff] }
  0x79   : > { %v1511_v44 = vadd.s32 %v4783_v8, %v1254_v29  ;;  %vm1765_vm3 = vcmp.lt.s32.totalorder %v1509_v30, 3072  ;;  %v741_v45 = vsub.f32 %v229_v33, %v485_v34  ;;  %v995_v46 = vmul.f32 %v739_v31, %v739_v31  ;;  %v237_v34 = vld [vmem:[%s4761_s26 + $0x70] sm:$0xff] }
  0x7a   : > { %v2532_v47 = vsel %vm1764_vm2, %v993_v32, 0.0  ;;  %v1257_v50 = vadd.s32 64, %v4775_v2  ;;  %v1512_v51 = vadd.s32 %v4783_v8, %v1255_v35  ;;  %vm1766_vm4 = vcmp.lt.s32.totalorder %v1510_v36, 3072  ;;  %v493_v35 = vld [vmem:[%s4767_s7 + $0x70] sm:$0xff] }
  0x7b   : > { %v2786_v52 = vadd.f32 %v2531_v40, %v2530_v39  ;;  %v742_v53 = vsub.f32 %v230_v41, %v486_v42  ;;  %v996_v54 = vmul.f32 %v740_v37, %v740_v37  ;;  %v2533_v55 = vsel %vm1765_vm3, %v994_v38, 0.0  ;;  %v238_v42 = vld [vmem:[%s4761_s26 + $0x78] sm:$0xff] }
  0x7c   : > { %v1258_v58 = vadd.s32 72, %v4775_v2  ;;  %v1513_v59 = vadd.s32 %v4783_v8, %v1256_v43  ;;  %vm1767_vm5 = vcmp.lt.s32.totalorder %v1511_v44, 3072  ;;  %v743_v61 = vsub.f32 %v231_v48, %v487_v49  ;;  %v494_v43 = vld [vmem:[%s4767_s7 + $0x78] sm:$0xff] }
  0x7d   : > { %v2787_v60 = vadd.f32 %v2786_v52, %v2532_v47  ;;  %v997_v62 = vmul.f32 %v741_v45, %v741_v45  ;;  %v2534_v63 = vsel %vm1766_vm4, %v995_v46, 0.0  ;;  %v1259_v3 = vadd.s32 80, %v4775_v2 }
  0x7e   : > { %v1514_v4 = vadd.s32 %v4783_v8, %v1257_v50  ;;  %vm1768_vm6 = vcmp.lt.s32.totalorder %v1512_v51, 3072  ;;  %v744_v6 = vsub.f32 %v232_v56, %v488_v57  ;;  %v998_v7 = vmul.f32 %v742_v53, %v742_v53  ;;  %v239_v50 = vld [vmem:[%s4761_s26 + $0x80] sm:$0xff] }
  0x7f   : > { %v2788_v5 = vadd.f32 %v2787_v60, %v2533_v55  ;;  %v2535_v9 = vsel %vm1767_vm5, %v996_v54, 0.0  ;;  %v1260_v12 = vadd.s32 88, %v4775_v2  ;;  %v1515_v13 = vadd.s32 %v4783_v8, %v1258_v58  ;;  %v495_v51 = vld [vmem:[%s4767_s7 + $0x80] sm:$0xff]  ;;  %v240_v58 = vld [vmem:[%s4761_s26 + $0x88] sm:$0xff] }
  0x80   : > { %vm1769_vm7 = vcmp.lt.s32.totalorder %v1513_v59, 3072  ;;  %v745_v15 = vsub.f32 %v233_v0, %v489_v1  ;;  %v999_v16 = vmul.f32 %v743_v61, %v743_v61  ;;  %v2536_v17 = vsel %vm1768_vm6, %v997_v62, 0.0  ;;  %v496_v59 = vld [vmem:[%s4767_s7 + $0x88] sm:$0xff] }
  0x81   : > { %v2789_v14 = vadd.f32 %v2788_v5, %v2534_v63  ;;  %v1261_v20 = vadd.s32 96, %v4775_v2  ;;  %v1516_v21 = vadd.s32 %v4783_v8, %v1259_v3  ;;  %vm1770_vm8 = vcmp.lt.s32.totalorder %v1514_v4, 3072  ;;  %v241_v3 = vld [vmem:[%s4761_s26 + $0x90] sm:$0xff] }
  0x82   : > { %v746_v23 = vsub.f32 %v234_v10, %v490_v11  ;;  %v1000_v24 = vmul.f32 %v744_v6, %v744_v6  ;;  %v2537_v25 = vsel %vm1769_vm7, %v998_v7, 0.0  ;;  %v1262_v28 = vadd.s32 104, %v4775_v2  ;;  %v497_v4 = vld [vmem:[%s4767_s7 + $0x90] sm:$0xff] }
  0x83   : > { %v2790_v22 = vadd.f32 %v2789_v14, %v2535_v9  ;;  %v1517_v29 = vadd.s32 %v4783_v8, %v1260_v12  ;;  %vm1771_vm9 = vcmp.lt.s32.totalorder %v1515_v13, 3072  ;;  %v747_v31 = vsub.f32 %v235_v18, %v491_v19  ;;  %v242_v12 = vld [vmem:[%s4761_s26 + $0x98] sm:$0xff] }
  0x84   : > { %v1001_v32 = vmul.f32 %v745_v15, %v745_v15  ;;  %v2538_v33 = vsel %vm1770_vm8, %v999_v16, 0.0  ;;  %v1263_v36 = vadd.s32 112, %v4775_v2  ;;  %v1518_v37 = vadd.s32 %v4783_v8, %v1261_v20  ;;  %v498_v13 = vld [vmem:[%s4767_s7 + $0x98] sm:$0xff]  ;;  %v243_v20 = vld [vmem:[%s4761_s26 + $0xa0] sm:$0xff] }
  0x85   : > { %v2791_v30 = vadd.f32 %v2790_v22, %v2536_v17  ;;  %vm1772_vm10 = vcmp.lt.s32.totalorder %v1516_v21, 3072  ;;  %v748_v39 = vsub.f32 %v236_v26, %v492_v27  ;;  %v1002_v40 = vmul.f32 %v746_v23, %v746_v23  ;;  %v499_v21 = vld [vmem:[%s4767_s7 + $0xa0] sm:$0xff] }
  0x86   : > { %v2539_v41 = vsel %vm1771_vm9, %v1000_v24, 0.0  ;;  %v1264_v44 = vadd.s32 120, %v4775_v2  ;;  %v1519_v45 = vadd.s32 %v4783_v8, %v1262_v28  ;;  %vm1773_vm11 = vcmp.lt.s32.totalorder %v1517_v29, 3072  ;;  %v244_v28 = vld [vmem:[%s4761_s26 + $0xa8] sm:$0xff] }
  0x87   : > { %v2792_v38 = vadd.f32 %v2791_v30, %v2537_v25  ;;  %v749_v47 = vsub.f32 %v237_v34, %v493_v35  ;;  %v1003_v48 = vmul.f32 %v747_v31, %v747_v31  ;;  %v2540_v49 = vsel %vm1772_vm10, %v1001_v32, 0.0  ;;  %v500_v29 = vld [vmem:[%s4767_s7 + $0xa8] sm:$0xff] }
  0x88   : > { %v1265_v52 = vadd.s32 128, %v4775_v2  ;;  %v1520_v53 = vadd.s32 %v4783_v8, %v1263_v36  ;;  %vm1774_vm12 = vcmp.lt.s32.totalorder %v1518_v37, 3072  ;;  %v750_v55 = vsub.f32 %v238_v42, %v494_v43  ;;  %v245_v36 = vld [vmem:[%s4761_s26 + $0xb0] sm:$0xff] }
  0x89   : > { %v2793_v46 = vadd.f32 %v2792_v38, %v2538_v33  ;;  %v1004_v56 = vmul.f32 %v748_v39, %v748_v39  ;;  %v2541_v57 = vsel %vm1773_vm11, %v1002_v40, 0.0  ;;  %v1266_v60 = vadd.s32 136, %v4775_v2  ;;  %v501_v37 = vld [vmem:[%s4767_s7 + $0xb0] sm:$0xff] }
  0x8a   : > { %v1521_v61 = vadd.s32 %v4783_v8, %v1264_v44  ;;  %vm1775_vm13 = vcmp.lt.s32.totalorder %v1519_v45, 3072  ;;  %v751_v63 = vsub.f32 %v239_v50, %v495_v51  ;;  %v1005_v0 = vmul.f32 %v749_v47, %v749_v47  ;;  %v246_v44 = vld [vmem:[%s4761_s26 + $0xb8] sm:$0xff] }
  0x8b   : > { %v2794_v54 = vadd.f32 %v2793_v46, %v2539_v41  ;;  %v2542_v1 = vsel %vm1774_vm12, %v1003_v48, 0.0  ;;  %v1267_v5 = vadd.s32 144, %v4775_v2  ;;  %v1522_v6 = vadd.s32 %v4783_v8, %v1265_v52  ;;  %v502_v45 = vld [vmem:[%s4767_s7 + $0xb8] sm:$0xff]  ;;  %v247_v52 = vld [vmem:[%s4761_s26 + $0xc0] sm:$0xff] }
  0x8c   : > { %vm1776_vm14 = vcmp.lt.s32.totalorder %v1520_v53, 3072  ;;  %v752_v9 = vsub.f32 %v240_v58, %v496_v59  ;;  %v1006_v10 = vmul.f32 %v750_v55, %v750_v55  ;;  %v2543_v11 = vsel %vm1775_vm13, %v1004_v56, 0.0  ;;  %v503_v53 = vld [vmem:[%s4767_s7 + $0xc0] sm:$0xff] }
  0x8d   : > { %v2795_v62 = vadd.f32 %v2794_v54, %v2540_v49  ;;  %v1268_v14 = vadd.s32 152, %v4775_v2  ;;  %v1523_v15 = vadd.s32 %v4783_v8, %v1266_v60  ;;  %vm1777_vm15 = vcmp.lt.s32.totalorder %v1521_v61, 3072  ;;  %v248_v60 = vld [vmem:[%s4761_s26 + $0xc8] sm:$0xff] }
  0x8e   : > { %v753_v17 = vsub.f32 %v241_v3, %v497_v4  ;;  %v1007_v18 = vmul.f32 %v751_v63, %v751_v63  ;;  %v2544_v19 = vsel %vm1776_vm14, %v1005_v0, 0.0  ;;  %v1269_v22 = vadd.s32 160, %v4775_v2  ;;  %v504_v61 = vld [vmem:[%s4767_s7 + $0xc8] sm:$0xff] }
  0x8f   : > { %v2796_v7 = vadd.f32 %v2795_v62, %v2541_v57  ;;  %v1524_v23 = vadd.s32 %v4783_v8, %v1267_v5  ;;  %vm1778_vm0 = vcmp.lt.s32.totalorder %v1522_v6, 3072  ;;  %v754_v25 = vsub.f32 %v242_v12, %v498_v13  ;;  %v249_v5 = vld [vmem:[%s4761_s26 + $0xd0] sm:$0xff] }
  0x90   : > { %v1008_v26 = vmul.f32 %v752_v9, %v752_v9  ;;  %v2545_v27 = vsel %vm1777_vm15, %v1006_v10, 0.0  ;;  %v1270_v30 = vadd.s32 168, %v4775_v2  ;;  %v1525_v31 = vadd.s32 %v4783_v8, %v1268_v14  ;;  %v505_v6 = vld [vmem:[%s4767_s7 + $0xd0] sm:$0xff]  ;;  %v250_v14 = vld [vmem:[%s4761_s26 + $0xd8] sm:$0xff] }
  0x91   : > { %v2797_v16 = vadd.f32 %v2796_v7, %v2542_v1  ;;  %vm1779_vm1 = vcmp.lt.s32.totalorder %v1523_v15, 3072  ;;  %v755_v33 = vsub.f32 %v243_v20, %v499_v21  ;;  %v1009_v34 = vmul.f32 %v753_v17, %v753_v17  ;;  %v506_v15 = vld [vmem:[%s4767_s7 + $0xd8] sm:$0xff] }
  0x92   : > { %v2546_v35 = vsel %vm1778_vm0, %v1007_v18, 0.0  ;;  %v1271_v38 = vadd.s32 176, %v4775_v2  ;;  %v1526_v39 = vadd.s32 %v4783_v8, %v1269_v22  ;;  %vm1780_vm2 = vcmp.lt.s32.totalorder %v1524_v23, 3072  ;;  %v251_v22 = vld [vmem:[%s4761_s26 + $0xe0] sm:$0xff] }
  0x93   : > { %v2798_v24 = vadd.f32 %v2797_v16, %v2543_v11  ;;  %v756_v41 = vsub.f32 %v244_v28, %v500_v29  ;;  %v1010_v42 = vmul.f32 %v754_v25, %v754_v25  ;;  %v2547_v43 = vsel %vm1779_vm1, %v1008_v26, 0.0  ;;  %v507_v23 = vld [vmem:[%s4767_s7 + $0xe0] sm:$0xff] }
  0x94   : > { %v1272_v46 = vadd.s32 184, %v4775_v2  ;;  %v1527_v47 = vadd.s32 %v4783_v8, %v1270_v30  ;;  %vm1781_vm3 = vcmp.lt.s32.totalorder %v1525_v31, 3072  ;;  %v757_v49 = vsub.f32 %v245_v36, %v501_v37  ;;  %v252_v30 = vld [vmem:[%s4761_s26 + $0xe8] sm:$0xff] }
  0x95   : > { %v2799_v32 = vadd.f32 %v2798_v24, %v2544_v19  ;;  %v1011_v50 = vmul.f32 %v755_v33, %v755_v33  ;;  %v2548_v51 = vsel %vm1780_vm2, %v1009_v34, 0.0  ;;  %v1273_v54 = vadd.s32 192, %v4775_v2  ;;  %v508_v31 = vld [vmem:[%s4767_s7 + $0xe8] sm:$0xff] }
  0x96   : > { %v1528_v55 = vadd.s32 %v4783_v8, %v1271_v38  ;;  %vm1782_vm4 = vcmp.lt.s32.totalorder %v1526_v39, 3072  ;;  %v758_v57 = vsub.f32 %v246_v44, %v502_v45  ;;  %v1012_v58 = vmul.f32 %v756_v41, %v756_v41  ;;  %v253_v38 = vld [vmem:[%s4761_s26 + $0xf0] sm:$0xff] }
  0x97   : > { %v2800_v40 = vadd.f32 %v2799_v32, %v2545_v27  ;;  %v2549_v59 = vsel %vm1781_vm3, %v1010_v42, 0.0  ;;  %v1274_v62 = vadd.s32 200, %v4775_v2  ;;  %v1529_v63 = vadd.s32 %v4783_v8, %v1272_v46  ;;  %v509_v39 = vld [vmem:[%s4767_s7 + $0xf0] sm:$0xff]  ;;  %v254_v46 = vld [vmem:[%s4761_s26 + $0xf8] sm:$0xff] }
  0x98   : > { %vm1783_vm5 = vcmp.lt.s32.totalorder %v1527_v47, 3072  ;;  %v759_v1 = vsub.f32 %v247_v52, %v503_v53  ;;  %v1013_v3 = vmul.f32 %v757_v49, %v757_v49  ;;  %v2550_v4 = vsel %vm1782_vm4, %v1011_v50, 0.0  ;;  %v510_v47 = vld [vmem:[%s4767_s7 + $0xf8] sm:$0xff] }
  0x99   : > { %v2801_v48 = vadd.f32 %v2800_v40, %v2546_v35  ;;  %v1275_v7 = vadd.s32 208, %v4775_v2  ;;  %v1530_v9 = vadd.s32 %v4783_v8, %v1273_v54  ;;  %vm1784_vm6 = vcmp.lt.s32.totalorder %v1528_v55, 3072  ;;  %v255_v54 = vld [vmem:[%s4761_s26 + $0x100] sm:$0xff] }
  0x9a   : > { %v760_v11 = vsub.f32 %v248_v60, %v504_v61  ;;  %v1014_v12 = vmul.f32 %v758_v57, %v758_v57  ;;  %v2551_v13 = vsel %vm1783_vm5, %v1012_v58, 0.0  ;;  %v1276_v16 = vadd.s32 216, %v4775_v2  ;;  %v511_v55 = vld [vmem:[%s4767_s7 + $0x100] sm:$0xff] }
  0x9b   : > { %v2802_v56 = vadd.f32 %v2801_v48, %v2547_v43  ;;  %v1531_v17 = vadd.s32 %v4783_v8, %v1274_v62  ;;  %vm1785_vm7 = vcmp.lt.s32.totalorder %v1529_v63, 3072  ;;  %v761_v19 = vsub.f32 %v249_v5, %v505_v6  ;;  %v256_v62 = vld [vmem:[%s4761_s26 + $0x108] sm:$0xff] }
  0x9c   : > { %v1015_v20 = vmul.f32 %v759_v1, %v759_v1  ;;  %v2552_v21 = vsel %vm1784_vm6, %v1013_v3, 0.0  ;;  %v1277_v24 = vadd.s32 224, %v4775_v2  ;;  %v1532_v25 = vadd.s32 %v4783_v8, %v1275_v7  ;;  %v512_v63 = vld [vmem:[%s4767_s7 + $0x108] sm:$0xff]  ;;  %v257_v7 = vld [vmem:[%s4761_s26 + $0x110] sm:$0xff] }
  0x9d   : > { %v2803_v0 = vadd.f32 %v2802_v56, %v2548_v51  ;;  %vm1786_vm8 = vcmp.lt.s32.totalorder %v1530_v9, 3072  ;;  %v762_v27 = vsub.f32 %v250_v14, %v506_v15  ;;  %v1016_v28 = vmul.f32 %v760_v11, %v760_v11  ;;  %v513_v9 = vld [vmem:[%s4767_s7 + $0x110] sm:$0xff] }
  0x9e   : > { %v2553_v29 = vsel %vm1785_vm7, %v1014_v12, 0.0  ;;  %v1278_v32 = vadd.s32 232, %v4775_v2  ;;  %v1533_v33 = vadd.s32 %v4783_v8, %v1276_v16  ;;  %vm1787_vm9 = vcmp.lt.s32.totalorder %v1531_v17, 3072  ;;  %v258_v16 = vld [vmem:[%s4761_s26 + $0x118] sm:$0xff] }
  0x9f   : > { %v2804_v10 = vadd.f32 %v2803_v0, %v2549_v59  ;;  %v763_v35 = vsub.f32 %v251_v22, %v507_v23  ;;  %v1017_v36 = vmul.f32 %v761_v19, %v761_v19  ;;  %v2554_v37 = vsel %vm1786_vm8, %v1015_v20, 0.0  ;;  %v514_v17 = vld [vmem:[%s4767_s7 + $0x118] sm:$0xff] }
  0xa0   : > { %v1279_v40 = vadd.s32 240, %v4775_v2  ;;  %v1534_v41 = vadd.s32 %v4783_v8, %v1277_v24  ;;  %vm1788_vm10 = vcmp.lt.s32.totalorder %v1532_v25, 3072  ;;  %v764_v43 = vsub.f32 %v252_v30, %v508_v31  ;;  %v259_v24 = vld [vmem:[%s4761_s26 + $0x120] sm:$0xff] }
  0xa1   : > { %v2805_v18 = vadd.f32 %v2804_v10, %v2550_v4  ;;  %v1018_v44 = vmul.f32 %v762_v27, %v762_v27  ;;  %v2555_v45 = vsel %vm1787_vm9, %v1016_v28, 0.0  ;;  %v1280_v48 = vadd.s32 248, %v4775_v2  ;;  %v515_v25 = vld [vmem:[%s4767_s7 + $0x120] sm:$0xff] }
  0xa2   : > { %v1535_v49 = vadd.s32 %v4783_v8, %v1278_v32  ;;  %vm1789_vm11 = vcmp.lt.s32.totalorder %v1533_v33, 3072  ;;  %v765_v51 = vsub.f32 %v253_v38, %v509_v39  ;;  %v1019_v52 = vmul.f32 %v763_v35, %v763_v35  ;;  %v260_v32 = vld [vmem:[%s4761_s26 + $0x128] sm:$0xff] }
  0xa3   : > { %v2806_v26 = vadd.f32 %v2805_v18, %v2551_v13  ;;  %v2556_v53 = vsel %vm1788_vm10, %v1017_v36, 0.0  ;;  %v1281_v56 = vadd.s32 256, %v4775_v2  ;;  %v1536_v57 = vadd.s32 %v4783_v8, %v1279_v40  ;;  %v516_v33 = vld [vmem:[%s4767_s7 + $0x128] sm:$0xff]  ;;  %v261_v40 = vld [vmem:[%s4761_s26 + $0x130] sm:$0xff] }
  0xa4   : > { %vm1790_vm12 = vcmp.lt.s32.totalorder %v1534_v41, 3072  ;;  %v766_v59 = vsub.f32 %v254_v46, %v510_v47  ;;  %v1020_v60 = vmul.f32 %v764_v43, %v764_v43  ;;  %v2557_v61 = vsel %vm1789_vm11, %v1018_v44, 0.0  ;;  %v517_v41 = vld [vmem:[%s4767_s7 + $0x130] sm:$0xff] }
  0xa5   : > { %v2807_v34 = vadd.f32 %v2806_v26, %v2552_v21  ;;  %v1282_v0 = vadd.s32 264, %v4775_v2  ;;  %v1537_v1 = vadd.s32 %v4783_v8, %v1280_v48  ;;  %vm1791_vm13 = vcmp.lt.s32.totalorder %v1535_v49, 3072  ;;  %v262_v48 = vld [vmem:[%s4761_s26 + $0x138] sm:$0xff] }
  0xa6   : > { %v767_v4 = vsub.f32 %v255_v54, %v511_v55  ;;  %v1021_v5 = vmul.f32 %v765_v51, %v765_v51  ;;  %v2558_v6 = vsel %vm1790_vm12, %v1019_v52, 0.0  ;;  %v1283_v10 = vadd.s32 272, %v4775_v2  ;;  %v518_v49 = vld [vmem:[%s4767_s7 + $0x138] sm:$0xff] }
  0xa7   : > { %v2808_v42 = vadd.f32 %v2807_v34, %v2553_v29  ;;  %v1538_v11 = vadd.s32 %v4783_v8, %v1281_v56  ;;  %vm1792_vm14 = vcmp.lt.s32.totalorder %v1536_v57, 3072  ;;  %v768_v13 = vsub.f32 %v256_v62, %v512_v63  ;;  %v263_v56 = vld [vmem:[%s4761_s26 + $0x140] sm:$0xff] }
  0xa8   : > { %v1022_v14 = vmul.f32 %v766_v59, %v766_v59  ;;  %v2559_v15 = vsel %vm1791_vm13, %v1020_v60, 0.0  ;;  %v1284_v18 = vadd.s32 280, %v4775_v2  ;;  %v1539_v19 = vadd.s32 %v4783_v8, %v1282_v0  ;;  %v519_v57 = vld [vmem:[%s4767_s7 + $0x140] sm:$0xff]  ;;  %v264_v0 = vld [vmem:[%s4761_s26 + $0x148] sm:$0xff] }
  0xa9   : > { %v2809_v50 = vadd.f32 %v2808_v42, %v2554_v37  ;;  %vm1793_vm15 = vcmp.lt.s32.totalorder %v1537_v1, 3072  ;;  %v769_v21 = vsub.f32 %v257_v7, %v513_v9  ;;  %v1023_v22 = vmul.f32 %v767_v4, %v767_v4  ;;  %v520_v1 = vld [vmem:[%s4767_s7 + $0x148] sm:$0xff] }
  0xaa   : > { %v2560_v23 = vsel %vm1792_vm14, %v1021_v5, 0.0  ;;  %v1285_v26 = vadd.s32 288, %v4775_v2  ;;  %v1540_v27 = vadd.s32 %v4783_v8, %v1283_v10  ;;  %vm1794_vm0 = vcmp.lt.s32.totalorder %v1538_v11, 3072  ;;  %v265_v10 = vld [vmem:[%s4761_s26 + $0x150] sm:$0xff] }
  0xab   : > { %v2810_v58 = vadd.f32 %v2809_v50, %v2555_v45  ;;  %v770_v29 = vsub.f32 %v258_v16, %v514_v17  ;;  %v1024_v30 = vmul.f32 %v768_v13, %v768_v13  ;;  %v2561_v31 = vsel %vm1793_vm15, %v1022_v14, 0.0  ;;  %v521_v11 = vld [vmem:[%s4767_s7 + $0x150] sm:$0xff] }
  0xac   : > { %v1286_v34 = vadd.s32 296, %v4775_v2  ;;  %v1541_v35 = vadd.s32 %v4783_v8, %v1284_v18  ;;  %vm1795_vm1 = vcmp.lt.s32.totalorder %v1539_v19, 3072  ;;  %v771_v37 = vsub.f32 %v259_v24, %v515_v25  ;;  %v266_v18 = vld [vmem:[%s4761_s26 + $0x158] sm:$0xff] }
  0xad   : > { %v2811_v3 = vadd.f32 %v2810_v58, %v2556_v53  ;;  %v1025_v38 = vmul.f32 %v769_v21, %v769_v21  ;;  %v2562_v39 = vsel %vm1794_vm0, %v1023_v22, 0.0  ;;  %v1287_v42 = vadd.s32 304, %v4775_v2  ;;  %v522_v19 = vld [vmem:[%s4767_s7 + $0x158] sm:$0xff] }
  0xae   : > { %v1542_v43 = vadd.s32 %v4783_v8, %v1285_v26  ;;  %vm1796_vm2 = vcmp.lt.s32.totalorder %v1540_v27, 3072  ;;  %v772_v45 = vsub.f32 %v260_v32, %v516_v33  ;;  %v1026_v46 = vmul.f32 %v770_v29, %v770_v29  ;;  %v267_v26 = vld [vmem:[%s4761_s26 + $0x160] sm:$0xff] }
  0xaf   : > { %v2812_v12 = vadd.f32 %v2811_v3, %v2557_v61  ;;  %v2563_v47 = vsel %vm1795_vm1, %v1024_v30, 0.0  ;;  %v1288_v50 = vadd.s32 312, %v4775_v2  ;;  %v1543_v51 = vadd.s32 %v4783_v8, %v1286_v34  ;;  %v523_v27 = vld [vmem:[%s4767_s7 + $0x160] sm:$0xff]  ;;  %v268_v34 = vld [vmem:[%s4761_s26 + $0x168] sm:$0xff] }
  0xb0   : > { %vm1797_vm3 = vcmp.lt.s32.totalorder %v1541_v35, 3072  ;;  %v773_v53 = vsub.f32 %v261_v40, %v517_v41  ;;  %v1027_v54 = vmul.f32 %v771_v37, %v771_v37  ;;  %v2564_v55 = vsel %vm1796_vm2, %v1025_v38, 0.0  ;;  %v524_v35 = vld [vmem:[%s4767_s7 + $0x168] sm:$0xff] }
  0xb1   : > { %v2813_v20 = vadd.f32 %v2812_v12, %v2558_v6  ;;  %v1289_v58 = vadd.s32 320, %v4775_v2  ;;  %v1544_v59 = vadd.s32 %v4783_v8, %v1287_v42  ;;  %vm1798_vm4 = vcmp.lt.s32.totalorder %v1542_v43, 3072  ;;  %v269_v42 = vld [vmem:[%s4761_s26 + $0x170] sm:$0xff] }
  0xb2   : > { %v774_v61 = vsub.f32 %v262_v48, %v518_v49  ;;  %v1028_v62 = vmul.f32 %v772_v45, %v772_v45  ;;  %v2565_v63 = vsel %vm1797_vm3, %v1026_v46, 0.0  ;;  %v1290_v3 = vadd.s32 328, %v4775_v2  ;;  %v525_v43 = vld [vmem:[%s4767_s7 + $0x170] sm:$0xff] }
  0xb3   : > { %v2814_v28 = vadd.f32 %v2813_v20, %v2559_v15  ;;  %v1545_v4 = vadd.s32 %v4783_v8, %v1288_v50  ;;  %vm1799_vm5 = vcmp.lt.s32.totalorder %v1543_v51, 3072  ;;  %v775_v6 = vsub.f32 %v263_v56, %v519_v57  ;;  %v270_v50 = vld [vmem:[%s4761_s26 + $0x178] sm:$0xff] }
  0xb4   : > { %v1029_v7 = vmul.f32 %v773_v53, %v773_v53  ;;  %v2566_v9 = vsel %vm1798_vm4, %v1027_v54, 0.0  ;;  %v1291_v12 = vadd.s32 336, %v4775_v2  ;;  %v1546_v13 = vadd.s32 %v4783_v8, %v1289_v58  ;;  %v526_v51 = vld [vmem:[%s4767_s7 + $0x178] sm:$0xff]  ;;  %v271_v58 = vld [vmem:[%s4761_s26 + $0x180] sm:$0xff] }
  0xb5   : > { %v2815_v36 = vadd.f32 %v2814_v28, %v2560_v23  ;;  %vm1800_vm6 = vcmp.lt.s32.totalorder %v1544_v59, 3072  ;;  %v776_v15 = vsub.f32 %v264_v0, %v520_v1  ;;  %v1030_v16 = vmul.f32 %v774_v61, %v774_v61  ;;  %v527_v59 = vld [vmem:[%s4767_s7 + $0x180] sm:$0xff] }
  0xb6   : > { %v2567_v17 = vsel %vm1799_vm5, %v1028_v62, 0.0  ;;  %v1292_v20 = vadd.s32 344, %v4775_v2  ;;  %v1547_v21 = vadd.s32 %v4783_v8, %v1290_v3  ;;  %vm1801_vm7 = vcmp.lt.s32.totalorder %v1545_v4, 3072  ;;  %v272_v3 = vld [vmem:[%s4761_s26 + $0x188] sm:$0xff] }
  0xb7   : > { %v2816_v44 = vadd.f32 %v2815_v36, %v2561_v31  ;;  %v777_v23 = vsub.f32 %v265_v10, %v521_v11  ;;  %v1031_v24 = vmul.f32 %v775_v6, %v775_v6  ;;  %v2568_v25 = vsel %vm1800_vm6, %v1029_v7, 0.0  ;;  %v528_v4 = vld [vmem:[%s4767_s7 + $0x188] sm:$0xff] }
  0xb8   : > { %v1293_v28 = vadd.s32 352, %v4775_v2  ;;  %v1548_v29 = vadd.s32 %v4783_v8, %v1291_v12  ;;  %vm1802_vm8 = vcmp.lt.s32.totalorder %v1546_v13, 3072  ;;  %v778_v31 = vsub.f32 %v266_v18, %v522_v19  ;;  %v273_v12 = vld [vmem:[%s4761_s26 + $0x190] sm:$0xff] }
  0xb9   : > { %v2817_v52 = vadd.f32 %v2816_v44, %v2562_v39  ;;  %v1032_v32 = vmul.f32 %v776_v15, %v776_v15  ;;  %v2569_v33 = vsel %vm1801_vm7, %v1030_v16, 0.0  ;;  %v1294_v36 = vadd.s32 360, %v4775_v2  ;;  %v529_v13 = vld [vmem:[%s4767_s7 + $0x190] sm:$0xff] }
  0xba   : > { %v1549_v37 = vadd.s32 %v4783_v8, %v1292_v20  ;;  %vm1803_vm9 = vcmp.lt.s32.totalorder %v1547_v21, 3072  ;;  %v779_v39 = vsub.f32 %v267_v26, %v523_v27  ;;  %v1033_v40 = vmul.f32 %v777_v23, %v777_v23  ;;  %v274_v20 = vld [vmem:[%s4761_s26 + $0x198] sm:$0xff] }
  0xbb   : > { %v2818_v60 = vadd.f32 %v2817_v52, %v2563_v47  ;;  %v2570_v41 = vsel %vm1802_vm8, %v1031_v24, 0.0  ;;  %v1295_v44 = vadd.s32 368, %v4775_v2  ;;  %v1550_v45 = vadd.s32 %v4783_v8, %v1293_v28  ;;  %v530_v21 = vld [vmem:[%s4767_s7 + $0x198] sm:$0xff]  ;;  %v275_v28 = vld [vmem:[%s4761_s26 + $0x1a0] sm:$0xff] }
  0xbc   : > { %vm1804_vm10 = vcmp.lt.s32.totalorder %v1548_v29, 3072  ;;  %v780_v47 = vsub.f32 %v268_v34, %v524_v35  ;;  %v1034_v48 = vmul.f32 %v778_v31, %v778_v31  ;;  %v2571_v49 = vsel %vm1803_vm9, %v1032_v32, 0.0  ;;  %v531_v29 = vld [vmem:[%s4767_s7 + $0x1a0] sm:$0xff] }
  0xbd   : > { %v2819_v5 = vadd.f32 %v2818_v60, %v2564_v55  ;;  %v1296_v52 = vadd.s32 376, %v4775_v2  ;;  %v1551_v53 = vadd.s32 %v4783_v8, %v1294_v36  ;;  %vm1805_vm11 = vcmp.lt.s32.totalorder %v1549_v37, 3072  ;;  %v276_v36 = vld [vmem:[%s4761_s26 + $0x1a8] sm:$0xff] }
  0xbe   : > { %v781_v55 = vsub.f32 %v269_v42, %v525_v43  ;;  %v1035_v56 = vmul.f32 %v779_v39, %v779_v39  ;;  %v2572_v57 = vsel %vm1804_vm10, %v1033_v40, 0.0  ;;  %v1297_v60 = vadd.s32 384, %v4775_v2  ;;  %v532_v37 = vld [vmem:[%s4767_s7 + $0x1a8] sm:$0xff] }
  0xbf   : > { %v2820_v14 = vadd.f32 %v2819_v5, %v2565_v63  ;;  %v1552_v61 = vadd.s32 %v4783_v8, %v1295_v44  ;;  %vm1806_vm12 = vcmp.lt.s32.totalorder %v1550_v45, 3072  ;;  %v782_v63 = vsub.f32 %v270_v50, %v526_v51  ;;  %v277_v44 = vld [vmem:[%s4761_s26 + $0x1b0] sm:$0xff] }
  0xc0   : > { %v1036_v0 = vmul.f32 %v780_v47, %v780_v47  ;;  %v2573_v1 = vsel %vm1805_vm11, %v1034_v48, 0.0  ;;  %v1298_v5 = vadd.s32 392, %v4775_v2  ;;  %v1553_v6 = vadd.s32 %v4783_v8, %v1296_v52  ;;  %v533_v45 = vld [vmem:[%s4767_s7 + $0x1b0] sm:$0xff]  ;;  %v278_v52 = vld [vmem:[%s4761_s26 + $0x1b8] sm:$0xff] }
  0xc1   : > { %v2821_v22 = vadd.f32 %v2820_v14, %v2566_v9  ;;  %vm1807_vm13 = vcmp.lt.s32.totalorder %v1551_v53, 3072  ;;  %v783_v9 = vsub.f32 %v271_v58, %v527_v59  ;;  %v1037_v10 = vmul.f32 %v781_v55, %v781_v55  ;;  %v534_v53 = vld [vmem:[%s4767_s7 + $0x1b8] sm:$0xff] }
  0xc2   : > { %v2574_v11 = vsel %vm1806_vm12, %v1035_v56, 0.0  ;;  %v1299_v14 = vadd.s32 400, %v4775_v2  ;;  %v1554_v15 = vadd.s32 %v4783_v8, %v1297_v60  ;;  %vm1808_vm14 = vcmp.lt.s32.totalorder %v1552_v61, 3072  ;;  %v279_v60 = vld [vmem:[%s4761_s26 + $0x1c0] sm:$0xff] }
  0xc3   : > { %v2822_v30 = vadd.f32 %v2821_v22, %v2567_v17  ;;  %v784_v17 = vsub.f32 %v272_v3, %v528_v4  ;;  %v1038_v18 = vmul.f32 %v782_v63, %v782_v63  ;;  %v2575_v19 = vsel %vm1807_vm13, %v1036_v0, 0.0  ;;  %v535_v61 = vld [vmem:[%s4767_s7 + $0x1c0] sm:$0xff] }
  0xc4   : > { %v1300_v22 = vadd.s32 408, %v4775_v2  ;;  %v1555_v23 = vadd.s32 %v4783_v8, %v1298_v5  ;;  %vm1809_vm15 = vcmp.lt.s32.totalorder %v1553_v6, 3072  ;;  %v1039_v26 = vmul.f32 %v783_v9, %v783_v9  ;;  %v280_v5 = vld [vmem:[%s4761_s26 + $0x1c8] sm:$0xff] }
  0xc5   : > { %v2823_v38 = vadd.f32 %v2822_v30, %v2568_v25  ;;  %v785_v25 = vsub.f32 %v273_v12, %v529_v13  ;;  %v2576_v27 = vsel %vm1808_vm14, %v1037_v10, 0.0  ;;  %v1301_v30 = vadd.s32 416, %v4775_v2  ;;  %v536_v6 = vld [vmem:[%s4767_s7 + $0x1c8] sm:$0xff] }
  0xc6   : > { %v1556_v31 = vadd.s32 %v4783_v8, %v1299_v14  ;;  %vm1810_vm0 = vcmp.lt.s32.totalorder %v1554_v15, 3072  ;;  %v1040_v34 = vmul.f32 %v784_v17, %v784_v17  ;;  %v2577_v35 = vsel %vm1809_vm15, %v1038_v18, 0.0  ;;  %v281_v14 = vld [vmem:[%s4761_s26 + $0x1d0] sm:$0xff] }
  0xc7   : > { %v2824_v46 = vadd.f32 %v2823_v38, %v2569_v33  ;;  %v786_v33 = vsub.f32 %v274_v20, %v530_v21  ;;  %v1302_v38 = vadd.s32 424, %v4775_v2  ;;  %v1557_v39 = vadd.s32 %v4783_v8, %v1300_v22  ;;  %v537_v15 = vld [vmem:[%s4767_s7 + $0x1d0] sm:$0xff]  ;;  %v282_v22 = vld [vmem:[%s4761_s26 + $0x1d8] sm:$0xff] }
  0xc8   : > { %vm1811_vm1 = vcmp.lt.s32.totalorder %v1555_v23, 3072  ;;  %v1041_v42 = vmul.f32 %v785_v25, %v785_v25  ;;  %v2578_v43 = vsel %vm1810_vm0, %v1039_v26, 0.0  ;;  %v1558_v47 = vadd.s32 %v4783_v8, %v1301_v30  ;;  %v538_v23 = vld [vmem:[%s4767_s7 + $0x1d8] sm:$0xff]  ;;  %v283_v30 = vld [vmem:[%s4761_s26 + $0x1e0] sm:$0xff] }
  0xc9   : > { %v2825_v54 = vadd.f32 %v2824_v46, %v2570_v41  ;;  %v787_v41 = vsub.f32 %v275_v28, %v531_v29  ;;  %v1303_v46 = vadd.s32 432, %v4775_v2  ;;  %vm1812_vm2 = vcmp.lt.s32.totalorder %v1556_v31, 3072  ;;  %v539_v31 = vld [vmem:[%s4767_s7 + $0x1e0] sm:$0xff] }
  0xca   : > { %v1042_v50 = vmul.f32 %v786_v33, %v786_v33  ;;  %v2579_v51 = vsel %vm1811_vm1, %v1040_v34, 0.0  ;;  %v1559_v55 = vadd.s32 %v4783_v8, %v1302_v38  ;;  %vm1813_vm3 = vcmp.lt.s32.totalorder %v1557_v39, 3072  ;;  %v284_v38 = vld [vmem:[%s4761_s26 + $0x1e8] sm:$0xff] }
  0xcb   : > { %v2826_v62 = vadd.f32 %v2825_v54, %v2571_v49  ;;  %v788_v49 = vsub.f32 %v276_v36, %v532_v37  ;;  %v1304_v54 = vadd.s32 440, %v4775_v2  ;;  %v1043_v58 = vmul.f32 %v787_v41, %v787_v41  ;;  %v540_v39 = vld [vmem:[%s4767_s7 + $0x1e8] sm:$0xff] }
  0xcc   : > { %v2580_v59 = vsel %vm1812_vm2, %v1041_v42, 0.0  ;;  %v1560_v63 = vadd.s32 %v4783_v8, %v1303_v46  ;;  %vm1814_vm4 = vcmp.lt.s32.totalorder %v1558_v47, 3072  ;;  %v2581_v4 = vsel %vm1813_vm3, %v1042_v50, 0.0  ;;  %v285_v46 = vld [vmem:[%s4761_s26 + $0x1f0] sm:$0xff] }
  0xcd   : > { %v2827_v7 = vadd.f32 %v2826_v62, %v2572_v57  ;;  %v789_v57 = vsub.f32 %v277_v44, %v533_v45  ;;  %v1305_v62 = vadd.s32 448, %v4775_v2  ;;  %v1044_v3 = vmul.f32 %v788_v49, %v788_v49  ;;  %v541_v47 = vld [vmem:[%s4767_s7 + $0x1f0] sm:$0xff] }
  0xce   : > { %v1561_v9 = vadd.s32 %v4783_v8, %v1304_v54  ;;  %vm1815_vm5 = vcmp.lt.s32.totalorder %v1559_v55, 3072  ;;  %v2582_v13 = vsel %vm1814_vm4, %v1043_v58, 0.0  ;;  %vm1816_vm6 = vcmp.lt.s32.totalorder %v1560_v63, 3072  ;;  %v286_v54 = vld [vmem:[%s4761_s26 + $0x1f8] sm:$0xff]  ;;  %v543_v63 = vld [vmem:[%s4767_s7 + $0x200] sm:$0xff] }
  0xcf   : > { %v2828_v16 = vadd.f32 %v2827_v7, %v2573_v1  ;;  %v790_v1 = vsub.f32 %v278_v52, %v534_v53  ;;  %v1306_v7 = vadd.s32 456, %v4775_v2  ;;  %v1045_v12 = vmul.f32 %v789_v57, %v789_v57  ;;  %v542_v55 = vld [vmem:[%s4767_s7 + $0x1f8] sm:$0xff] }
  0xd0   : > { %v1562_v17 = vadd.s32 %v4783_v8, %v1305_v62  ;;  %v2583_v21 = vsel %vm1815_vm5, %v1044_v3, 0.0  ;;  %vm1817_vm7 = vcmp.lt.s32.totalorder %v1561_v9, 3072  ;;  %v287_v62 = vld [vmem:[%s4761_s26 + $0x200] sm:$0xff]  ;;  %v544_v9 = vld [vmem:[%s4767_s7 + $0x208] sm:$0xff] }
  0xd1   : > { %v2829_v24 = vadd.f32 %v2828_v16, %v2574_v11  ;;  %v791_v11 = vsub.f32 %v279_v60, %v535_v61  ;;  %v1307_v16 = vadd.s32 464, %v4775_v2  ;;  %v1046_v20 = vmul.f32 %v790_v1, %v790_v1 }
  0xd2   : > { %v1563_v25 = vadd.s32 %v4783_v8, %v1306_v7  ;;  %v2584_v29 = vsel %vm1816_vm6, %v1045_v12, 0.0  ;;  %vm1818_vm8 = vcmp.lt.s32.totalorder %v1562_v17, 3072  ;;  %v288_v7 = vld [vmem:[%s4761_s26 + $0x208] sm:$0xff]  ;;  %v545_v17 = vld [vmem:[%s4767_s7 + $0x210] sm:$0xff] }
  0xd3   : > { %v2830_v32 = vadd.f32 %v2829_v24, %v2575_v19  ;;  %v792_v19 = vsub.f32 %v280_v5, %v536_v6  ;;  %v1308_v24 = vadd.s32 472, %v4775_v2  ;;  %v1047_v28 = vmul.f32 %v791_v11, %v791_v11 }
  0xd4   : > { %v1564_v33 = vadd.s32 %v4783_v8, %v1307_v16  ;;  %v2585_v37 = vsel %vm1817_vm7, %v1046_v20, 0.0  ;;  %vm1819_vm9 = vcmp.lt.s32.totalorder %v1563_v25, 3072  ;;  %v289_v16 = vld [vmem:[%s4761_s26 + $0x210] sm:$0xff]  ;;  %v546_v25 = vld [vmem:[%s4767_s7 + $0x218] sm:$0xff] }
  0xd5   : > { %v2831_v40 = vadd.f32 %v2830_v32, %v2576_v27  ;;  %v793_v27 = vsub.f32 %v281_v14, %v537_v15  ;;  %v1309_v32 = vadd.s32 480, %v4775_v2  ;;  %v1048_v36 = vmul.f32 %v792_v19, %v792_v19 }
  0xd6   : > { %v1565_v41 = vadd.s32 %v4783_v8, %v1308_v24  ;;  %v2586_v45 = vsel %vm1818_vm8, %v1047_v28, 0.0  ;;  %vm1820_vm10 = vcmp.lt.s32.totalorder %v1564_v33, 3072  ;;  %v290_v24 = vld [vmem:[%s4761_s26 + $0x218] sm:$0xff]  ;;  %v547_v33 = vld [vmem:[%s4767_s7 + $0x220] sm:$0xff] }
  0xd7   : > { %v2832_v48 = vadd.f32 %v2831_v40, %v2577_v35  ;;  %v794_v35 = vsub.f32 %v282_v22, %v538_v23  ;;  %v1310_v40 = vadd.s32 488, %v4775_v2  ;;  %v1049_v44 = vmul.f32 %v793_v27, %v793_v27 }
  0xd8   : > { %v1566_v49 = vadd.s32 %v4783_v8, %v1309_v32  ;;  %v2587_v53 = vsel %vm1819_vm9, %v1048_v36, 0.0  ;;  %vm1821_vm11 = vcmp.lt.s32.totalorder %v1565_v41, 3072  ;;  %v291_v32 = vld [vmem:[%s4761_s26 + $0x220] sm:$0xff]  ;;  %v548_v41 = vld [vmem:[%s4767_s7 + $0x228] sm:$0xff] }
  0xd9   : > { %v2833_v56 = vadd.f32 %v2832_v48, %v2578_v43  ;;  %v795_v43 = vsub.f32 %v283_v30, %v539_v31  ;;  %v1311_v48 = vadd.s32 496, %v4775_v2  ;;  %v1050_v52 = vmul.f32 %v794_v35, %v794_v35 }
  0xda   : > { %v1567_v57 = vadd.s32 %v4783_v8, %v1310_v40  ;;  %v2588_v61 = vsel %vm1820_vm10, %v1049_v44, 0.0  ;;  %vm1822_vm12 = vcmp.lt.s32.totalorder %v1566_v49, 3072  ;;  %v292_v40 = vld [vmem:[%s4761_s26 + $0x228] sm:$0xff]  ;;  %v549_v49 = vld [vmem:[%s4767_s7 + $0x230] sm:$0xff] }
  0xdb   : > { %v2834_v0 = vadd.f32 %v2833_v56, %v2579_v51  ;;  %v796_v51 = vsub.f32 %v284_v38, %v540_v39  ;;  %v1312_v56 = vadd.s32 504, %v4775_v2  ;;  %v1051_v60 = vmul.f32 %v795_v43, %v795_v43 }
  0xdc   : > { %v1568_v1 = vadd.s32 %v4783_v8, %v1311_v48  ;;  %v2589_v6 = vsel %vm1821_vm11, %v1050_v52, 0.0  ;;  %vm1823_vm13 = vcmp.lt.s32.totalorder %v1567_v57, 3072  ;;  %v293_v48 = vld [vmem:[%s4761_s26 + $0x230] sm:$0xff]  ;;  %v550_v57 = vld [vmem:[%s4767_s7 + $0x238] sm:$0xff] }
  0xdd   : > { %v2835_v10 = vadd.f32 %v2834_v0, %v2580_v59  ;;  %v797_v59 = vsub.f32 %v285_v46, %v541_v47  ;;  %v1313_v0 = vadd.s32 512, %v4775_v2  ;;  %v1052_v5 = vmul.f32 %v796_v51, %v796_v51 }
  0xde   : > { %v1569_v11 = vadd.s32 %v4783_v8, %v1312_v56  ;;  %v2590_v15 = vsel %vm1822_vm12, %v1051_v60, 0.0  ;;  %vm1824_vm14 = vcmp.lt.s32.totalorder %v1568_v1, 3072  ;;  %v294_v56 = vld [vmem:[%s4761_s26 + $0x238] sm:$0xff]  ;;  %v551_v1 = vld [vmem:[%s4767_s7 + $0x240] sm:$0xff] }
  0xdf   : > { %v2836_v18 = vadd.f32 %v2835_v10, %v2581_v4  ;;  %v798_v4 = vsub.f32 %v286_v54, %v542_v55  ;;  %v1314_v10 = vadd.s32 520, %v4775_v2  ;;  %v1053_v14 = vmul.f32 %v797_v59, %v797_v59 }
  0xe0   : > { %v1570_v19 = vadd.s32 %v4783_v8, %v1313_v0  ;;  %v2591_v23 = vsel %vm1823_vm13, %v1052_v5, 0.0  ;;  %vm1825_vm15 = vcmp.lt.s32.totalorder %v1569_v11, 3072  ;;  %v295_v0 = vld [vmem:[%s4761_s26 + $0x240] sm:$0xff]  ;;  %v552_v11 = vld [vmem:[%s4767_s7 + $0x248] sm:$0xff] }
  0xe1   : > { %v2837_v26 = vadd.f32 %v2836_v18, %v2582_v13  ;;  %v799_v13 = vsub.f32 %v287_v62, %v543_v63  ;;  %v1315_v18 = vadd.s32 528, %v4775_v2  ;;  %v1054_v22 = vmul.f32 %v798_v4, %v798_v4 }
  0xe2   : > { %v1571_v27 = vadd.s32 %v4783_v8, %v1314_v10  ;;  %v2592_v31 = vsel %vm1824_vm14, %v1053_v14, 0.0  ;;  %vm1826_vm0 = vcmp.lt.s32.totalorder %v1570_v19, 3072  ;;  %v296_v10 = vld [vmem:[%s4761_s26 + $0x248] sm:$0xff]  ;;  %v553_v19 = vld [vmem:[%s4767_s7 + $0x250] sm:$0xff] }
  0xe3   : > { %v2838_v34 = vadd.f32 %v2837_v26, %v2583_v21  ;;  %v800_v21 = vsub.f32 %v288_v7, %v544_v9  ;;  %v1316_v26 = vadd.s32 536, %v4775_v2  ;;  %v1055_v30 = vmul.f32 %v799_v13, %v799_v13 }
  0xe4   : > { %v1572_v35 = vadd.s32 %v4783_v8, %v1315_v18  ;;  %v2593_v39 = vsel %vm1825_vm15, %v1054_v22, 0.0  ;;  %vm1827_vm1 = vcmp.lt.s32.totalorder %v1571_v27, 3072  ;;  %v297_v18 = vld [vmem:[%s4761_s26 + $0x250] sm:$0xff]  ;;  %v554_v27 = vld [vmem:[%s4767_s7 + $0x258] sm:$0xff] }
  0xe5   : > { %v2839_v42 = vadd.f32 %v2838_v34, %v2584_v29  ;;  %v801_v29 = vsub.f32 %v289_v16, %v545_v17  ;;  %v1317_v34 = vadd.s32 544, %v4775_v2  ;;  %v1056_v38 = vmul.f32 %v800_v21, %v800_v21 }
  0xe6   : > { %v1573_v43 = vadd.s32 %v4783_v8, %v1316_v26  ;;  %v2594_v47 = vsel %vm1826_vm0, %v1055_v30, 0.0  ;;  %vm1828_vm2 = vcmp.lt.s32.totalorder %v1572_v35, 3072  ;;  %v298_v26 = vld [vmem:[%s4761_s26 + $0x258] sm:$0xff]  ;;  %v555_v35 = vld [vmem:[%s4767_s7 + $0x260] sm:$0xff] }
  0xe7   : > { %v2840_v50 = vadd.f32 %v2839_v42, %v2585_v37  ;;  %v802_v37 = vsub.f32 %v290_v24, %v546_v25  ;;  %v1318_v42 = vadd.s32 552, %v4775_v2  ;;  %v1057_v46 = vmul.f32 %v801_v29, %v801_v29 }
  0xe8   : > { %v1574_v51 = vadd.s32 %v4783_v8, %v1317_v34  ;;  %v2595_v55 = vsel %vm1827_vm1, %v1056_v38, 0.0  ;;  %vm1829_vm3 = vcmp.lt.s32.totalorder %v1573_v43, 3072  ;;  %v299_v34 = vld [vmem:[%s4761_s26 + $0x260] sm:$0xff]  ;;  %v556_v43 = vld [vmem:[%s4767_s7 + $0x268] sm:$0xff] }
  0xe9   : > { %v2841_v58 = vadd.f32 %v2840_v50, %v2586_v45  ;;  %v803_v45 = vsub.f32 %v291_v32, %v547_v33  ;;  %v1319_v50 = vadd.s32 560, %v4775_v2  ;;  %v1058_v54 = vmul.f32 %v802_v37, %v802_v37 }
  0xea   : > { %v1575_v59 = vadd.s32 %v4783_v8, %v1318_v42  ;;  %v2596_v63 = vsel %vm1828_vm2, %v1057_v46, 0.0  ;;  %vm1830_vm4 = vcmp.lt.s32.totalorder %v1574_v51, 3072  ;;  %v300_v42 = vld [vmem:[%s4761_s26 + $0x268] sm:$0xff]  ;;  %v557_v51 = vld [vmem:[%s4767_s7 + $0x270] sm:$0xff] }
  0xeb   : > { %v2842_v3 = vadd.f32 %v2841_v58, %v2587_v53  ;;  %v804_v53 = vsub.f32 %v292_v40, %v548_v41  ;;  %v1320_v58 = vadd.s32 568, %v4775_v2  ;;  %v1059_v62 = vmul.f32 %v803_v45, %v803_v45 }
  0xec   : > { %v1576_v4 = vadd.s32 %v4783_v8, %v1319_v50  ;;  %v2597_v9 = vsel %vm1829_vm3, %v1058_v54, 0.0  ;;  %vm1831_vm5 = vcmp.lt.s32.totalorder %v1575_v59, 3072  ;;  %v301_v50 = vld [vmem:[%s4761_s26 + $0x270] sm:$0xff]  ;;  %v558_v59 = vld [vmem:[%s4767_s7 + $0x278] sm:$0xff] }
  0xed   : > { %v2843_v12 = vadd.f32 %v2842_v3, %v2588_v61  ;;  %v805_v61 = vsub.f32 %v293_v48, %v549_v49  ;;  %v1321_v3 = vadd.s32 576, %v4775_v2  ;;  %v1060_v7 = vmul.f32 %v804_v53, %v804_v53 }
  0xee   : > { %v1577_v13 = vadd.s32 %v4783_v8, %v1320_v58  ;;  %v2598_v17 = vsel %vm1830_vm4, %v1059_v62, 0.0  ;;  %vm1832_vm6 = vcmp.lt.s32.totalorder %v1576_v4, 3072  ;;  %v302_v58 = vld [vmem:[%s4761_s26 + $0x278] sm:$0xff]  ;;  %v559_v4 = vld [vmem:[%s4767_s7 + $0x280] sm:$0xff] }
  0xef   : > { %v2844_v20 = vadd.f32 %v2843_v12, %v2589_v6  ;;  %v806_v6 = vsub.f32 %v294_v56, %v550_v57  ;;  %v1322_v12 = vadd.s32 584, %v4775_v2  ;;  %v1061_v16 = vmul.f32 %v805_v61, %v805_v61 }
  0xf0   : > { %v1578_v21 = vadd.s32 %v4783_v8, %v1321_v3  ;;  %v2599_v25 = vsel %vm1831_vm5, %v1060_v7, 0.0  ;;  %vm1833_vm7 = vcmp.lt.s32.totalorder %v1577_v13, 3072  ;;  %v303_v3 = vld [vmem:[%s4761_s26 + $0x280] sm:$0xff]  ;;  %v560_v13 = vld [vmem:[%s4767_s7 + $0x288] sm:$0xff] }
  0xf1   : > { %v2845_v28 = vadd.f32 %v2844_v20, %v2590_v15  ;;  %v807_v15 = vsub.f32 %v295_v0, %v551_v1  ;;  %v1323_v20 = vadd.s32 592, %v4775_v2  ;;  %v1062_v24 = vmul.f32 %v806_v6, %v806_v6 }
  0xf2   : > { %v1579_v29 = vadd.s32 %v4783_v8, %v1322_v12  ;;  %v2600_v33 = vsel %vm1832_vm6, %v1061_v16, 0.0  ;;  %vm1834_vm8 = vcmp.lt.s32.totalorder %v1578_v21, 3072  ;;  %v304_v12 = vld [vmem:[%s4761_s26 + $0x288] sm:$0xff]  ;;  %v561_v21 = vld [vmem:[%s4767_s7 + $0x290] sm:$0xff] }
  0xf3   : > { %v2846_v36 = vadd.f32 %v2845_v28, %v2591_v23  ;;  %v808_v23 = vsub.f32 %v296_v10, %v552_v11  ;;  %v1324_v28 = vadd.s32 600, %v4775_v2  ;;  %v1063_v32 = vmul.f32 %v807_v15, %v807_v15 }
  0xf4   : > { %v1580_v37 = vadd.s32 %v4783_v8, %v1323_v20  ;;  %v2601_v41 = vsel %vm1833_vm7, %v1062_v24, 0.0  ;;  %vm1835_vm9 = vcmp.lt.s32.totalorder %v1579_v29, 3072  ;;  %v305_v20 = vld [vmem:[%s4761_s26 + $0x290] sm:$0xff]  ;;  %v562_v29 = vld [vmem:[%s4767_s7 + $0x298] sm:$0xff] }
  0xf5   : > { %v2847_v44 = vadd.f32 %v2846_v36, %v2592_v31  ;;  %v809_v31 = vsub.f32 %v297_v18, %v553_v19  ;;  %v1325_v36 = vadd.s32 608, %v4775_v2  ;;  %v1064_v40 = vmul.f32 %v808_v23, %v808_v23 }
  0xf6   : > { %v1581_v45 = vadd.s32 %v4783_v8, %v1324_v28  ;;  %v2602_v49 = vsel %vm1834_vm8, %v1063_v32, 0.0  ;;  %vm1836_vm10 = vcmp.lt.s32.totalorder %v1580_v37, 3072  ;;  %v306_v28 = vld [vmem:[%s4761_s26 + $0x298] sm:$0xff]  ;;  %v563_v37 = vld [vmem:[%s4767_s7 + $0x2a0] sm:$0xff] }
  0xf7   : > { %v2848_v52 = vadd.f32 %v2847_v44, %v2593_v39  ;;  %v810_v39 = vsub.f32 %v298_v26, %v554_v27  ;;  %v1326_v44 = vadd.s32 616, %v4775_v2  ;;  %v1065_v48 = vmul.f32 %v809_v31, %v809_v31 }
  0xf8   : > { %v1582_v53 = vadd.s32 %v4783_v8, %v1325_v36  ;;  %v2603_v57 = vsel %vm1835_vm9, %v1064_v40, 0.0  ;;  %vm1837_vm11 = vcmp.lt.s32.totalorder %v1581_v45, 3072  ;;  %v307_v36 = vld [vmem:[%s4761_s26 + $0x2a0] sm:$0xff]  ;;  %v564_v45 = vld [vmem:[%s4767_s7 + $0x2a8] sm:$0xff] }
  0xf9   : > { %v2849_v60 = vadd.f32 %v2848_v52, %v2594_v47  ;;  %v811_v47 = vsub.f32 %v299_v34, %v555_v35  ;;  %v1327_v52 = vadd.s32 624, %v4775_v2  ;;  %v1066_v56 = vmul.f32 %v810_v39, %v810_v39 }
  0xfa   : > { %v1583_v61 = vadd.s32 %v4783_v8, %v1326_v44  ;;  %v2604_v1 = vsel %vm1836_vm10, %v1065_v48, 0.0  ;;  %vm1838_vm12 = vcmp.lt.s32.totalorder %v1582_v53, 3072  ;;  %v308_v44 = vld [vmem:[%s4761_s26 + $0x2a8] sm:$0xff]  ;;  %v565_v53 = vld [vmem:[%s4767_s7 + $0x2b0] sm:$0xff] }
  0xfb   : > { %v2850_v5 = vadd.f32 %v2849_v60, %v2595_v55  ;;  %v812_v55 = vsub.f32 %v300_v42, %v556_v43  ;;  %v1328_v60 = vadd.s32 632, %v4775_v2  ;;  %v1067_v0 = vmul.f32 %v811_v47, %v811_v47 }
  0xfc   : > { %v1584_v6 = vadd.s32 %v4783_v8, %v1327_v52  ;;  %v2605_v11 = vsel %vm1837_vm11, %v1066_v56, 0.0  ;;  %vm1839_vm13 = vcmp.lt.s32.totalorder %v1583_v61, 3072  ;;  %v309_v52 = vld [vmem:[%s4761_s26 + $0x2b0] sm:$0xff]  ;;  %v566_v61 = vld [vmem:[%s4767_s7 + $0x2b8] sm:$0xff] }
  0xfd   : > { %v2851_v14 = vadd.f32 %v2850_v5, %v2596_v63  ;;  %v813_v63 = vsub.f32 %v301_v50, %v557_v51  ;;  %v1329_v5 = vadd.s32 640, %v4775_v2  ;;  %v1068_v10 = vmul.f32 %v812_v55, %v812_v55 }
  0xfe   : > { %v1585_v15 = vadd.s32 %v4783_v8, %v1328_v60  ;;  %v2606_v19 = vsel %vm1838_vm12, %v1067_v0, 0.0  ;;  %vm1840_vm14 = vcmp.lt.s32.totalorder %v1584_v6, 3072  ;;  %v310_v60 = vld [vmem:[%s4761_s26 + $0x2b8] sm:$0xff]  ;;  %v567_v6 = vld [vmem:[%s4767_s7 + $0x2c0] sm:$0xff] }
  0xff   : > { %v2852_v22 = vadd.f32 %v2851_v14, %v2597_v9  ;;  %v814_v9 = vsub.f32 %v302_v58, %v558_v59  ;;  %v1330_v14 = vadd.s32 648, %v4775_v2  ;;  %v1069_v18 = vmul.f32 %v813_v63, %v813_v63 }
 0x100   : > { %v1586_v23 = vadd.s32 %v4783_v8, %v1329_v5  ;;  %v2607_v27 = vsel %vm1839_vm13, %v1068_v10, 0.0  ;;  %vm1841_vm15 = vcmp.lt.s32.totalorder %v1585_v15, 3072  ;;  %v311_v5 = vld [vmem:[%s4761_s26 + $0x2c0] sm:$0xff]  ;;  %v568_v15 = vld [vmem:[%s4767_s7 + $0x2c8] sm:$0xff] }
 0x101   : > { %v2853_v30 = vadd.f32 %v2852_v22, %v2598_v17  ;;  %v815_v17 = vsub.f32 %v303_v3, %v559_v4  ;;  %v1331_v22 = vadd.s32 656, %v4775_v2  ;;  %v1070_v26 = vmul.f32 %v814_v9, %v814_v9 }
 0x102   : > { %v1587_v31 = vadd.s32 %v4783_v8, %v1330_v14  ;;  %v2608_v35 = vsel %vm1840_vm14, %v1069_v18, 0.0  ;;  %vm1842_vm0 = vcmp.lt.s32.totalorder %v1586_v23, 3072  ;;  %v312_v14 = vld [vmem:[%s4761_s26 + $0x2c8] sm:$0xff]  ;;  %v569_v23 = vld [vmem:[%s4767_s7 + $0x2d0] sm:$0xff] }
 0x103   : > { %v2854_v38 = vadd.f32 %v2853_v30, %v2599_v25  ;;  %v816_v25 = vsub.f32 %v304_v12, %v560_v13  ;;  %v1332_v30 = vadd.s32 664, %v4775_v2  ;;  %v1071_v34 = vmul.f32 %v815_v17, %v815_v17 }
 0x104   : > { %v1588_v39 = vadd.s32 %v4783_v8, %v1331_v22  ;;  %v2609_v43 = vsel %vm1841_vm15, %v1070_v26, 0.0  ;;  %vm1843_vm1 = vcmp.lt.s32.totalorder %v1587_v31, 3072  ;;  %v313_v22 = vld [vmem:[%s4761_s26 + $0x2d0] sm:$0xff]  ;;  %v570_v31 = vld [vmem:[%s4767_s7 + $0x2d8] sm:$0xff] }
 0x105   : > { %v2855_v46 = vadd.f32 %v2854_v38, %v2600_v33  ;;  %v817_v33 = vsub.f32 %v305_v20, %v561_v21  ;;  %v1333_v38 = vadd.s32 672, %v4775_v2  ;;  %v1072_v42 = vmul.f32 %v816_v25, %v816_v25 }
 0x106   : > { %v1589_v47 = vadd.s32 %v4783_v8, %v1332_v30  ;;  %v2610_v51 = vsel %vm1842_vm0, %v1071_v34, 0.0  ;;  %vm1844_vm2 = vcmp.lt.s32.totalorder %v1588_v39, 3072  ;;  %v314_v30 = vld [vmem:[%s4761_s26 + $0x2d8] sm:$0xff]  ;;  %v571_v39 = vld [vmem:[%s4767_s7 + $0x2e0] sm:$0xff] }
 0x107   : > { %v2856_v54 = vadd.f32 %v2855_v46, %v2601_v41  ;;  %v818_v41 = vsub.f32 %v306_v28, %v562_v29  ;;  %v1334_v46 = vadd.s32 680, %v4775_v2  ;;  %v1073_v50 = vmul.f32 %v817_v33, %v817_v33 }
 0x108   : > { %v1590_v55 = vadd.s32 %v4783_v8, %v1333_v38  ;;  %v2611_v59 = vsel %vm1843_vm1, %v1072_v42, 0.0  ;;  %vm1845_vm3 = vcmp.lt.s32.totalorder %v1589_v47, 3072  ;;  %v315_v38 = vld [vmem:[%s4761_s26 + $0x2e0] sm:$0xff]  ;;  %v572_v47 = vld [vmem:[%s4767_s7 + $0x2e8] sm:$0xff] }
 0x109   : > { %v2857_v62 = vadd.f32 %v2856_v54, %v2602_v49  ;;  %v819_v49 = vsub.f32 %v307_v36, %v563_v37  ;;  %v1335_v54 = vadd.s32 688, %v4775_v2  ;;  %v1074_v58 = vmul.f32 %v818_v41, %v818_v41 }
 0x10a   : > { %v1591_v63 = vadd.s32 %v4783_v8, %v1334_v46  ;;  %v2612_v4 = vsel %vm1844_vm2, %v1073_v50, 0.0  ;;  %vm1846_vm4 = vcmp.lt.s32.totalorder %v1590_v55, 3072  ;;  %v316_v46 = vld [vmem:[%s4761_s26 + $0x2e8] sm:$0xff]  ;;  %v573_v55 = vld [vmem:[%s4767_s7 + $0x2f0] sm:$0xff] }
 0x10b   : > { %v2858_v7 = vadd.f32 %v2857_v62, %v2603_v57  ;;  %v820_v57 = vsub.f32 %v308_v44, %v564_v45  ;;  %v1336_v62 = vadd.s32 696, %v4775_v2  ;;  %v1075_v3 = vmul.f32 %v819_v49, %v819_v49 }
 0x10c   : > { %v1592_v9 = vadd.s32 %v4783_v8, %v1335_v54  ;;  %v2613_v13 = vsel %vm1845_vm3, %v1074_v58, 0.0  ;;  %vm1847_vm5 = vcmp.lt.s32.totalorder %v1591_v63, 3072  ;;  %v317_v54 = vld [vmem:[%s4761_s26 + $0x2f0] sm:$0xff]  ;;  %v574_v63 = vld [vmem:[%s4767_s7 + $0x2f8] sm:$0xff] }
 0x10d   : > { %v2859_v16 = vadd.f32 %v2858_v7, %v2604_v1  ;;  %v821_v1 = vsub.f32 %v309_v52, %v565_v53  ;;  %v1337_v7 = vadd.s32 704, %v4775_v2  ;;  %v1076_v12 = vmul.f32 %v820_v57, %v820_v57 }
 0x10e   : > { %v1593_v17 = vadd.s32 %v4783_v8, %v1336_v62  ;;  %v2614_v21 = vsel %vm1846_vm4, %v1075_v3, 0.0  ;;  %vm1848_vm6 = vcmp.lt.s32.totalorder %v1592_v9, 3072  ;;  %v318_v62 = vld [vmem:[%s4761_s26 + $0x2f8] sm:$0xff]  ;;  %v575_v9 = vld [vmem:[%s4767_s7 + $0x300] sm:$0xff] }
 0x10f   : > { %v2860_v24 = vadd.f32 %v2859_v16, %v2605_v11  ;;  %v822_v11 = vsub.f32 %v310_v60, %v566_v61  ;;  %v1338_v16 = vadd.s32 712, %v4775_v2  ;;  %v1077_v20 = vmul.f32 %v821_v1, %v821_v1 }
 0x110   : > { %v1594_v25 = vadd.s32 %v4783_v8, %v1337_v7  ;;  %v2615_v29 = vsel %vm1847_vm5, %v1076_v12, 0.0  ;;  %vm1849_vm7 = vcmp.lt.s32.totalorder %v1593_v17, 3072  ;;  %v319_v7 = vld [vmem:[%s4761_s26 + $0x300] sm:$0xff]  ;;  %v576_v17 = vld [vmem:[%s4767_s7 + $0x308] sm:$0xff] }
 0x111   : > { %v2861_v32 = vadd.f32 %v2860_v24, %v2606_v19  ;;  %v823_v19 = vsub.f32 %v311_v5, %v567_v6  ;;  %v1339_v24 = vadd.s32 720, %v4775_v2  ;;  %v1078_v28 = vmul.f32 %v822_v11, %v822_v11 }
 0x112   : > { %v1595_v33 = vadd.s32 %v4783_v8, %v1338_v16  ;;  %v2616_v37 = vsel %vm1848_vm6, %v1077_v20, 0.0  ;;  %vm1850_vm8 = vcmp.lt.s32.totalorder %v1594_v25, 3072  ;;  %v320_v16 = vld [vmem:[%s4761_s26 + $0x308] sm:$0xff]  ;;  %v577_v25 = vld [vmem:[%s4767_s7 + $0x310] sm:$0xff] }
 0x113   : > { %v2862_v40 = vadd.f32 %v2861_v32, %v2607_v27  ;;  %v824_v27 = vsub.f32 %v312_v14, %v568_v15  ;;  %v1340_v32 = vadd.s32 728, %v4775_v2  ;;  %v1079_v36 = vmul.f32 %v823_v19, %v823_v19 }
 0x114   : > { %v1596_v41 = vadd.s32 %v4783_v8, %v1339_v24  ;;  %v2617_v45 = vsel %vm1849_vm7, %v1078_v28, 0.0  ;;  %vm1851_vm9 = vcmp.lt.s32.totalorder %v1595_v33, 3072  ;;  %v321_v24 = vld [vmem:[%s4761_s26 + $0x310] sm:$0xff]  ;;  %v578_v33 = vld [vmem:[%s4767_s7 + $0x318] sm:$0xff] }
 0x115   : > { %v2863_v48 = vadd.f32 %v2862_v40, %v2608_v35  ;;  %v825_v35 = vsub.f32 %v313_v22, %v569_v23  ;;  %v1341_v40 = vadd.s32 736, %v4775_v2  ;;  %v1080_v44 = vmul.f32 %v824_v27, %v824_v27 }
 0x116   : > { %v1597_v49 = vadd.s32 %v4783_v8, %v1340_v32  ;;  %v2618_v53 = vsel %vm1850_vm8, %v1079_v36, 0.0  ;;  %vm1852_vm10 = vcmp.lt.s32.totalorder %v1596_v41, 3072  ;;  %v322_v32 = vld [vmem:[%s4761_s26 + $0x318] sm:$0xff]  ;;  %v579_v41 = vld [vmem:[%s4767_s7 + $0x320] sm:$0xff] }
 0x117   : > { %v2864_v56 = vadd.f32 %v2863_v48, %v2609_v43  ;;  %v826_v43 = vsub.f32 %v314_v30, %v570_v31  ;;  %v1342_v48 = vadd.s32 744, %v4775_v2  ;;  %v1081_v52 = vmul.f32 %v825_v35, %v825_v35 }
 0x118   : > { %v1598_v57 = vadd.s32 %v4783_v8, %v1341_v40  ;;  %v2619_v61 = vsel %vm1851_vm9, %v1080_v44, 0.0  ;;  %vm1853_vm11 = vcmp.lt.s32.totalorder %v1597_v49, 3072  ;;  %v323_v40 = vld [vmem:[%s4761_s26 + $0x320] sm:$0xff]  ;;  %v580_v49 = vld [vmem:[%s4767_s7 + $0x328] sm:$0xff] }
 0x119   : > { %v2865_v0 = vadd.f32 %v2864_v56, %v2610_v51  ;;  %v827_v51 = vsub.f32 %v315_v38, %v571_v39  ;;  %v1343_v56 = vadd.s32 752, %v4775_v2  ;;  %v1082_v60 = vmul.f32 %v826_v43, %v826_v43 }
 0x11a   : > { %v1599_v1 = vadd.s32 %v4783_v8, %v1342_v48  ;;  %v2620_v6 = vsel %vm1852_vm10, %v1081_v52, 0.0  ;;  %vm1854_vm12 = vcmp.lt.s32.totalorder %v1598_v57, 3072  ;;  %v324_v48 = vld [vmem:[%s4761_s26 + $0x328] sm:$0xff]  ;;  %v581_v57 = vld [vmem:[%s4767_s7 + $0x330] sm:$0xff] }
 0x11b   : > { %v2866_v10 = vadd.f32 %v2865_v0, %v2611_v59  ;;  %v828_v59 = vsub.f32 %v316_v46, %v572_v47  ;;  %v1344_v0 = vadd.s32 760, %v4775_v2  ;;  %v1083_v5 = vmul.f32 %v827_v51, %v827_v51 }
 0x11c   : > { %v1600_v11 = vadd.s32 %v4783_v8, %v1343_v56  ;;  %v2621_v15 = vsel %vm1853_vm11, %v1082_v60, 0.0  ;;  %vm1855_vm13 = vcmp.lt.s32.totalorder %v1599_v1, 3072  ;;  %v325_v56 = vld [vmem:[%s4761_s26 + $0x330] sm:$0xff]  ;;  %v582_v1 = vld [vmem:[%s4767_s7 + $0x338] sm:$0xff] }
 0x11d   : > { %v2867_v18 = vadd.f32 %v2866_v10, %v2612_v4  ;;  %v829_v4 = vsub.f32 %v317_v54, %v573_v55  ;;  %v1345_v10 = vadd.s32 768, %v4775_v2  ;;  %v1084_v14 = vmul.f32 %v828_v59, %v828_v59 }
 0x11e   : > { %v1601_v19 = vadd.s32 %v4783_v8, %v1344_v0  ;;  %v2622_v23 = vsel %vm1854_vm12, %v1083_v5, 0.0  ;;  %vm1856_vm14 = vcmp.lt.s32.totalorder %v1600_v11, 3072  ;;  %v326_v0 = vld [vmem:[%s4761_s26 + $0x338] sm:$0xff]  ;;  %v583_v11 = vld [vmem:[%s4767_s7 + $0x340] sm:$0xff] }
 0x11f   : > { %v2868_v26 = vadd.f32 %v2867_v18, %v2613_v13  ;;  %v830_v13 = vsub.f32 %v318_v62, %v574_v63  ;;  %v1346_v18 = vadd.s32 776, %v4775_v2  ;;  %v1085_v22 = vmul.f32 %v829_v4, %v829_v4 }
 0x120   : > { %v1602_v27 = vadd.s32 %v4783_v8, %v1345_v10  ;;  %v2623_v31 = vsel %vm1855_vm13, %v1084_v14, 0.0  ;;  %vm1857_vm15 = vcmp.lt.s32.totalorder %v1601_v19, 3072  ;;  %v327_v10 = vld [vmem:[%s4761_s26 + $0x340] sm:$0xff]  ;;  %v584_v19 = vld [vmem:[%s4767_s7 + $0x348] sm:$0xff] }
 0x121   : > { %v2869_v34 = vadd.f32 %v2868_v26, %v2614_v21  ;;  %v831_v21 = vsub.f32 %v319_v7, %v575_v9  ;;  %v1347_v26 = vadd.s32 784, %v4775_v2  ;;  %v1086_v30 = vmul.f32 %v830_v13, %v830_v13 }
 0x122   : > { %v1603_v35 = vadd.s32 %v4783_v8, %v1346_v18  ;;  %v2624_v39 = vsel %vm1856_vm14, %v1085_v22, 0.0  ;;  %vm1858_vm0 = vcmp.lt.s32.totalorder %v1602_v27, 3072  ;;  %v328_v18 = vld [vmem:[%s4761_s26 + $0x348] sm:$0xff]  ;;  %v585_v27 = vld [vmem:[%s4767_s7 + $0x350] sm:$0xff] }
 0x123   : > { %v2870_v42 = vadd.f32 %v2869_v34, %v2615_v29  ;;  %v832_v29 = vsub.f32 %v320_v16, %v576_v17  ;;  %v1348_v34 = vadd.s32 792, %v4775_v2  ;;  %v1087_v38 = vmul.f32 %v831_v21, %v831_v21 }
 0x124   : > { %v1604_v43 = vadd.s32 %v4783_v8, %v1347_v26  ;;  %v2625_v47 = vsel %vm1857_vm15, %v1086_v30, 0.0  ;;  %vm1859_vm1 = vcmp.lt.s32.totalorder %v1603_v35, 3072  ;;  %v329_v26 = vld [vmem:[%s4761_s26 + $0x350] sm:$0xff]  ;;  %v586_v35 = vld [vmem:[%s4767_s7 + $0x358] sm:$0xff] }
 0x125   : > { %v2871_v50 = vadd.f32 %v2870_v42, %v2616_v37  ;;  %v833_v37 = vsub.f32 %v321_v24, %v577_v25  ;;  %v1349_v42 = vadd.s32 800, %v4775_v2  ;;  %v1088_v46 = vmul.f32 %v832_v29, %v832_v29 }
 0x126   : > { %v1605_v51 = vadd.s32 %v4783_v8, %v1348_v34  ;;  %v2626_v55 = vsel %vm1858_vm0, %v1087_v38, 0.0  ;;  %vm1860_vm2 = vcmp.lt.s32.totalorder %v1604_v43, 3072  ;;  %v330_v34 = vld [vmem:[%s4761_s26 + $0x358] sm:$0xff]  ;;  %v587_v43 = vld [vmem:[%s4767_s7 + $0x360] sm:$0xff] }
 0x127   : > { %v2872_v58 = vadd.f32 %v2871_v50, %v2617_v45  ;;  %v834_v45 = vsub.f32 %v322_v32, %v578_v33  ;;  %v1350_v50 = vadd.s32 808, %v4775_v2  ;;  %v1089_v54 = vmul.f32 %v833_v37, %v833_v37 }
 0x128   : > { %v1606_v59 = vadd.s32 %v4783_v8, %v1349_v42  ;;  %v2627_v63 = vsel %vm1859_vm1, %v1088_v46, 0.0  ;;  %vm1861_vm3 = vcmp.lt.s32.totalorder %v1605_v51, 3072  ;;  %v331_v42 = vld [vmem:[%s4761_s26 + $0x360] sm:$0xff]  ;;  %v588_v51 = vld [vmem:[%s4767_s7 + $0x368] sm:$0xff] }
 0x129   : > { %v2873_v3 = vadd.f32 %v2872_v58, %v2618_v53  ;;  %v835_v53 = vsub.f32 %v323_v40, %v579_v41  ;;  %v1351_v58 = vadd.s32 816, %v4775_v2  ;;  %v1090_v62 = vmul.f32 %v834_v45, %v834_v45 }
 0x12a   : > { %v1607_v4 = vadd.s32 %v4783_v8, %v1350_v50  ;;  %v2628_v9 = vsel %vm1860_vm2, %v1089_v54, 0.0  ;;  %vm1862_vm4 = vcmp.lt.s32.totalorder %v1606_v59, 3072  ;;  %v332_v50 = vld [vmem:[%s4761_s26 + $0x368] sm:$0xff]  ;;  %v589_v59 = vld [vmem:[%s4767_s7 + $0x370] sm:$0xff] }
 0x12b   : > { %v2874_v12 = vadd.f32 %v2873_v3, %v2619_v61  ;;  %v836_v61 = vsub.f32 %v324_v48, %v580_v49  ;;  %v1352_v3 = vadd.s32 824, %v4775_v2  ;;  %v1091_v7 = vmul.f32 %v835_v53, %v835_v53 }
 0x12c   : > { %v1608_v13 = vadd.s32 %v4783_v8, %v1351_v58  ;;  %v2629_v17 = vsel %vm1861_vm3, %v1090_v62, 0.0  ;;  %vm1863_vm5 = vcmp.lt.s32.totalorder %v1607_v4, 3072  ;;  %v333_v58 = vld [vmem:[%s4761_s26 + $0x370] sm:$0xff]  ;;  %v590_v4 = vld [vmem:[%s4767_s7 + $0x378] sm:$0xff] }
 0x12d   : > { %v2875_v20 = vadd.f32 %v2874_v12, %v2620_v6  ;;  %v837_v6 = vsub.f32 %v325_v56, %v581_v57  ;;  %v1353_v12 = vadd.s32 832, %v4775_v2  ;;  %v1092_v16 = vmul.f32 %v836_v61, %v836_v61 }
 0x12e   : > { %v1609_v21 = vadd.s32 %v4783_v8, %v1352_v3  ;;  %v2630_v25 = vsel %vm1862_vm4, %v1091_v7, 0.0  ;;  %vm1864_vm6 = vcmp.lt.s32.totalorder %v1608_v13, 3072  ;;  %v334_v3 = vld [vmem:[%s4761_s26 + $0x378] sm:$0xff]  ;;  %v591_v13 = vld [vmem:[%s4767_s7 + $0x380] sm:$0xff] }
 0x12f   : > { %v2876_v28 = vadd.f32 %v2875_v20, %v2621_v15  ;;  %v838_v15 = vsub.f32 %v326_v0, %v582_v1  ;;  %v1354_v20 = vadd.s32 840, %v4775_v2  ;;  %v1093_v24 = vmul.f32 %v837_v6, %v837_v6 }
 0x130   : > { %v1610_v29 = vadd.s32 %v4783_v8, %v1353_v12  ;;  %v2631_v33 = vsel %vm1863_vm5, %v1092_v16, 0.0  ;;  %vm1865_vm7 = vcmp.lt.s32.totalorder %v1609_v21, 3072  ;;  %v335_v12 = vld [vmem:[%s4761_s26 + $0x380] sm:$0xff]  ;;  %v592_v21 = vld [vmem:[%s4767_s7 + $0x388] sm:$0xff] }
 0x131   : > { %v2877_v36 = vadd.f32 %v2876_v28, %v2622_v23  ;;  %v839_v23 = vsub.f32 %v327_v10, %v583_v11  ;;  %v1355_v28 = vadd.s32 848, %v4775_v2  ;;  %v1094_v32 = vmul.f32 %v838_v15, %v838_v15 }
 0x132   : > { %v1611_v37 = vadd.s32 %v4783_v8, %v1354_v20  ;;  %v2632_v41 = vsel %vm1864_vm6, %v1093_v24, 0.0  ;;  %vm1866_vm8 = vcmp.lt.s32.totalorder %v1610_v29, 3072  ;;  %v336_v20 = vld [vmem:[%s4761_s26 + $0x388] sm:$0xff]  ;;  %v593_v29 = vld [vmem:[%s4767_s7 + $0x390] sm:$0xff] }
 0x133   : > { %v2878_v44 = vadd.f32 %v2877_v36, %v2623_v31  ;;  %v840_v31 = vsub.f32 %v328_v18, %v584_v19  ;;  %v1356_v36 = vadd.s32 856, %v4775_v2  ;;  %v1095_v40 = vmul.f32 %v839_v23, %v839_v23 }
 0x134   : > { %v1612_v45 = vadd.s32 %v4783_v8, %v1355_v28  ;;  %v2633_v49 = vsel %vm1865_vm7, %v1094_v32, 0.0  ;;  %vm1867_vm9 = vcmp.lt.s32.totalorder %v1611_v37, 3072  ;;  %v337_v28 = vld [vmem:[%s4761_s26 + $0x390] sm:$0xff]  ;;  %v594_v37 = vld [vmem:[%s4767_s7 + $0x398] sm:$0xff] }
 0x135   : > { %v2879_v52 = vadd.f32 %v2878_v44, %v2624_v39  ;;  %v841_v39 = vsub.f32 %v329_v26, %v585_v27  ;;  %v1357_v44 = vadd.s32 864, %v4775_v2  ;;  %v1096_v48 = vmul.f32 %v840_v31, %v840_v31 }
 0x136   : > { %v1613_v53 = vadd.s32 %v4783_v8, %v1356_v36  ;;  %v2634_v57 = vsel %vm1866_vm8, %v1095_v40, 0.0  ;;  %vm1868_vm10 = vcmp.lt.s32.totalorder %v1612_v45, 3072  ;;  %v338_v36 = vld [vmem:[%s4761_s26 + $0x398] sm:$0xff]  ;;  %v595_v45 = vld [vmem:[%s4767_s7 + $0x3a0] sm:$0xff] }
 0x137   : > { %v2880_v60 = vadd.f32 %v2879_v52, %v2625_v47  ;;  %v842_v47 = vsub.f32 %v330_v34, %v586_v35  ;;  %v1358_v52 = vadd.s32 872, %v4775_v2  ;;  %v1097_v56 = vmul.f32 %v841_v39, %v841_v39 }
 0x138   : > { %v1614_v61 = vadd.s32 %v4783_v8, %v1357_v44  ;;  %v2635_v1 = vsel %vm1867_vm9, %v1096_v48, 0.0  ;;  %vm1869_vm11 = vcmp.lt.s32.totalorder %v1613_v53, 3072  ;;  %v339_v44 = vld [vmem:[%s4761_s26 + $0x3a0] sm:$0xff]  ;;  %v596_v53 = vld [vmem:[%s4767_s7 + $0x3a8] sm:$0xff] }
 0x139   : > { %v2881_v5 = vadd.f32 %v2880_v60, %v2626_v55  ;;  %v843_v55 = vsub.f32 %v331_v42, %v587_v43  ;;  %v1359_v60 = vadd.s32 880, %v4775_v2  ;;  %v1098_v0 = vmul.f32 %v842_v47, %v842_v47 }
 0x13a   : > { %v1615_v6 = vadd.s32 %v4783_v8, %v1358_v52  ;;  %v2636_v11 = vsel %vm1868_vm10, %v1097_v56, 0.0  ;;  %vm1870_vm12 = vcmp.lt.s32.totalorder %v1614_v61, 3072  ;;  %v340_v52 = vld [vmem:[%s4761_s26 + $0x3a8] sm:$0xff]  ;;  %v597_v61 = vld [vmem:[%s4767_s7 + $0x3b0] sm:$0xff] }
 0x13b   : > { %v2882_v14 = vadd.f32 %v2881_v5, %v2627_v63  ;;  %v844_v63 = vsub.f32 %v332_v50, %v588_v51  ;;  %v1360_v5 = vadd.s32 888, %v4775_v2  ;;  %v1099_v10 = vmul.f32 %v843_v55, %v843_v55 }
 0x13c   : > { %v1616_v15 = vadd.s32 %v4783_v8, %v1359_v60  ;;  %v2637_v19 = vsel %vm1869_vm11, %v1098_v0, 0.0  ;;  %vm1871_vm13 = vcmp.lt.s32.totalorder %v1615_v6, 3072  ;;  %v341_v60 = vld [vmem:[%s4761_s26 + $0x3b0] sm:$0xff]  ;;  %v598_v6 = vld [vmem:[%s4767_s7 + $0x3b8] sm:$0xff] }
 0x13d   : > { %v2883_v22 = vadd.f32 %v2882_v14, %v2628_v9  ;;  %v845_v9 = vsub.f32 %v333_v58, %v589_v59  ;;  %v1361_v14 = vadd.s32 896, %v4775_v2  ;;  %v1100_v18 = vmul.f32 %v844_v63, %v844_v63 }
 0x13e   : > { %v1617_v23 = vadd.s32 %v4783_v8, %v1360_v5  ;;  %v2638_v27 = vsel %vm1870_vm12, %v1099_v10, 0.0  ;;  %vm1872_vm14 = vcmp.lt.s32.totalorder %v1616_v15, 3072  ;;  %v342_v5 = vld [vmem:[%s4761_s26 + $0x3b8] sm:$0xff]  ;;  %v599_v15 = vld [vmem:[%s4767_s7 + $0x3c0] sm:$0xff] }
 0x13f   : > { %v2884_v30 = vadd.f32 %v2883_v22, %v2629_v17  ;;  %v846_v17 = vsub.f32 %v334_v3, %v590_v4  ;;  %v1362_v22 = vadd.s32 904, %v4775_v2  ;;  %v1101_v26 = vmul.f32 %v845_v9, %v845_v9 }
 0x140   : > { %v1618_v31 = vadd.s32 %v4783_v8, %v1361_v14  ;;  %v2639_v35 = vsel %vm1871_vm13, %v1100_v18, 0.0  ;;  %vm1873_vm15 = vcmp.lt.s32.totalorder %v1617_v23, 3072  ;;  %v343_v14 = vld [vmem:[%s4761_s26 + $0x3c0] sm:$0xff]  ;;  %v600_v23 = vld [vmem:[%s4767_s7 + $0x3c8] sm:$0xff] }
 0x141   : > { %v2885_v38 = vadd.f32 %v2884_v30, %v2630_v25  ;;  %v847_v25 = vsub.f32 %v335_v12, %v591_v13  ;;  %v1363_v30 = vadd.s32 912, %v4775_v2  ;;  %v1102_v34 = vmul.f32 %v846_v17, %v846_v17 }
 0x142   : > { %v1619_v39 = vadd.s32 %v4783_v8, %v1362_v22  ;;  %v2640_v43 = vsel %vm1872_vm14, %v1101_v26, 0.0  ;;  %vm1874_vm0 = vcmp.lt.s32.totalorder %v1618_v31, 3072  ;;  %v344_v22 = vld [vmem:[%s4761_s26 + $0x3c8] sm:$0xff]  ;;  %v601_v31 = vld [vmem:[%s4767_s7 + $0x3d0] sm:$0xff] }
 0x143   : > { %v2886_v46 = vadd.f32 %v2885_v38, %v2631_v33  ;;  %v848_v33 = vsub.f32 %v336_v20, %v592_v21  ;;  %v1364_v38 = vadd.s32 920, %v4775_v2  ;;  %v1103_v42 = vmul.f32 %v847_v25, %v847_v25 }
 0x144   : > { %v1620_v47 = vadd.s32 %v4783_v8, %v1363_v30  ;;  %v2641_v51 = vsel %vm1873_vm15, %v1102_v34, 0.0  ;;  %vm1875_vm1 = vcmp.lt.s32.totalorder %v1619_v39, 3072  ;;  %v345_v30 = vld [vmem:[%s4761_s26 + $0x3d0] sm:$0xff]  ;;  %v602_v39 = vld [vmem:[%s4767_s7 + $0x3d8] sm:$0xff] }
 0x145   : > { %v2887_v54 = vadd.f32 %v2886_v46, %v2632_v41  ;;  %v849_v41 = vsub.f32 %v337_v28, %v593_v29  ;;  %v1365_v46 = vadd.s32 928, %v4775_v2  ;;  %v1104_v50 = vmul.f32 %v848_v33, %v848_v33 }
 0x146   : > { %v1621_v55 = vadd.s32 %v4783_v8, %v1364_v38  ;;  %v2642_v59 = vsel %vm1874_vm0, %v1103_v42, 0.0  ;;  %vm1876_vm2 = vcmp.lt.s32.totalorder %v1620_v47, 3072  ;;  %v346_v38 = vld [vmem:[%s4761_s26 + $0x3d8] sm:$0xff]  ;;  %v603_v47 = vld [vmem:[%s4767_s7 + $0x3e0] sm:$0xff] }
 0x147   : > { %v2888_v62 = vadd.f32 %v2887_v54, %v2633_v49  ;;  %v850_v49 = vsub.f32 %v338_v36, %v594_v37  ;;  %v1366_v54 = vadd.s32 936, %v4775_v2  ;;  %v1105_v58 = vmul.f32 %v849_v41, %v849_v41 }
 0x148   : > { %v1622_v63 = vadd.s32 %v4783_v8, %v1365_v46  ;;  %v2643_v4 = vsel %vm1875_vm1, %v1104_v50, 0.0  ;;  %vm1877_vm3 = vcmp.lt.s32.totalorder %v1621_v55, 3072  ;;  %v347_v46 = vld [vmem:[%s4761_s26 + $0x3e0] sm:$0xff]  ;;  %v604_v55 = vld [vmem:[%s4767_s7 + $0x3e8] sm:$0xff] }
 0x149   : > { %v2889_v7 = vadd.f32 %v2888_v62, %v2634_v57  ;;  %v851_v57 = vsub.f32 %v339_v44, %v595_v45  ;;  %v1367_v62 = vadd.s32 944, %v4775_v2  ;;  %v1106_v3 = vmul.f32 %v850_v49, %v850_v49 }
 0x14a   : > { %v1623_v9 = vadd.s32 %v4783_v8, %v1366_v54  ;;  %v2644_v13 = vsel %vm1876_vm2, %v1105_v58, 0.0  ;;  %vm1878_vm4 = vcmp.lt.s32.totalorder %v1622_v63, 3072  ;;  %v348_v54 = vld [vmem:[%s4761_s26 + $0x3e8] sm:$0xff]  ;;  %v605_v63 = vld [vmem:[%s4767_s7 + $0x3f0] sm:$0xff] }
 0x14b   : > { %v2890_v16 = vadd.f32 %v2889_v7, %v2635_v1  ;;  %v852_v1 = vsub.f32 %v340_v52, %v596_v53  ;;  %v1368_v7 = vadd.s32 952, %v4775_v2  ;;  %v1107_v12 = vmul.f32 %v851_v57, %v851_v57 }
 0x14c   : > { %v1624_v17 = vadd.s32 %v4783_v8, %v1367_v62  ;;  %v2645_v21 = vsel %vm1877_vm3, %v1106_v3, 0.0  ;;  %vm1879_vm5 = vcmp.lt.s32.totalorder %v1623_v9, 3072  ;;  %v349_v62 = vld [vmem:[%s4761_s26 + $0x3f0] sm:$0xff]  ;;  %v606_v9 = vld [vmem:[%s4767_s7 + $0x3f8] sm:$0xff] }
 0x14d   : > { %v2891_v24 = vadd.f32 %v2890_v16, %v2636_v11  ;;  %v853_v11 = vsub.f32 %v341_v60, %v597_v61  ;;  %v1369_v16 = vadd.s32 960, %v4775_v2  ;;  %v1108_v20 = vmul.f32 %v852_v1, %v852_v1 }
 0x14e   : > { %v1625_v25 = vadd.s32 %v4783_v8, %v1368_v7  ;;  %v2646_v29 = vsel %vm1878_vm4, %v1107_v12, 0.0  ;;  %vm1880_vm6 = vcmp.lt.s32.totalorder %v1624_v17, 3072  ;;  %v350_v7 = vld [vmem:[%s4761_s26 + $0x3f8] sm:$0xff]  ;;  %v607_v17 = vld [vmem:[%s4767_s7 + $0x400] sm:$0xff] }
 0x14f   : > { %v2892_v32 = vadd.f32 %v2891_v24, %v2637_v19  ;;  %v854_v19 = vsub.f32 %v342_v5, %v598_v6  ;;  %v1370_v24 = vadd.s32 968, %v4775_v2  ;;  %v1109_v28 = vmul.f32 %v853_v11, %v853_v11 }
 0x150   : > { %v1626_v33 = vadd.s32 %v4783_v8, %v1369_v16  ;;  %v2647_v37 = vsel %vm1879_vm5, %v1108_v20, 0.0  ;;  %vm1881_vm7 = vcmp.lt.s32.totalorder %v1625_v25, 3072  ;;  %v351_v16 = vld [vmem:[%s4761_s26 + $0x400] sm:$0xff]  ;;  %v608_v25 = vld [vmem:[%s4767_s7 + $0x408] sm:$0xff] }
 0x151   : > { %v2893_v40 = vadd.f32 %v2892_v32, %v2638_v27  ;;  %v855_v27 = vsub.f32 %v343_v14, %v599_v15  ;;  %v1371_v32 = vadd.s32 976, %v4775_v2  ;;  %v1110_v36 = vmul.f32 %v854_v19, %v854_v19 }
 0x152   : > { %v1627_v41 = vadd.s32 %v4783_v8, %v1370_v24  ;;  %v2648_v45 = vsel %vm1880_vm6, %v1109_v28, 0.0  ;;  %vm1882_vm8 = vcmp.lt.s32.totalorder %v1626_v33, 3072  ;;  %v352_v24 = vld [vmem:[%s4761_s26 + $0x408] sm:$0xff]  ;;  %v609_v33 = vld [vmem:[%s4767_s7 + $0x410] sm:$0xff] }
 0x153   : > { %v2894_v48 = vadd.f32 %v2893_v40, %v2639_v35  ;;  %v856_v35 = vsub.f32 %v344_v22, %v600_v23  ;;  %v1372_v40 = vadd.s32 984, %v4775_v2  ;;  %v1111_v44 = vmul.f32 %v855_v27, %v855_v27 }
 0x154   : > { %v1628_v49 = vadd.s32 %v4783_v8, %v1371_v32  ;;  %v2649_v53 = vsel %vm1881_vm7, %v1110_v36, 0.0  ;;  %vm1883_vm9 = vcmp.lt.s32.totalorder %v1627_v41, 3072  ;;  %v353_v32 = vld [vmem:[%s4761_s26 + $0x410] sm:$0xff]  ;;  %v610_v41 = vld [vmem:[%s4767_s7 + $0x418] sm:$0xff] }
 0x155   : > { %v2895_v56 = vadd.f32 %v2894_v48, %v2640_v43  ;;  %v857_v43 = vsub.f32 %v345_v30, %v601_v31  ;;  %v1373_v48 = vadd.s32 992, %v4775_v2  ;;  %v1112_v52 = vmul.f32 %v856_v35, %v856_v35 }
 0x156   : > { %v1629_v57 = vadd.s32 %v4783_v8, %v1372_v40  ;;  %v2650_v61 = vsel %vm1882_vm8, %v1111_v44, 0.0  ;;  %vm1884_vm10 = vcmp.lt.s32.totalorder %v1628_v49, 3072  ;;  %v354_v40 = vld [vmem:[%s4761_s26 + $0x418] sm:$0xff]  ;;  %v611_v49 = vld [vmem:[%s4767_s7 + $0x420] sm:$0xff] }
 0x157   : > { %v2896_v0 = vadd.f32 %v2895_v56, %v2641_v51  ;;  %v858_v51 = vsub.f32 %v346_v38, %v602_v39  ;;  %v1374_v56 = vadd.s32 1000, %v4775_v2  ;;  %v1113_v60 = vmul.f32 %v857_v43, %v857_v43 }
 0x158   : > { %v1630_v1 = vadd.s32 %v4783_v8, %v1373_v48  ;;  %v2651_v6 = vsel %vm1883_vm9, %v1112_v52, 0.0  ;;  %vm1885_vm11 = vcmp.lt.s32.totalorder %v1629_v57, 3072  ;;  %v355_v48 = vld [vmem:[%s4761_s26 + $0x420] sm:$0xff]  ;;  %v612_v57 = vld [vmem:[%s4767_s7 + $0x428] sm:$0xff] }
 0x159   : > { %v2897_v10 = vadd.f32 %v2896_v0, %v2642_v59  ;;  %v859_v59 = vsub.f32 %v347_v46, %v603_v47  ;;  %v1375_v0 = vadd.s32 1008, %v4775_v2  ;;  %v1114_v5 = vmul.f32 %v858_v51, %v858_v51 }
 0x15a   : > { %v1631_v11 = vadd.s32 %v4783_v8, %v1374_v56  ;;  %v2652_v15 = vsel %vm1884_vm10, %v1113_v60, 0.0  ;;  %vm1886_vm12 = vcmp.lt.s32.totalorder %v1630_v1, 3072  ;;  %v356_v56 = vld [vmem:[%s4761_s26 + $0x428] sm:$0xff]  ;;  %v613_v1 = vld [vmem:[%s4767_s7 + $0x430] sm:$0xff] }
 0x15b   : > { %v2898_v18 = vadd.f32 %v2897_v10, %v2643_v4  ;;  %v860_v4 = vsub.f32 %v348_v54, %v604_v55  ;;  %v1376_v10 = vadd.s32 1016, %v4775_v2  ;;  %v1115_v14 = vmul.f32 %v859_v59, %v859_v59 }
 0x15c   : > { %v1632_v19 = vadd.s32 %v4783_v8, %v1375_v0  ;;  %v2653_v23 = vsel %vm1885_vm11, %v1114_v5, 0.0  ;;  %vm1887_vm13 = vcmp.lt.s32.totalorder %v1631_v11, 3072  ;;  %v357_v0 = vld [vmem:[%s4761_s26 + $0x430] sm:$0xff]  ;;  %v614_v11 = vld [vmem:[%s4767_s7 + $0x438] sm:$0xff] }
 0x15d   : > { %v2899_v26 = vadd.f32 %v2898_v18, %v2644_v13  ;;  %v861_v13 = vsub.f32 %v349_v62, %v605_v63  ;;  %v1377_v18 = vadd.s32 1024, %v4775_v2  ;;  %v1116_v22 = vmul.f32 %v860_v4, %v860_v4 }
 0x15e   : > { %v1633_v27 = vadd.s32 %v4783_v8, %v1376_v10  ;;  %v2654_v31 = vsel %vm1886_vm12, %v1115_v14, 0.0  ;;  %vm1888_vm14 = vcmp.lt.s32.totalorder %v1632_v19, 3072  ;;  %v358_v10 = vld [vmem:[%s4761_s26 + $0x438] sm:$0xff]  ;;  %v615_v19 = vld [vmem:[%s4767_s7 + $0x440] sm:$0xff] }
 0x15f   : > { %v2900_v34 = vadd.f32 %v2899_v26, %v2645_v21  ;;  %v862_v21 = vsub.f32 %v350_v7, %v606_v9  ;;  %v1378_v26 = vadd.s32 1032, %v4775_v2  ;;  %v1117_v30 = vmul.f32 %v861_v13, %v861_v13 }
 0x160   : > { %v1634_v35 = vadd.s32 %v4783_v8, %v1377_v18  ;;  %v2655_v39 = vsel %vm1887_vm13, %v1116_v22, 0.0  ;;  %vm1889_vm15 = vcmp.lt.s32.totalorder %v1633_v27, 3072  ;;  %v359_v18 = vld [vmem:[%s4761_s26 + $0x440] sm:$0xff]  ;;  %v616_v27 = vld [vmem:[%s4767_s7 + $0x448] sm:$0xff] }
 0x161   : > { %v2901_v42 = vadd.f32 %v2900_v34, %v2646_v29  ;;  %v863_v29 = vsub.f32 %v351_v16, %v607_v17  ;;  %v1379_v34 = vadd.s32 1040, %v4775_v2  ;;  %v1118_v38 = vmul.f32 %v862_v21, %v862_v21 }
 0x162   : > { %v1635_v43 = vadd.s32 %v4783_v8, %v1378_v26  ;;  %v2656_v47 = vsel %vm1888_vm14, %v1117_v30, 0.0  ;;  %vm1890_vm0 = vcmp.lt.s32.totalorder %v1634_v35, 3072  ;;  %v360_v26 = vld [vmem:[%s4761_s26 + $0x448] sm:$0xff]  ;;  %v617_v35 = vld [vmem:[%s4767_s7 + $0x450] sm:$0xff] }
 0x163   : > { %v2902_v50 = vadd.f32 %v2901_v42, %v2647_v37  ;;  %v864_v37 = vsub.f32 %v352_v24, %v608_v25  ;;  %v1380_v42 = vadd.s32 1048, %v4775_v2  ;;  %v1119_v46 = vmul.f32 %v863_v29, %v863_v29 }
 0x164   : > { %v1636_v51 = vadd.s32 %v4783_v8, %v1379_v34  ;;  %v2657_v55 = vsel %vm1889_vm15, %v1118_v38, 0.0  ;;  %vm1891_vm1 = vcmp.lt.s32.totalorder %v1635_v43, 3072  ;;  %v361_v34 = vld [vmem:[%s4761_s26 + $0x450] sm:$0xff]  ;;  %v618_v43 = vld [vmem:[%s4767_s7 + $0x458] sm:$0xff] }
 0x165   : > { %v2903_v58 = vadd.f32 %v2902_v50, %v2648_v45  ;;  %v865_v45 = vsub.f32 %v353_v32, %v609_v33  ;;  %v1381_v50 = vadd.s32 1056, %v4775_v2  ;;  %v1120_v54 = vmul.f32 %v864_v37, %v864_v37 }
 0x166   : > { %v1637_v59 = vadd.s32 %v4783_v8, %v1380_v42  ;;  %v2658_v63 = vsel %vm1890_vm0, %v1119_v46, 0.0  ;;  %vm1892_vm2 = vcmp.lt.s32.totalorder %v1636_v51, 3072  ;;  %v362_v42 = vld [vmem:[%s4761_s26 + $0x458] sm:$0xff]  ;;  %v619_v51 = vld [vmem:[%s4767_s7 + $0x460] sm:$0xff] }
 0x167   : > { %v2904_v3 = vadd.f32 %v2903_v58, %v2649_v53  ;;  %v866_v53 = vsub.f32 %v354_v40, %v610_v41  ;;  %v1382_v58 = vadd.s32 1064, %v4775_v2  ;;  %v1121_v62 = vmul.f32 %v865_v45, %v865_v45 }
 0x168   : > { %v1638_v4 = vadd.s32 %v4783_v8, %v1381_v50  ;;  %v2659_v9 = vsel %vm1891_vm1, %v1120_v54, 0.0  ;;  %vm1893_vm3 = vcmp.lt.s32.totalorder %v1637_v59, 3072  ;;  %v363_v50 = vld [vmem:[%s4761_s26 + $0x460] sm:$0xff]  ;;  %v620_v59 = vld [vmem:[%s4767_s7 + $0x468] sm:$0xff] }
 0x169   : > { %v2905_v12 = vadd.f32 %v2904_v3, %v2650_v61  ;;  %v867_v61 = vsub.f32 %v355_v48, %v611_v49  ;;  %v1383_v3 = vadd.s32 1072, %v4775_v2  ;;  %v1122_v7 = vmul.f32 %v866_v53, %v866_v53 }
 0x16a   : > { %v1639_v13 = vadd.s32 %v4783_v8, %v1382_v58  ;;  %v2660_v17 = vsel %vm1892_vm2, %v1121_v62, 0.0  ;;  %vm1894_vm4 = vcmp.lt.s32.totalorder %v1638_v4, 3072  ;;  %v364_v58 = vld [vmem:[%s4761_s26 + $0x468] sm:$0xff]  ;;  %v621_v4 = vld [vmem:[%s4767_s7 + $0x470] sm:$0xff] }
 0x16b   : > { %v2906_v20 = vadd.f32 %v2905_v12, %v2651_v6  ;;  %v868_v6 = vsub.f32 %v356_v56, %v612_v57  ;;  %v1384_v12 = vadd.s32 1080, %v4775_v2  ;;  %v1123_v16 = vmul.f32 %v867_v61, %v867_v61 }
 0x16c   : > { %v1640_v21 = vadd.s32 %v4783_v8, %v1383_v3  ;;  %v2661_v25 = vsel %vm1893_vm3, %v1122_v7, 0.0  ;;  %vm1895_vm5 = vcmp.lt.s32.totalorder %v1639_v13, 3072  ;;  %v365_v3 = vld [vmem:[%s4761_s26 + $0x470] sm:$0xff]  ;;  %v622_v13 = vld [vmem:[%s4767_s7 + $0x478] sm:$0xff] }
 0x16d   : > { %v2907_v28 = vadd.f32 %v2906_v20, %v2652_v15  ;;  %v869_v15 = vsub.f32 %v357_v0, %v613_v1  ;;  %v1385_v20 = vadd.s32 1088, %v4775_v2  ;;  %v1124_v24 = vmul.f32 %v868_v6, %v868_v6 }
 0x16e   : > { %v1641_v29 = vadd.s32 %v4783_v8, %v1384_v12  ;;  %v2662_v33 = vsel %vm1894_vm4, %v1123_v16, 0.0  ;;  %vm1896_vm6 = vcmp.lt.s32.totalorder %v1640_v21, 3072  ;;  %v366_v12 = vld [vmem:[%s4761_s26 + $0x478] sm:$0xff]  ;;  %v623_v21 = vld [vmem:[%s4767_s7 + $0x480] sm:$0xff] }
 0x16f   : > { %v2908_v36 = vadd.f32 %v2907_v28, %v2653_v23  ;;  %v870_v23 = vsub.f32 %v358_v10, %v614_v11  ;;  %v1386_v28 = vadd.s32 1096, %v4775_v2  ;;  %v1125_v32 = vmul.f32 %v869_v15, %v869_v15 }
 0x170   : > { %v1642_v37 = vadd.s32 %v4783_v8, %v1385_v20  ;;  %v2663_v41 = vsel %vm1895_vm5, %v1124_v24, 0.0  ;;  %vm1897_vm7 = vcmp.lt.s32.totalorder %v1641_v29, 3072  ;;  %v367_v20 = vld [vmem:[%s4761_s26 + $0x480] sm:$0xff]  ;;  %v624_v29 = vld [vmem:[%s4767_s7 + $0x488] sm:$0xff] }
 0x171   : > { %v2909_v44 = vadd.f32 %v2908_v36, %v2654_v31  ;;  %v871_v31 = vsub.f32 %v359_v18, %v615_v19  ;;  %v1387_v36 = vadd.s32 1104, %v4775_v2  ;;  %v1126_v40 = vmul.f32 %v870_v23, %v870_v23 }
 0x172   : > { %v1643_v45 = vadd.s32 %v4783_v8, %v1386_v28  ;;  %v2664_v49 = vsel %vm1896_vm6, %v1125_v32, 0.0  ;;  %vm1898_vm8 = vcmp.lt.s32.totalorder %v1642_v37, 3072  ;;  %v368_v28 = vld [vmem:[%s4761_s26 + $0x488] sm:$0xff]  ;;  %v625_v37 = vld [vmem:[%s4767_s7 + $0x490] sm:$0xff] }
 0x173   : > { %v2910_v52 = vadd.f32 %v2909_v44, %v2655_v39  ;;  %v872_v39 = vsub.f32 %v360_v26, %v616_v27  ;;  %v1388_v44 = vadd.s32 1112, %v4775_v2  ;;  %v1127_v48 = vmul.f32 %v871_v31, %v871_v31 }
 0x174   : > { %v1644_v53 = vadd.s32 %v4783_v8, %v1387_v36  ;;  %v2665_v57 = vsel %vm1897_vm7, %v1126_v40, 0.0  ;;  %vm1899_vm9 = vcmp.lt.s32.totalorder %v1643_v45, 3072  ;;  %v369_v36 = vld [vmem:[%s4761_s26 + $0x490] sm:$0xff]  ;;  %v626_v45 = vld [vmem:[%s4767_s7 + $0x498] sm:$0xff] }
 0x175   : > { %v2911_v60 = vadd.f32 %v2910_v52, %v2656_v47  ;;  %v873_v47 = vsub.f32 %v361_v34, %v617_v35  ;;  %v1389_v52 = vadd.s32 1120, %v4775_v2  ;;  %v1128_v56 = vmul.f32 %v872_v39, %v872_v39 }
 0x176   : > { %v1645_v61 = vadd.s32 %v4783_v8, %v1388_v44  ;;  %v2666_v1 = vsel %vm1898_vm8, %v1127_v48, 0.0  ;;  %vm1900_vm10 = vcmp.lt.s32.totalorder %v1644_v53, 3072  ;;  %v370_v44 = vld [vmem:[%s4761_s26 + $0x498] sm:$0xff]  ;;  %v627_v53 = vld [vmem:[%s4767_s7 + $0x4a0] sm:$0xff] }
 0x177   : > { %v2912_v5 = vadd.f32 %v2911_v60, %v2657_v55  ;;  %v874_v55 = vsub.f32 %v362_v42, %v618_v43  ;;  %v1390_v60 = vadd.s32 1128, %v4775_v2  ;;  %v1129_v0 = vmul.f32 %v873_v47, %v873_v47 }
 0x178   : > { %v1646_v6 = vadd.s32 %v4783_v8, %v1389_v52  ;;  %v2667_v11 = vsel %vm1899_vm9, %v1128_v56, 0.0  ;;  %vm1901_vm11 = vcmp.lt.s32.totalorder %v1645_v61, 3072  ;;  %v371_v52 = vld [vmem:[%s4761_s26 + $0x4a0] sm:$0xff]  ;;  %v628_v61 = vld [vmem:[%s4767_s7 + $0x4a8] sm:$0xff] }
 0x179   : > { %v2913_v14 = vadd.f32 %v2912_v5, %v2658_v63  ;;  %v875_v63 = vsub.f32 %v363_v50, %v619_v51  ;;  %v1391_v5 = vadd.s32 1136, %v4775_v2  ;;  %v1130_v10 = vmul.f32 %v874_v55, %v874_v55 }
 0x17a   : > { %v1647_v15 = vadd.s32 %v4783_v8, %v1390_v60  ;;  %v2668_v19 = vsel %vm1900_vm10, %v1129_v0, 0.0  ;;  %vm1902_vm12 = vcmp.lt.s32.totalorder %v1646_v6, 3072  ;;  %v372_v60 = vld [vmem:[%s4761_s26 + $0x4a8] sm:$0xff]  ;;  %v629_v6 = vld [vmem:[%s4767_s7 + $0x4b0] sm:$0xff] }
 0x17b   : > { %v2914_v22 = vadd.f32 %v2913_v14, %v2659_v9  ;;  %v876_v9 = vsub.f32 %v364_v58, %v620_v59  ;;  %v1392_v14 = vadd.s32 1144, %v4775_v2  ;;  %v1131_v18 = vmul.f32 %v875_v63, %v875_v63 }
 0x17c   : > { %v1648_v23 = vadd.s32 %v4783_v8, %v1391_v5  ;;  %v2669_v27 = vsel %vm1901_vm11, %v1130_v10, 0.0  ;;  %vm1903_vm13 = vcmp.lt.s32.totalorder %v1647_v15, 3072  ;;  %v373_v5 = vld [vmem:[%s4761_s26 + $0x4b0] sm:$0xff]  ;;  %v630_v15 = vld [vmem:[%s4767_s7 + $0x4b8] sm:$0xff] }
 0x17d   : > { %v2915_v30 = vadd.f32 %v2914_v22, %v2660_v17  ;;  %v877_v17 = vsub.f32 %v365_v3, %v621_v4  ;;  %v1393_v22 = vadd.s32 1152, %v4775_v2  ;;  %v1132_v26 = vmul.f32 %v876_v9, %v876_v9 }
 0x17e   : > { %v1649_v31 = vadd.s32 %v4783_v8, %v1392_v14  ;;  %v2670_v35 = vsel %vm1902_vm12, %v1131_v18, 0.0  ;;  %vm1904_vm14 = vcmp.lt.s32.totalorder %v1648_v23, 3072  ;;  %v374_v14 = vld [vmem:[%s4761_s26 + $0x4b8] sm:$0xff]  ;;  %v631_v23 = vld [vmem:[%s4767_s7 + $0x4c0] sm:$0xff] }
 0x17f   : > { %v2916_v38 = vadd.f32 %v2915_v30, %v2661_v25  ;;  %v878_v25 = vsub.f32 %v366_v12, %v622_v13  ;;  %v1394_v30 = vadd.s32 1160, %v4775_v2  ;;  %v1133_v34 = vmul.f32 %v877_v17, %v877_v17 }
 0x180   : > { %v1650_v39 = vadd.s32 %v4783_v8, %v1393_v22  ;;  %v2671_v43 = vsel %vm1903_vm13, %v1132_v26, 0.0  ;;  %vm1905_vm15 = vcmp.lt.s32.totalorder %v1649_v31, 3072  ;;  %v375_v22 = vld [vmem:[%s4761_s26 + $0x4c0] sm:$0xff]  ;;  %v632_v31 = vld [vmem:[%s4767_s7 + $0x4c8] sm:$0xff] }
 0x181   : > { %v2917_v46 = vadd.f32 %v2916_v38, %v2662_v33  ;;  %v879_v33 = vsub.f32 %v367_v20, %v623_v21  ;;  %v1395_v38 = vadd.s32 1168, %v4775_v2  ;;  %v1134_v42 = vmul.f32 %v878_v25, %v878_v25 }
 0x182   : > { %v1651_v47 = vadd.s32 %v4783_v8, %v1394_v30  ;;  %v2672_v51 = vsel %vm1904_vm14, %v1133_v34, 0.0  ;;  %vm1906_vm0 = vcmp.lt.s32.totalorder %v1650_v39, 3072  ;;  %v376_v30 = vld [vmem:[%s4761_s26 + $0x4c8] sm:$0xff]  ;;  %v633_v39 = vld [vmem:[%s4767_s7 + $0x4d0] sm:$0xff] }
 0x183   : > { %v2918_v54 = vadd.f32 %v2917_v46, %v2663_v41  ;;  %v880_v41 = vsub.f32 %v368_v28, %v624_v29  ;;  %v1396_v46 = vadd.s32 1176, %v4775_v2  ;;  %v1135_v50 = vmul.f32 %v879_v33, %v879_v33 }
 0x184   : > { %v1652_v55 = vadd.s32 %v4783_v8, %v1395_v38  ;;  %v2673_v59 = vsel %vm1905_vm15, %v1134_v42, 0.0  ;;  %vm1907_vm1 = vcmp.lt.s32.totalorder %v1651_v47, 3072  ;;  %v377_v38 = vld [vmem:[%s4761_s26 + $0x4d0] sm:$0xff]  ;;  %v634_v47 = vld [vmem:[%s4767_s7 + $0x4d8] sm:$0xff] }
 0x185   : > { %v2919_v62 = vadd.f32 %v2918_v54, %v2664_v49  ;;  %v881_v49 = vsub.f32 %v369_v36, %v625_v37  ;;  %v1397_v54 = vadd.s32 1184, %v4775_v2  ;;  %v1136_v58 = vmul.f32 %v880_v41, %v880_v41 }
 0x186   : > { %v1653_v63 = vadd.s32 %v4783_v8, %v1396_v46  ;;  %v2674_v4 = vsel %vm1906_vm0, %v1135_v50, 0.0  ;;  %vm1908_vm2 = vcmp.lt.s32.totalorder %v1652_v55, 3072  ;;  %v378_v46 = vld [vmem:[%s4761_s26 + $0x4d8] sm:$0xff]  ;;  %v635_v55 = vld [vmem:[%s4767_s7 + $0x4e0] sm:$0xff] }
 0x187   : > { %v2920_v7 = vadd.f32 %v2919_v62, %v2665_v57  ;;  %v882_v57 = vsub.f32 %v370_v44, %v626_v45  ;;  %v1398_v62 = vadd.s32 1192, %v4775_v2  ;;  %v1137_v3 = vmul.f32 %v881_v49, %v881_v49 }
 0x188   : > { %v1654_v9 = vadd.s32 %v4783_v8, %v1397_v54  ;;  %v2675_v13 = vsel %vm1907_vm1, %v1136_v58, 0.0  ;;  %vm1909_vm3 = vcmp.lt.s32.totalorder %v1653_v63, 3072  ;;  %v379_v54 = vld [vmem:[%s4761_s26 + $0x4e0] sm:$0xff]  ;;  %v636_v63 = vld [vmem:[%s4767_s7 + $0x4e8] sm:$0xff] }
 0x189   : > { %v2921_v16 = vadd.f32 %v2920_v7, %v2666_v1  ;;  %v883_v1 = vsub.f32 %v371_v52, %v627_v53  ;;  %v1399_v7 = vadd.s32 1200, %v4775_v2  ;;  %v1138_v12 = vmul.f32 %v882_v57, %v882_v57 }
 0x18a   : > { %v1655_v17 = vadd.s32 %v4783_v8, %v1398_v62  ;;  %v2676_v21 = vsel %vm1908_vm2, %v1137_v3, 0.0  ;;  %vm1910_vm4 = vcmp.lt.s32.totalorder %v1654_v9, 3072  ;;  %v380_v62 = vld [vmem:[%s4761_s26 + $0x4e8] sm:$0xff]  ;;  %v637_v9 = vld [vmem:[%s4767_s7 + $0x4f0] sm:$0xff] }
 0x18b   : > { %v2922_v24 = vadd.f32 %v2921_v16, %v2667_v11  ;;  %v884_v11 = vsub.f32 %v372_v60, %v628_v61  ;;  %v1400_v16 = vadd.s32 1208, %v4775_v2  ;;  %v1139_v20 = vmul.f32 %v883_v1, %v883_v1 }
 0x18c   : > { %v1656_v25 = vadd.s32 %v4783_v8, %v1399_v7  ;;  %v2677_v29 = vsel %vm1909_vm3, %v1138_v12, 0.0  ;;  %vm1911_vm5 = vcmp.lt.s32.totalorder %v1655_v17, 3072  ;;  %v381_v7 = vld [vmem:[%s4761_s26 + $0x4f0] sm:$0xff]  ;;  %v638_v17 = vld [vmem:[%s4767_s7 + $0x4f8] sm:$0xff] }
 0x18d   : > { %v2923_v32 = vadd.f32 %v2922_v24, %v2668_v19  ;;  %v885_v19 = vsub.f32 %v373_v5, %v629_v6  ;;  %v1401_v24 = vadd.s32 1216, %v4775_v2  ;;  %v1140_v28 = vmul.f32 %v884_v11, %v884_v11 }
 0x18e   : > { %v1657_v33 = vadd.s32 %v4783_v8, %v1400_v16  ;;  %v2678_v37 = vsel %vm1910_vm4, %v1139_v20, 0.0  ;;  %vm1912_vm6 = vcmp.lt.s32.totalorder %v1656_v25, 3072  ;;  %v382_v16 = vld [vmem:[%s4761_s26 + $0x4f8] sm:$0xff]  ;;  %v639_v25 = vld [vmem:[%s4767_s7 + $0x500] sm:$0xff] }
 0x18f   : > { %v2924_v40 = vadd.f32 %v2923_v32, %v2669_v27  ;;  %v886_v27 = vsub.f32 %v374_v14, %v630_v15  ;;  %v1402_v32 = vadd.s32 1224, %v4775_v2  ;;  %v1141_v36 = vmul.f32 %v885_v19, %v885_v19 }
 0x190   : > { %v1658_v41 = vadd.s32 %v4783_v8, %v1401_v24  ;;  %v2679_v45 = vsel %vm1911_vm5, %v1140_v28, 0.0  ;;  %vm1913_vm7 = vcmp.lt.s32.totalorder %v1657_v33, 3072  ;;  %v383_v24 = vld [vmem:[%s4761_s26 + $0x500] sm:$0xff]  ;;  %v640_v33 = vld [vmem:[%s4767_s7 + $0x508] sm:$0xff] }
 0x191   : > { %v2925_v48 = vadd.f32 %v2924_v40, %v2670_v35  ;;  %v887_v35 = vsub.f32 %v375_v22, %v631_v23  ;;  %v1403_v40 = vadd.s32 1232, %v4775_v2  ;;  %v1142_v44 = vmul.f32 %v886_v27, %v886_v27 }
 0x192   : > { %v1659_v49 = vadd.s32 %v4783_v8, %v1402_v32  ;;  %v2680_v53 = vsel %vm1912_vm6, %v1141_v36, 0.0  ;;  %vm1914_vm8 = vcmp.lt.s32.totalorder %v1658_v41, 3072  ;;  %v384_v32 = vld [vmem:[%s4761_s26 + $0x508] sm:$0xff]  ;;  %v641_v41 = vld [vmem:[%s4767_s7 + $0x510] sm:$0xff] }
 0x193   : > { %v2926_v56 = vadd.f32 %v2925_v48, %v2671_v43  ;;  %v888_v43 = vsub.f32 %v376_v30, %v632_v31  ;;  %v1404_v48 = vadd.s32 1240, %v4775_v2  ;;  %v1143_v52 = vmul.f32 %v887_v35, %v887_v35 }
 0x194   : > { %v1660_v57 = vadd.s32 %v4783_v8, %v1403_v40  ;;  %v2681_v61 = vsel %vm1913_vm7, %v1142_v44, 0.0  ;;  %vm1915_vm9 = vcmp.lt.s32.totalorder %v1659_v49, 3072  ;;  %v385_v40 = vld [vmem:[%s4761_s26 + $0x510] sm:$0xff]  ;;  %v642_v49 = vld [vmem:[%s4767_s7 + $0x518] sm:$0xff] }
 0x195   : > { %v2927_v0 = vadd.f32 %v2926_v56, %v2672_v51  ;;  %v889_v51 = vsub.f32 %v377_v38, %v633_v39  ;;  %v1405_v56 = vadd.s32 1248, %v4775_v2  ;;  %v1144_v60 = vmul.f32 %v888_v43, %v888_v43 }
 0x196   : > { %v1661_v1 = vadd.s32 %v4783_v8, %v1404_v48  ;;  %v2682_v6 = vsel %vm1914_vm8, %v1143_v52, 0.0  ;;  %vm1916_vm10 = vcmp.lt.s32.totalorder %v1660_v57, 3072  ;;  %v386_v48 = vld [vmem:[%s4761_s26 + $0x518] sm:$0xff]  ;;  %v643_v57 = vld [vmem:[%s4767_s7 + $0x520] sm:$0xff] }
 0x197   : > { %v2928_v10 = vadd.f32 %v2927_v0, %v2673_v59  ;;  %v890_v59 = vsub.f32 %v378_v46, %v634_v47  ;;  %v1406_v0 = vadd.s32 1256, %v4775_v2  ;;  %v1145_v5 = vmul.f32 %v889_v51, %v889_v51 }
 0x198   : > { %v1662_v11 = vadd.s32 %v4783_v8, %v1405_v56  ;;  %v2683_v15 = vsel %vm1915_vm9, %v1144_v60, 0.0  ;;  %vm1917_vm11 = vcmp.lt.s32.totalorder %v1661_v1, 3072  ;;  %v387_v56 = vld [vmem:[%s4761_s26 + $0x520] sm:$0xff]  ;;  %v644_v1 = vld [vmem:[%s4767_s7 + $0x528] sm:$0xff] }
 0x199   : > { %v2929_v18 = vadd.f32 %v2928_v10, %v2674_v4  ;;  %v891_v4 = vsub.f32 %v379_v54, %v635_v55  ;;  %v1407_v10 = vadd.s32 1264, %v4775_v2  ;;  %v1146_v14 = vmul.f32 %v890_v59, %v890_v59 }
 0x19a   : > { %v1663_v19 = vadd.s32 %v4783_v8, %v1406_v0  ;;  %v2684_v23 = vsel %vm1916_vm10, %v1145_v5, 0.0  ;;  %vm1918_vm12 = vcmp.lt.s32.totalorder %v1662_v11, 3072  ;;  %v388_v0 = vld [vmem:[%s4761_s26 + $0x528] sm:$0xff]  ;;  %v645_v11 = vld [vmem:[%s4767_s7 + $0x530] sm:$0xff] }
 0x19b   : > { %v2930_v26 = vadd.f32 %v2929_v18, %v2675_v13  ;;  %v892_v13 = vsub.f32 %v380_v62, %v636_v63  ;;  %v1408_v18 = vadd.s32 1272, %v4775_v2  ;;  %v1147_v22 = vmul.f32 %v891_v4, %v891_v4 }
 0x19c   : > { %v1664_v27 = vadd.s32 %v4783_v8, %v1407_v10  ;;  %v2685_v31 = vsel %vm1917_vm11, %v1146_v14, 0.0  ;;  %vm1919_vm13 = vcmp.lt.s32.totalorder %v1663_v19, 3072  ;;  %v389_v10 = vld [vmem:[%s4761_s26 + $0x530] sm:$0xff]  ;;  %v646_v19 = vld [vmem:[%s4767_s7 + $0x538] sm:$0xff] }
 0x19d   : > { %v2931_v34 = vadd.f32 %v2930_v26, %v2676_v21  ;;  %v893_v21 = vsub.f32 %v381_v7, %v637_v9  ;;  %v1409_v26 = vadd.s32 1280, %v4775_v2  ;;  %v1148_v30 = vmul.f32 %v892_v13, %v892_v13 }
 0x19e   : > { %v1665_v35 = vadd.s32 %v4783_v8, %v1408_v18  ;;  %v2686_v39 = vsel %vm1918_vm12, %v1147_v22, 0.0  ;;  %vm1920_vm14 = vcmp.lt.s32.totalorder %v1664_v27, 3072  ;;  %v390_v18 = vld [vmem:[%s4761_s26 + $0x538] sm:$0xff]  ;;  %v647_v27 = vld [vmem:[%s4767_s7 + $0x540] sm:$0xff] }
 0x19f   : > { %v2932_v42 = vadd.f32 %v2931_v34, %v2677_v29  ;;  %v894_v29 = vsub.f32 %v382_v16, %v638_v17  ;;  %v1410_v34 = vadd.s32 1288, %v4775_v2  ;;  %v1149_v38 = vmul.f32 %v893_v21, %v893_v21 }
 0x1a0   : > { %v1666_v43 = vadd.s32 %v4783_v8, %v1409_v26  ;;  %v2687_v47 = vsel %vm1919_vm13, %v1148_v30, 0.0  ;;  %vm1921_vm15 = vcmp.lt.s32.totalorder %v1665_v35, 3072  ;;  %v391_v26 = vld [vmem:[%s4761_s26 + $0x540] sm:$0xff]  ;;  %v648_v35 = vld [vmem:[%s4767_s7 + $0x548] sm:$0xff] }
 0x1a1   : > { %v2933_v50 = vadd.f32 %v2932_v42, %v2678_v37  ;;  %v895_v37 = vsub.f32 %v383_v24, %v639_v25  ;;  %v1411_v42 = vadd.s32 1296, %v4775_v2  ;;  %v1150_v46 = vmul.f32 %v894_v29, %v894_v29 }
 0x1a2   : > { %v1667_v51 = vadd.s32 %v4783_v8, %v1410_v34  ;;  %v2688_v55 = vsel %vm1920_vm14, %v1149_v38, 0.0  ;;  %vm1922_vm0 = vcmp.lt.s32.totalorder %v1666_v43, 3072  ;;  %v392_v34 = vld [vmem:[%s4761_s26 + $0x548] sm:$0xff]  ;;  %v649_v43 = vld [vmem:[%s4767_s7 + $0x550] sm:$0xff] }
 0x1a3   : > { %v2934_v58 = vadd.f32 %v2933_v50, %v2679_v45  ;;  %v896_v45 = vsub.f32 %v384_v32, %v640_v33  ;;  %v1412_v50 = vadd.s32 1304, %v4775_v2  ;;  %v1151_v54 = vmul.f32 %v895_v37, %v895_v37 }
 0x1a4   : > { %v1668_v59 = vadd.s32 %v4783_v8, %v1411_v42  ;;  %v2689_v63 = vsel %vm1921_vm15, %v1150_v46, 0.0  ;;  %vm1923_vm1 = vcmp.lt.s32.totalorder %v1667_v51, 3072  ;;  %v393_v42 = vld [vmem:[%s4761_s26 + $0x550] sm:$0xff]  ;;  %v650_v51 = vld [vmem:[%s4767_s7 + $0x558] sm:$0xff] }
 0x1a5   : > { %v2935_v3 = vadd.f32 %v2934_v58, %v2680_v53  ;;  %v897_v53 = vsub.f32 %v385_v40, %v641_v41  ;;  %v1413_v58 = vadd.s32 1312, %v4775_v2  ;;  %v1152_v62 = vmul.f32 %v896_v45, %v896_v45 }
 0x1a6   : > { %v1669_v4 = vadd.s32 %v4783_v8, %v1412_v50  ;;  %v2690_v9 = vsel %vm1922_vm0, %v1151_v54, 0.0  ;;  %vm1924_vm2 = vcmp.lt.s32.totalorder %v1668_v59, 3072  ;;  %v394_v50 = vld [vmem:[%s4761_s26 + $0x558] sm:$0xff]  ;;  %v651_v59 = vld [vmem:[%s4767_s7 + $0x560] sm:$0xff] }
 0x1a7   : > { %v2936_v12 = vadd.f32 %v2935_v3, %v2681_v61  ;;  %v898_v61 = vsub.f32 %v386_v48, %v642_v49  ;;  %v1414_v3 = vadd.s32 1320, %v4775_v2  ;;  %v1153_v7 = vmul.f32 %v897_v53, %v897_v53 }
 0x1a8   : > { %v1670_v13 = vadd.s32 %v4783_v8, %v1413_v58  ;;  %v2691_v17 = vsel %vm1923_vm1, %v1152_v62, 0.0  ;;  %vm1925_vm3 = vcmp.lt.s32.totalorder %v1669_v4, 3072  ;;  %v395_v58 = vld [vmem:[%s4761_s26 + $0x560] sm:$0xff]  ;;  %v652_v4 = vld [vmem:[%s4767_s7 + $0x568] sm:$0xff] }
 0x1a9   : > { %v2937_v20 = vadd.f32 %v2936_v12, %v2682_v6  ;;  %v899_v6 = vsub.f32 %v387_v56, %v643_v57  ;;  %v1415_v12 = vadd.s32 1328, %v4775_v2  ;;  %v1154_v16 = vmul.f32 %v898_v61, %v898_v61 }
 0x1aa   : > { %v1671_v21 = vadd.s32 %v4783_v8, %v1414_v3  ;;  %v2692_v25 = vsel %vm1924_vm2, %v1153_v7, 0.0  ;;  %vm1926_vm4 = vcmp.lt.s32.totalorder %v1670_v13, 3072  ;;  %v396_v3 = vld [vmem:[%s4761_s26 + $0x568] sm:$0xff]  ;;  %v653_v13 = vld [vmem:[%s4767_s7 + $0x570] sm:$0xff] }
 0x1ab   : > { %v2938_v28 = vadd.f32 %v2937_v20, %v2683_v15  ;;  %v900_v15 = vsub.f32 %v388_v0, %v644_v1  ;;  %v1416_v20 = vadd.s32 1336, %v4775_v2  ;;  %v1155_v24 = vmul.f32 %v899_v6, %v899_v6 }
 0x1ac   : > { %v1672_v29 = vadd.s32 %v4783_v8, %v1415_v12  ;;  %v2693_v33 = vsel %vm1925_vm3, %v1154_v16, 0.0  ;;  %vm1927_vm5 = vcmp.lt.s32.totalorder %v1671_v21, 3072  ;;  %v397_v12 = vld [vmem:[%s4761_s26 + $0x570] sm:$0xff]  ;;  %v654_v21 = vld [vmem:[%s4767_s7 + $0x578] sm:$0xff] }
 0x1ad   : > { %v2939_v36 = vadd.f32 %v2938_v28, %v2684_v23  ;;  %v901_v23 = vsub.f32 %v389_v10, %v645_v11  ;;  %v1417_v28 = vadd.s32 1344, %v4775_v2  ;;  %v1156_v32 = vmul.f32 %v900_v15, %v900_v15 }
 0x1ae   : > { %v1673_v37 = vadd.s32 %v4783_v8, %v1416_v20  ;;  %v2694_v41 = vsel %vm1926_vm4, %v1155_v24, 0.0  ;;  %vm1928_vm6 = vcmp.lt.s32.totalorder %v1672_v29, 3072  ;;  %v398_v20 = vld [vmem:[%s4761_s26 + $0x578] sm:$0xff]  ;;  %v655_v29 = vld [vmem:[%s4767_s7 + $0x580] sm:$0xff] }
 0x1af   : > { %v2940_v44 = vadd.f32 %v2939_v36, %v2685_v31  ;;  %v902_v31 = vsub.f32 %v390_v18, %v646_v19  ;;  %v1418_v36 = vadd.s32 1352, %v4775_v2  ;;  %v1157_v40 = vmul.f32 %v901_v23, %v901_v23 }
 0x1b0   : > { %v1674_v45 = vadd.s32 %v4783_v8, %v1417_v28  ;;  %v2695_v49 = vsel %vm1927_vm5, %v1156_v32, 0.0  ;;  %vm1929_vm7 = vcmp.lt.s32.totalorder %v1673_v37, 3072  ;;  %v399_v28 = vld [vmem:[%s4761_s26 + $0x580] sm:$0xff]  ;;  %v656_v37 = vld [vmem:[%s4767_s7 + $0x588] sm:$0xff] }
 0x1b1   : > { %v2941_v52 = vadd.f32 %v2940_v44, %v2686_v39  ;;  %v903_v39 = vsub.f32 %v391_v26, %v647_v27  ;;  %v1419_v44 = vadd.s32 1360, %v4775_v2  ;;  %v1158_v48 = vmul.f32 %v902_v31, %v902_v31 }
 0x1b2   : > { %v1675_v53 = vadd.s32 %v4783_v8, %v1418_v36  ;;  %v2696_v57 = vsel %vm1928_vm6, %v1157_v40, 0.0  ;;  %vm1930_vm8 = vcmp.lt.s32.totalorder %v1674_v45, 3072  ;;  %v400_v36 = vld [vmem:[%s4761_s26 + $0x588] sm:$0xff]  ;;  %v657_v45 = vld [vmem:[%s4767_s7 + $0x590] sm:$0xff] }
 0x1b3   : > { %v2942_v60 = vadd.f32 %v2941_v52, %v2687_v47  ;;  %v904_v47 = vsub.f32 %v392_v34, %v648_v35  ;;  %v1420_v52 = vadd.s32 1368, %v4775_v2  ;;  %v1159_v56 = vmul.f32 %v903_v39, %v903_v39 }
 0x1b4   : > { %v1676_v61 = vadd.s32 %v4783_v8, %v1419_v44  ;;  %v2697_v1 = vsel %vm1929_vm7, %v1158_v48, 0.0  ;;  %vm1931_vm9 = vcmp.lt.s32.totalorder %v1675_v53, 3072  ;;  %v401_v44 = vld [vmem:[%s4761_s26 + $0x590] sm:$0xff]  ;;  %v658_v53 = vld [vmem:[%s4767_s7 + $0x598] sm:$0xff] }
 0x1b5   : > { %v2943_v5 = vadd.f32 %v2942_v60, %v2688_v55  ;;  %v905_v55 = vsub.f32 %v393_v42, %v649_v43  ;;  %v1421_v60 = vadd.s32 1376, %v4775_v2  ;;  %v1160_v0 = vmul.f32 %v904_v47, %v904_v47 }
 0x1b6   : > { %v1677_v6 = vadd.s32 %v4783_v8, %v1420_v52  ;;  %v2698_v11 = vsel %vm1930_vm8, %v1159_v56, 0.0  ;;  %vm1932_vm10 = vcmp.lt.s32.totalorder %v1676_v61, 3072  ;;  %v402_v52 = vld [vmem:[%s4761_s26 + $0x598] sm:$0xff]  ;;  %v659_v61 = vld [vmem:[%s4767_s7 + $0x5a0] sm:$0xff] }
 0x1b7   : > { %v2944_v14 = vadd.f32 %v2943_v5, %v2689_v63  ;;  %v906_v63 = vsub.f32 %v394_v50, %v650_v51  ;;  %v1422_v5 = vadd.s32 1384, %v4775_v2  ;;  %v1161_v10 = vmul.f32 %v905_v55, %v905_v55 }
 0x1b8   : > { %v1678_v15 = vadd.s32 %v4783_v8, %v1421_v60  ;;  %v2699_v19 = vsel %vm1931_vm9, %v1160_v0, 0.0  ;;  %vm1933_vm11 = vcmp.lt.s32.totalorder %v1677_v6, 3072  ;;  %v403_v60 = vld [vmem:[%s4761_s26 + $0x5a0] sm:$0xff]  ;;  %v660_v6 = vld [vmem:[%s4767_s7 + $0x5a8] sm:$0xff] }
 0x1b9   : > { %v2945_v22 = vadd.f32 %v2944_v14, %v2690_v9  ;;  %v907_v9 = vsub.f32 %v395_v58, %v651_v59  ;;  %v1423_v14 = vadd.s32 1392, %v4775_v2  ;;  %v1162_v18 = vmul.f32 %v906_v63, %v906_v63 }
 0x1ba   : > { %v1679_v23 = vadd.s32 %v4783_v8, %v1422_v5  ;;  %v2700_v27 = vsel %vm1932_vm10, %v1161_v10, 0.0  ;;  %vm1934_vm12 = vcmp.lt.s32.totalorder %v1678_v15, 3072  ;;  %v404_v5 = vld [vmem:[%s4761_s26 + $0x5a8] sm:$0xff]  ;;  %v661_v15 = vld [vmem:[%s4767_s7 + $0x5b0] sm:$0xff] }
 0x1bb   : > { %v2946_v30 = vadd.f32 %v2945_v22, %v2691_v17  ;;  %v908_v17 = vsub.f32 %v396_v3, %v652_v4  ;;  %v1424_v22 = vadd.s32 1400, %v4775_v2  ;;  %v1163_v26 = vmul.f32 %v907_v9, %v907_v9 }
 0x1bc   : > { %v1680_v31 = vadd.s32 %v4783_v8, %v1423_v14  ;;  %v2701_v35 = vsel %vm1933_vm11, %v1162_v18, 0.0  ;;  %vm1935_vm13 = vcmp.lt.s32.totalorder %v1679_v23, 3072  ;;  %v405_v14 = vld [vmem:[%s4761_s26 + $0x5b0] sm:$0xff]  ;;  %v662_v23 = vld [vmem:[%s4767_s7 + $0x5b8] sm:$0xff] }
 0x1bd   : > { %v2947_v38 = vadd.f32 %v2946_v30, %v2692_v25  ;;  %v909_v25 = vsub.f32 %v397_v12, %v653_v13  ;;  %v1425_v30 = vadd.s32 1408, %v4775_v2  ;;  %v1164_v34 = vmul.f32 %v908_v17, %v908_v17 }
 0x1be   : > { %v1681_v39 = vadd.s32 %v4783_v8, %v1424_v22  ;;  %v2702_v43 = vsel %vm1934_vm12, %v1163_v26, 0.0  ;;  %vm1936_vm14 = vcmp.lt.s32.totalorder %v1680_v31, 3072  ;;  %v406_v22 = vld [vmem:[%s4761_s26 + $0x5b8] sm:$0xff]  ;;  %v663_v31 = vld [vmem:[%s4767_s7 + $0x5c0] sm:$0xff] }
 0x1bf   : > { %v2948_v46 = vadd.f32 %v2947_v38, %v2693_v33  ;;  %v910_v33 = vsub.f32 %v398_v20, %v654_v21  ;;  %v1426_v38 = vadd.s32 1416, %v4775_v2  ;;  %v1165_v42 = vmul.f32 %v909_v25, %v909_v25 }
 0x1c0   : > { %v1682_v47 = vadd.s32 %v4783_v8, %v1425_v30  ;;  %v2703_v51 = vsel %vm1935_vm13, %v1164_v34, 0.0  ;;  %vm1937_vm15 = vcmp.lt.s32.totalorder %v1681_v39, 3072  ;;  %v407_v30 = vld [vmem:[%s4761_s26 + $0x5c0] sm:$0xff]  ;;  %v664_v39 = vld [vmem:[%s4767_s7 + $0x5c8] sm:$0xff] }
 0x1c1   : > { %v2949_v54 = vadd.f32 %v2948_v46, %v2694_v41  ;;  %v911_v41 = vsub.f32 %v399_v28, %v655_v29  ;;  %v1427_v46 = vadd.s32 1424, %v4775_v2  ;;  %v1166_v50 = vmul.f32 %v910_v33, %v910_v33 }
 0x1c2   : > { %v1683_v55 = vadd.s32 %v4783_v8, %v1426_v38  ;;  %v2704_v59 = vsel %vm1936_vm14, %v1165_v42, 0.0  ;;  %vm1938_vm0 = vcmp.lt.s32.totalorder %v1682_v47, 3072  ;;  %v408_v38 = vld [vmem:[%s4761_s26 + $0x5c8] sm:$0xff]  ;;  %v665_v47 = vld [vmem:[%s4767_s7 + $0x5d0] sm:$0xff] }
 0x1c3   : > { %v2950_v62 = vadd.f32 %v2949_v54, %v2695_v49  ;;  %v912_v49 = vsub.f32 %v400_v36, %v656_v37  ;;  %v1428_v54 = vadd.s32 1432, %v4775_v2  ;;  %v1167_v58 = vmul.f32 %v911_v41, %v911_v41 }
 0x1c4   : > { %v1684_v63 = vadd.s32 %v4783_v8, %v1427_v46  ;;  %v2705_v4 = vsel %vm1937_vm15, %v1166_v50, 0.0  ;;  %vm1939_vm1 = vcmp.lt.s32.totalorder %v1683_v55, 3072  ;;  %v409_v46 = vld [vmem:[%s4761_s26 + $0x5d0] sm:$0xff]  ;;  %v666_v55 = vld [vmem:[%s4767_s7 + $0x5d8] sm:$0xff] }
 0x1c5   : > { %v2951_v7 = vadd.f32 %v2950_v62, %v2696_v57  ;;  %v913_v57 = vsub.f32 %v401_v44, %v657_v45  ;;  %v1429_v62 = vadd.s32 1440, %v4775_v2  ;;  %v1168_v3 = vmul.f32 %v912_v49, %v912_v49 }
 0x1c6   : > { %v1685_v9 = vadd.s32 %v4783_v8, %v1428_v54  ;;  %v2706_v13 = vsel %vm1938_vm0, %v1167_v58, 0.0  ;;  %vm1940_vm2 = vcmp.lt.s32.totalorder %v1684_v63, 3072  ;;  %v410_v54 = vld [vmem:[%s4761_s26 + $0x5d8] sm:$0xff]  ;;  %v667_v63 = vld [vmem:[%s4767_s7 + $0x5e0] sm:$0xff] }
 0x1c7   : > { %v2952_v16 = vadd.f32 %v2951_v7, %v2697_v1  ;;  %v914_v1 = vsub.f32 %v402_v52, %v658_v53  ;;  %v1430_v7 = vadd.s32 1448, %v4775_v2  ;;  %v1169_v12 = vmul.f32 %v913_v57, %v913_v57 }
 0x1c8   : > { %v1686_v17 = vadd.s32 %v4783_v8, %v1429_v62  ;;  %v2707_v21 = vsel %vm1939_vm1, %v1168_v3, 0.0  ;;  %vm1941_vm3 = vcmp.lt.s32.totalorder %v1685_v9, 3072  ;;  %v411_v62 = vld [vmem:[%s4761_s26 + $0x5e0] sm:$0xff]  ;;  %v668_v9 = vld [vmem:[%s4767_s7 + $0x5e8] sm:$0xff] }
 0x1c9   : > { %v2953_v24 = vadd.f32 %v2952_v16, %v2698_v11  ;;  %v915_v11 = vsub.f32 %v403_v60, %v659_v61  ;;  %v1431_v16 = vadd.s32 1456, %v4775_v2  ;;  %v1170_v20 = vmul.f32 %v914_v1, %v914_v1 }
 0x1ca   : > { %v1687_v25 = vadd.s32 %v4783_v8, %v1430_v7  ;;  %v2708_v29 = vsel %vm1940_vm2, %v1169_v12, 0.0  ;;  %vm1942_vm4 = vcmp.lt.s32.totalorder %v1686_v17, 3072  ;;  %v412_v7 = vld [vmem:[%s4761_s26 + $0x5e8] sm:$0xff]  ;;  %v669_v17 = vld [vmem:[%s4767_s7 + $0x5f0] sm:$0xff] }
 0x1cb   : > { %v2954_v32 = vadd.f32 %v2953_v24, %v2699_v19  ;;  %v916_v19 = vsub.f32 %v404_v5, %v660_v6  ;;  %v1432_v24 = vadd.s32 1464, %v4775_v2  ;;  %v1171_v28 = vmul.f32 %v915_v11, %v915_v11 }
 0x1cc   : > { %v1688_v33 = vadd.s32 %v4783_v8, %v1431_v16  ;;  %v2709_v37 = vsel %vm1941_vm3, %v1170_v20, 0.0  ;;  %vm1943_vm5 = vcmp.lt.s32.totalorder %v1687_v25, 3072  ;;  %v413_v16 = vld [vmem:[%s4761_s26 + $0x5f0] sm:$0xff]  ;;  %v670_v25 = vld [vmem:[%s4767_s7 + $0x5f8] sm:$0xff] }
 0x1cd   : > { %v2955_v40 = vadd.f32 %v2954_v32, %v2700_v27  ;;  %v917_v27 = vsub.f32 %v405_v14, %v661_v15  ;;  %v1433_v32 = vadd.s32 1472, %v4775_v2  ;;  %v1172_v36 = vmul.f32 %v916_v19, %v916_v19 }
 0x1ce   : > { %v1689_v41 = vadd.s32 %v4783_v8, %v1432_v24  ;;  %v2710_v45 = vsel %vm1942_vm4, %v1171_v28, 0.0  ;;  %vm1944_vm6 = vcmp.lt.s32.totalorder %v1688_v33, 3072  ;;  %v414_v24 = vld [vmem:[%s4761_s26 + $0x5f8] sm:$0xff]  ;;  %v671_v33 = vld [vmem:[%s4767_s7 + $0x600] sm:$0xff] }
 0x1cf   : > { %v2956_v48 = vadd.f32 %v2955_v40, %v2701_v35  ;;  %v918_v35 = vsub.f32 %v406_v22, %v662_v23  ;;  %v1434_v40 = vadd.s32 1480, %v4775_v2  ;;  %v1173_v44 = vmul.f32 %v917_v27, %v917_v27 }
 0x1d0   : > { %v1690_v49 = vadd.s32 %v4783_v8, %v1433_v32  ;;  %v2711_v53 = vsel %vm1943_vm5, %v1172_v36, 0.0  ;;  %vm1945_vm7 = vcmp.lt.s32.totalorder %v1689_v41, 3072  ;;  %v415_v32 = vld [vmem:[%s4761_s26 + $0x600] sm:$0xff]  ;;  %v672_v41 = vld [vmem:[%s4767_s7 + $0x608] sm:$0xff] }
 0x1d1   : > { %v2957_v56 = vadd.f32 %v2956_v48, %v2702_v43  ;;  %v919_v43 = vsub.f32 %v407_v30, %v663_v31  ;;  %v1435_v48 = vadd.s32 1488, %v4775_v2  ;;  %v1174_v52 = vmul.f32 %v918_v35, %v918_v35 }
 0x1d2   : > { %v1691_v57 = vadd.s32 %v4783_v8, %v1434_v40  ;;  %v2712_v61 = vsel %vm1944_vm6, %v1173_v44, 0.0  ;;  %vm1946_vm8 = vcmp.lt.s32.totalorder %v1690_v49, 3072  ;;  %v416_v40 = vld [vmem:[%s4761_s26 + $0x608] sm:$0xff]  ;;  %v673_v49 = vld [vmem:[%s4767_s7 + $0x610] sm:$0xff] }
 0x1d3   : > { %v2958_v0 = vadd.f32 %v2957_v56, %v2703_v51  ;;  %v920_v51 = vsub.f32 %v408_v38, %v664_v39  ;;  %v1436_v56 = vadd.s32 1496, %v4775_v2  ;;  %v1175_v60 = vmul.f32 %v919_v43, %v919_v43 }
 0x1d4   : > { %v1692_v1 = vadd.s32 %v4783_v8, %v1435_v48  ;;  %v2713_v6 = vsel %vm1945_vm7, %v1174_v52, 0.0  ;;  %vm1947_vm9 = vcmp.lt.s32.totalorder %v1691_v57, 3072  ;;  %v417_v48 = vld [vmem:[%s4761_s26 + $0x610] sm:$0xff]  ;;  %v674_v57 = vld [vmem:[%s4767_s7 + $0x618] sm:$0xff] }
 0x1d5   : > { %v2959_v10 = vadd.f32 %v2958_v0, %v2704_v59  ;;  %v921_v59 = vsub.f32 %v409_v46, %v665_v47  ;;  %v1437_v0 = vadd.s32 1504, %v4775_v2  ;;  %v1176_v5 = vmul.f32 %v920_v51, %v920_v51 }
 0x1d6   : > { %v1693_v11 = vadd.s32 %v4783_v8, %v1436_v56  ;;  %v2714_v15 = vsel %vm1946_vm8, %v1175_v60, 0.0  ;;  %vm1948_vm10 = vcmp.lt.s32.totalorder %v1692_v1, 3072  ;;  %v418_v56 = vld [vmem:[%s4761_s26 + $0x618] sm:$0xff]  ;;  %v675_v1 = vld [vmem:[%s4767_s7 + $0x620] sm:$0xff] }
 0x1d7   : > { %v2960_v18 = vadd.f32 %v2959_v10, %v2705_v4  ;;  %v922_v4 = vsub.f32 %v410_v54, %v666_v55  ;;  %v1438_v10 = vadd.s32 1512, %v4775_v2  ;;  %v1177_v14 = vmul.f32 %v921_v59, %v921_v59 }
 0x1d8   : > { %v1694_v19 = vadd.s32 %v4783_v8, %v1437_v0  ;;  %v2715_v23 = vsel %vm1947_vm9, %v1176_v5, 0.0  ;;  %vm1949_vm11 = vcmp.lt.s32.totalorder %v1693_v11, 3072  ;;  %v419_v0 = vld [vmem:[%s4761_s26 + $0x620] sm:$0xff]  ;;  %v676_v11 = vld [vmem:[%s4767_s7 + $0x628] sm:$0xff] }
 0x1d9   : > { %v2961_v26 = vadd.f32 %v2960_v18, %v2706_v13  ;;  %v923_v13 = vsub.f32 %v411_v62, %v667_v63  ;;  %v1439_v18 = vadd.s32 1520, %v4775_v2  ;;  %v1178_v22 = vmul.f32 %v922_v4, %v922_v4 }
 0x1da   : > { %v1695_v27 = vadd.s32 %v4783_v8, %v1438_v10  ;;  %v2716_v31 = vsel %vm1948_vm10, %v1177_v14, 0.0  ;;  %vm1950_vm12 = vcmp.lt.s32.totalorder %v1694_v19, 3072  ;;  %v420_v10 = vld [vmem:[%s4761_s26 + $0x628] sm:$0xff]  ;;  %v677_v19 = vld [vmem:[%s4767_s7 + $0x630] sm:$0xff] }
 0x1db   : > { %v2962_v34 = vadd.f32 %v2961_v26, %v2707_v21  ;;  %v924_v21 = vsub.f32 %v412_v7, %v668_v9  ;;  %v1440_v26 = vadd.s32 1528, %v4775_v2  ;;  %v1179_v30 = vmul.f32 %v923_v13, %v923_v13 }
 0x1dc   : > { %v1696_v35 = vadd.s32 %v4783_v8, %v1439_v18  ;;  %v2717_v39 = vsel %vm1949_vm11, %v1178_v22, 0.0  ;;  %vm1951_vm13 = vcmp.lt.s32.totalorder %v1695_v27, 3072  ;;  %v421_v18 = vld [vmem:[%s4761_s26 + $0x630] sm:$0xff]  ;;  %v678_v27 = vld [vmem:[%s4767_s7 + $0x638] sm:$0xff] }
 0x1dd   : > { %v2963_v42 = vadd.f32 %v2962_v34, %v2708_v29  ;;  %v925_v29 = vsub.f32 %v413_v16, %v669_v17  ;;  %v1441_v34 = vadd.s32 1536, %v4775_v2  ;;  %v1180_v38 = vmul.f32 %v924_v21, %v924_v21 }
 0x1de   : > { %v1697_v43 = vadd.s32 %v4783_v8, %v1440_v26  ;;  %v2718_v47 = vsel %vm1950_vm12, %v1179_v30, 0.0  ;;  %vm1952_vm14 = vcmp.lt.s32.totalorder %v1696_v35, 3072  ;;  %v422_v26 = vld [vmem:[%s4761_s26 + $0x638] sm:$0xff]  ;;  %v679_v35 = vld [vmem:[%s4767_s7 + $0x640] sm:$0xff] }
 0x1df   : > { %v2964_v50 = vadd.f32 %v2963_v42, %v2709_v37  ;;  %v926_v37 = vsub.f32 %v414_v24, %v670_v25  ;;  %v1442_v42 = vadd.s32 1544, %v4775_v2  ;;  %v1181_v46 = vmul.f32 %v925_v29, %v925_v29 }
 0x1e0   : > { %v1698_v51 = vadd.s32 %v4783_v8, %v1441_v34  ;;  %v2719_v55 = vsel %vm1951_vm13, %v1180_v38, 0.0  ;;  %vm1953_vm15 = vcmp.lt.s32.totalorder %v1697_v43, 3072  ;;  %v423_v34 = vld [vmem:[%s4761_s26 + $0x640] sm:$0xff]  ;;  %v680_v43 = vld [vmem:[%s4767_s7 + $0x648] sm:$0xff] }
 0x1e1   : > { %v2965_v58 = vadd.f32 %v2964_v50, %v2710_v45  ;;  %v927_v45 = vsub.f32 %v415_v32, %v671_v33  ;;  %v1443_v50 = vadd.s32 1552, %v4775_v2  ;;  %v1182_v54 = vmul.f32 %v926_v37, %v926_v37 }
 0x1e2   : > { %v1699_v59 = vadd.s32 %v4783_v8, %v1442_v42  ;;  %v2720_v63 = vsel %vm1952_vm14, %v1181_v46, 0.0  ;;  %vm1954_vm0 = vcmp.lt.s32.totalorder %v1698_v51, 3072  ;;  %v424_v42 = vld [vmem:[%s4761_s26 + $0x648] sm:$0xff]  ;;  %v681_v51 = vld [vmem:[%s4767_s7 + $0x650] sm:$0xff] }
 0x1e3   : > { %v2966_v3 = vadd.f32 %v2965_v58, %v2711_v53  ;;  %v928_v53 = vsub.f32 %v416_v40, %v672_v41  ;;  %v1444_v58 = vadd.s32 1560, %v4775_v2  ;;  %v1183_v62 = vmul.f32 %v927_v45, %v927_v45 }
 0x1e4   : > { %v1700_v4 = vadd.s32 %v4783_v8, %v1443_v50  ;;  %v2721_v9 = vsel %vm1953_vm15, %v1182_v54, 0.0  ;;  %vm1955_vm1 = vcmp.lt.s32.totalorder %v1699_v59, 3072  ;;  %v425_v50 = vld [vmem:[%s4761_s26 + $0x650] sm:$0xff]  ;;  %v682_v59 = vld [vmem:[%s4767_s7 + $0x658] sm:$0xff] }
 0x1e5   : > { %v2967_v12 = vadd.f32 %v2966_v3, %v2712_v61  ;;  %v929_v61 = vsub.f32 %v417_v48, %v673_v49  ;;  %v1445_v3 = vadd.s32 1568, %v4775_v2  ;;  %v1184_v7 = vmul.f32 %v928_v53, %v928_v53 }
 0x1e6   : > { %v1701_v13 = vadd.s32 %v4783_v8, %v1444_v58  ;;  %v2722_v17 = vsel %vm1954_vm0, %v1183_v62, 0.0  ;;  %vm1956_vm2 = vcmp.lt.s32.totalorder %v1700_v4, 3072  ;;  %v426_v58 = vld [vmem:[%s4761_s26 + $0x658] sm:$0xff]  ;;  %v683_v4 = vld [vmem:[%s4767_s7 + $0x660] sm:$0xff] }
 0x1e7   : > { %v2968_v20 = vadd.f32 %v2967_v12, %v2713_v6  ;;  %v930_v6 = vsub.f32 %v418_v56, %v674_v57  ;;  %v1446_v12 = vadd.s32 1576, %v4775_v2  ;;  %v1185_v16 = vmul.f32 %v929_v61, %v929_v61 }
 0x1e8   : > { %v1702_v21 = vadd.s32 %v4783_v8, %v1445_v3  ;;  %v2723_v25 = vsel %vm1955_vm1, %v1184_v7, 0.0  ;;  %vm1957_vm3 = vcmp.lt.s32.totalorder %v1701_v13, 3072  ;;  %v427_v3 = vld [vmem:[%s4761_s26 + $0x660] sm:$0xff]  ;;  %v684_v13 = vld [vmem:[%s4767_s7 + $0x668] sm:$0xff] }
 0x1e9   : > { %v2969_v28 = vadd.f32 %v2968_v20, %v2714_v15  ;;  %v931_v15 = vsub.f32 %v419_v0, %v675_v1  ;;  %v1447_v20 = vadd.s32 1584, %v4775_v2  ;;  %v1186_v24 = vmul.f32 %v930_v6, %v930_v6 }
 0x1ea   : > { %v1703_v29 = vadd.s32 %v4783_v8, %v1446_v12  ;;  %v2724_v33 = vsel %vm1956_vm2, %v1185_v16, 0.0  ;;  %vm1958_vm4 = vcmp.lt.s32.totalorder %v1702_v21, 3072  ;;  %v428_v12 = vld [vmem:[%s4761_s26 + $0x668] sm:$0xff]  ;;  %v685_v21 = vld [vmem:[%s4767_s7 + $0x670] sm:$0xff] }
 0x1eb   : > { %v2970_v36 = vadd.f32 %v2969_v28, %v2715_v23  ;;  %v932_v23 = vsub.f32 %v420_v10, %v676_v11  ;;  %v1448_v28 = vadd.s32 1592, %v4775_v2  ;;  %v1187_v32 = vmul.f32 %v931_v15, %v931_v15 }
 0x1ec   : > { %v1704_v37 = vadd.s32 %v4783_v8, %v1447_v20  ;;  %v2725_v41 = vsel %vm1957_vm3, %v1186_v24, 0.0  ;;  %vm1959_vm5 = vcmp.lt.s32.totalorder %v1703_v29, 3072  ;;  %v429_v20 = vld [vmem:[%s4761_s26 + $0x670] sm:$0xff]  ;;  %v686_v29 = vld [vmem:[%s4767_s7 + $0x678] sm:$0xff] }
 0x1ed   : > { %v2971_v44 = vadd.f32 %v2970_v36, %v2716_v31  ;;  %v933_v31 = vsub.f32 %v421_v18, %v677_v19  ;;  %v1449_v36 = vadd.s32 1600, %v4775_v2  ;;  %v1188_v40 = vmul.f32 %v932_v23, %v932_v23 }
 0x1ee   : > { %v1705_v45 = vadd.s32 %v4783_v8, %v1448_v28  ;;  %v2726_v49 = vsel %vm1958_vm4, %v1187_v32, 0.0  ;;  %vm1960_vm6 = vcmp.lt.s32.totalorder %v1704_v37, 3072  ;;  %v430_v28 = vld [vmem:[%s4761_s26 + $0x678] sm:$0xff]  ;;  %v687_v37 = vld [vmem:[%s4767_s7 + $0x680] sm:$0xff] }
 0x1ef   : > { %v2972_v52 = vadd.f32 %v2971_v44, %v2717_v39  ;;  %v934_v39 = vsub.f32 %v422_v26, %v678_v27  ;;  %v1450_v44 = vadd.s32 1608, %v4775_v2  ;;  %v1189_v48 = vmul.f32 %v933_v31, %v933_v31 }
 0x1f0   : > { %v1706_v53 = vadd.s32 %v4783_v8, %v1449_v36  ;;  %v2727_v57 = vsel %vm1959_vm5, %v1188_v40, 0.0  ;;  %vm1961_vm7 = vcmp.lt.s32.totalorder %v1705_v45, 3072  ;;  %v431_v36 = vld [vmem:[%s4761_s26 + $0x680] sm:$0xff]  ;;  %v688_v45 = vld [vmem:[%s4767_s7 + $0x688] sm:$0xff] }
 0x1f1   : > { %v2973_v60 = vadd.f32 %v2972_v52, %v2718_v47  ;;  %v935_v47 = vsub.f32 %v423_v34, %v679_v35  ;;  %v1451_v52 = vadd.s32 1616, %v4775_v2  ;;  %v1190_v56 = vmul.f32 %v934_v39, %v934_v39 }
 0x1f2   : > { %v1707_v61 = vadd.s32 %v4783_v8, %v1450_v44  ;;  %v2728_v1 = vsel %vm1960_vm6, %v1189_v48, 0.0  ;;  %vm1962_vm8 = vcmp.lt.s32.totalorder %v1706_v53, 3072  ;;  %v432_v44 = vld [vmem:[%s4761_s26 + $0x688] sm:$0xff]  ;;  %v689_v53 = vld [vmem:[%s4767_s7 + $0x690] sm:$0xff] }
 0x1f3   : > { %v2974_v5 = vadd.f32 %v2973_v60, %v2719_v55  ;;  %v936_v55 = vsub.f32 %v424_v42, %v680_v43  ;;  %v1452_v60 = vadd.s32 1624, %v4775_v2  ;;  %v1191_v0 = vmul.f32 %v935_v47, %v935_v47 }
 0x1f4   : > { %v1708_v6 = vadd.s32 %v4783_v8, %v1451_v52  ;;  %v2729_v11 = vsel %vm1961_vm7, %v1190_v56, 0.0  ;;  %vm1963_vm9 = vcmp.lt.s32.totalorder %v1707_v61, 3072  ;;  %v433_v52 = vld [vmem:[%s4761_s26 + $0x690] sm:$0xff]  ;;  %v690_v61 = vld [vmem:[%s4767_s7 + $0x698] sm:$0xff] }
 0x1f5   : > { %v2975_v14 = vadd.f32 %v2974_v5, %v2720_v63  ;;  %v937_v63 = vsub.f32 %v425_v50, %v681_v51  ;;  %v1453_v5 = vadd.s32 1632, %v4775_v2  ;;  %v1192_v10 = vmul.f32 %v936_v55, %v936_v55 }
 0x1f6   : > { %v1709_v15 = vadd.s32 %v4783_v8, %v1452_v60  ;;  %v2730_v19 = vsel %vm1962_vm8, %v1191_v0, 0.0  ;;  %vm1964_vm10 = vcmp.lt.s32.totalorder %v1708_v6, 3072  ;;  %v434_v60 = vld [vmem:[%s4761_s26 + $0x698] sm:$0xff]  ;;  %v691_v6 = vld [vmem:[%s4767_s7 + $0x6a0] sm:$0xff] }
 0x1f7   : > { %v2976_v22 = vadd.f32 %v2975_v14, %v2721_v9  ;;  %v938_v9 = vsub.f32 %v426_v58, %v682_v59  ;;  %v1454_v14 = vadd.s32 1640, %v4775_v2  ;;  %v1193_v18 = vmul.f32 %v937_v63, %v937_v63 }
 0x1f8   : > { %v1710_v23 = vadd.s32 %v4783_v8, %v1453_v5  ;;  %v2731_v27 = vsel %vm1963_vm9, %v1192_v10, 0.0  ;;  %vm1965_vm11 = vcmp.lt.s32.totalorder %v1709_v15, 3072  ;;  %v435_v5 = vld [vmem:[%s4761_s26 + $0x6a0] sm:$0xff]  ;;  %v692_v15 = vld [vmem:[%s4767_s7 + $0x6a8] sm:$0xff] }
 0x1f9   : > { %v2977_v30 = vadd.f32 %v2976_v22, %v2722_v17  ;;  %v939_v17 = vsub.f32 %v427_v3, %v683_v4  ;;  %v1455_v22 = vadd.s32 1648, %v4775_v2  ;;  %v1194_v26 = vmul.f32 %v938_v9, %v938_v9 }
 0x1fa   : > { %v1711_v31 = vadd.s32 %v4783_v8, %v1454_v14  ;;  %v2732_v35 = vsel %vm1964_vm10, %v1193_v18, 0.0  ;;  %vm1966_vm12 = vcmp.lt.s32.totalorder %v1710_v23, 3072  ;;  %v436_v14 = vld [vmem:[%s4761_s26 + $0x6a8] sm:$0xff]  ;;  %v693_v23 = vld [vmem:[%s4767_s7 + $0x6b0] sm:$0xff] }
 0x1fb   : > { %v2978_v38 = vadd.f32 %v2977_v30, %v2723_v25  ;;  %v940_v25 = vsub.f32 %v428_v12, %v684_v13  ;;  %v1456_v30 = vadd.s32 1656, %v4775_v2  ;;  %v1195_v34 = vmul.f32 %v939_v17, %v939_v17 }
 0x1fc   : > { %v1712_v39 = vadd.s32 %v4783_v8, %v1455_v22  ;;  %v2733_v43 = vsel %vm1965_vm11, %v1194_v26, 0.0  ;;  %vm1967_vm13 = vcmp.lt.s32.totalorder %v1711_v31, 3072  ;;  %v437_v22 = vld [vmem:[%s4761_s26 + $0x6b0] sm:$0xff]  ;;  %v694_v31 = vld [vmem:[%s4767_s7 + $0x6b8] sm:$0xff] }
 0x1fd   : > { %v2979_v46 = vadd.f32 %v2978_v38, %v2724_v33  ;;  %v941_v33 = vsub.f32 %v429_v20, %v685_v21  ;;  %v1457_v38 = vadd.s32 1664, %v4775_v2  ;;  %v1196_v42 = vmul.f32 %v940_v25, %v940_v25 }
 0x1fe   : > { %v1713_v47 = vadd.s32 %v4783_v8, %v1456_v30  ;;  %v2734_v51 = vsel %vm1966_vm12, %v1195_v34, 0.0  ;;  %vm1968_vm14 = vcmp.lt.s32.totalorder %v1712_v39, 3072  ;;  %v438_v30 = vld [vmem:[%s4761_s26 + $0x6b8] sm:$0xff]  ;;  %v695_v39 = vld [vmem:[%s4767_s7 + $0x6c0] sm:$0xff] }
 0x1ff   : > { %v2980_v54 = vadd.f32 %v2979_v46, %v2725_v41  ;;  %v942_v41 = vsub.f32 %v430_v28, %v686_v29  ;;  %v1458_v46 = vadd.s32 1672, %v4775_v2  ;;  %v1197_v50 = vmul.f32 %v941_v33, %v941_v33 }
 0x200   : > { %v1714_v55 = vadd.s32 %v4783_v8, %v1457_v38  ;;  %v2735_v59 = vsel %vm1967_vm13, %v1196_v42, 0.0  ;;  %vm1969_vm15 = vcmp.lt.s32.totalorder %v1713_v47, 3072  ;;  %v439_v38 = vld [vmem:[%s4761_s26 + $0x6c0] sm:$0xff]  ;;  %v696_v47 = vld [vmem:[%s4767_s7 + $0x6c8] sm:$0xff] }
 0x201   : > { %v2981_v62 = vadd.f32 %v2980_v54, %v2726_v49  ;;  %v943_v49 = vsub.f32 %v431_v36, %v687_v37  ;;  %v1459_v54 = vadd.s32 1680, %v4775_v2  ;;  %v1198_v58 = vmul.f32 %v942_v41, %v942_v41 }
 0x202   : > { %v1715_v63 = vadd.s32 %v4783_v8, %v1458_v46  ;;  %v2736_v4 = vsel %vm1968_vm14, %v1197_v50, 0.0  ;;  %vm1970_vm0 = vcmp.lt.s32.totalorder %v1714_v55, 3072  ;;  %v440_v46 = vld [vmem:[%s4761_s26 + $0x6c8] sm:$0xff]  ;;  %v697_v55 = vld [vmem:[%s4767_s7 + $0x6d0] sm:$0xff] }
 0x203   : > { %v2982_v7 = vadd.f32 %v2981_v62, %v2727_v57  ;;  %v944_v57 = vsub.f32 %v432_v44, %v688_v45  ;;  %v1460_v62 = vadd.s32 1688, %v4775_v2  ;;  %v1199_v3 = vmul.f32 %v943_v49, %v943_v49 }
 0x204   : > { %v1716_v9 = vadd.s32 %v4783_v8, %v1459_v54  ;;  %v2737_v13 = vsel %vm1969_vm15, %v1198_v58, 0.0  ;;  %vm1971_vm1 = vcmp.lt.s32.totalorder %v1715_v63, 3072  ;;  %v441_v54 = vld [vmem:[%s4761_s26 + $0x6d0] sm:$0xff]  ;;  %v698_v63 = vld [vmem:[%s4767_s7 + $0x6d8] sm:$0xff] }
 0x205   : > { %v2983_v16 = vadd.f32 %v2982_v7, %v2728_v1  ;;  %v945_v1 = vsub.f32 %v433_v52, %v689_v53  ;;  %v1461_v7 = vadd.s32 1696, %v4775_v2  ;;  %v1200_v12 = vmul.f32 %v944_v57, %v944_v57 }
 0x206   : > { %v1717_v17 = vadd.s32 %v4783_v8, %v1460_v62  ;;  %v2738_v21 = vsel %vm1970_vm0, %v1199_v3, 0.0  ;;  %vm1972_vm2 = vcmp.lt.s32.totalorder %v1716_v9, 3072  ;;  %v442_v62 = vld [vmem:[%s4761_s26 + $0x6d8] sm:$0xff]  ;;  %v699_v9 = vld [vmem:[%s4767_s7 + $0x6e0] sm:$0xff] }
 0x207   : > { %v2984_v24 = vadd.f32 %v2983_v16, %v2729_v11  ;;  %v946_v11 = vsub.f32 %v434_v60, %v690_v61  ;;  %v1462_v16 = vadd.s32 1704, %v4775_v2  ;;  %v1201_v20 = vmul.f32 %v945_v1, %v945_v1 }
 0x208   : > { %v1718_v25 = vadd.s32 %v4783_v8, %v1461_v7  ;;  %v2739_v29 = vsel %vm1971_vm1, %v1200_v12, 0.0  ;;  %vm1973_vm3 = vcmp.lt.s32.totalorder %v1717_v17, 3072  ;;  %v443_v7 = vld [vmem:[%s4761_s26 + $0x6e0] sm:$0xff]  ;;  %v700_v17 = vld [vmem:[%s4767_s7 + $0x6e8] sm:$0xff] }
 0x209   : > { %v2985_v32 = vadd.f32 %v2984_v24, %v2730_v19  ;;  %v947_v19 = vsub.f32 %v435_v5, %v691_v6  ;;  %v1463_v24 = vadd.s32 1712, %v4775_v2  ;;  %v1202_v28 = vmul.f32 %v946_v11, %v946_v11 }
 0x20a   : > { %v1719_v33 = vadd.s32 %v4783_v8, %v1462_v16  ;;  %v2740_v37 = vsel %vm1972_vm2, %v1201_v20, 0.0  ;;  %vm1974_vm4 = vcmp.lt.s32.totalorder %v1718_v25, 3072  ;;  %v444_v16 = vld [vmem:[%s4761_s26 + $0x6e8] sm:$0xff]  ;;  %v701_v25 = vld [vmem:[%s4767_s7 + $0x6f0] sm:$0xff] }
 0x20b   : > { %v2986_v40 = vadd.f32 %v2985_v32, %v2731_v27  ;;  %v948_v27 = vsub.f32 %v436_v14, %v692_v15  ;;  %v1464_v32 = vadd.s32 1720, %v4775_v2  ;;  %v1203_v36 = vmul.f32 %v947_v19, %v947_v19 }
 0x20c   : > { %v1720_v41 = vadd.s32 %v4783_v8, %v1463_v24  ;;  %v2741_v45 = vsel %vm1973_vm3, %v1202_v28, 0.0  ;;  %vm1975_vm5 = vcmp.lt.s32.totalorder %v1719_v33, 3072  ;;  %v445_v24 = vld [vmem:[%s4761_s26 + $0x6f0] sm:$0xff]  ;;  %v702_v33 = vld [vmem:[%s4767_s7 + $0x6f8] sm:$0xff] }
 0x20d   : > { %v2987_v48 = vadd.f32 %v2986_v40, %v2732_v35  ;;  %v949_v35 = vsub.f32 %v437_v22, %v693_v23  ;;  %v1465_v40 = vadd.s32 1728, %v4775_v2  ;;  %v1204_v44 = vmul.f32 %v948_v27, %v948_v27 }
 0x20e   : > { %v1721_v49 = vadd.s32 %v4783_v8, %v1464_v32  ;;  %v2742_v53 = vsel %vm1974_vm4, %v1203_v36, 0.0  ;;  %vm1976_vm6 = vcmp.lt.s32.totalorder %v1720_v41, 3072  ;;  %v446_v32 = vld [vmem:[%s4761_s26 + $0x6f8] sm:$0xff]  ;;  %v703_v41 = vld [vmem:[%s4767_s7 + $0x700] sm:$0xff] }
 0x20f   : > { %v2988_v56 = vadd.f32 %v2987_v48, %v2733_v43  ;;  %v950_v43 = vsub.f32 %v438_v30, %v694_v31  ;;  %v1466_v48 = vadd.s32 1736, %v4775_v2  ;;  %v1205_v52 = vmul.f32 %v949_v35, %v949_v35 }
 0x210   : > { %v1722_v57 = vadd.s32 %v4783_v8, %v1465_v40  ;;  %v2743_v61 = vsel %vm1975_vm5, %v1204_v44, 0.0  ;;  %vm1977_vm7 = vcmp.lt.s32.totalorder %v1721_v49, 3072  ;;  %v447_v40 = vld [vmem:[%s4761_s26 + $0x700] sm:$0xff]  ;;  %v704_v49 = vld [vmem:[%s4767_s7 + $0x708] sm:$0xff] }
 0x211   : > { %v2989_v0 = vadd.f32 %v2988_v56, %v2734_v51  ;;  %v951_v51 = vsub.f32 %v439_v38, %v695_v39  ;;  %v1467_v56 = vadd.s32 1744, %v4775_v2  ;;  %v1206_v60 = vmul.f32 %v950_v43, %v950_v43 }
 0x212   : > { %v1723_v1 = vadd.s32 %v4783_v8, %v1466_v48  ;;  %v2744_v6 = vsel %vm1976_vm6, %v1205_v52, 0.0  ;;  %vm1978_vm8 = vcmp.lt.s32.totalorder %v1722_v57, 3072  ;;  %v448_v48 = vld [vmem:[%s4761_s26 + $0x708] sm:$0xff]  ;;  %v705_v57 = vld [vmem:[%s4767_s7 + $0x710] sm:$0xff] }
 0x213   : > { %v2990_v10 = vadd.f32 %v2989_v0, %v2735_v59  ;;  %v952_v59 = vsub.f32 %v440_v46, %v696_v47  ;;  %v1468_v0 = vadd.s32 1752, %v4775_v2  ;;  %v1207_v5 = vmul.f32 %v951_v51, %v951_v51 }
 0x214   : > { %v1724_v11 = vadd.s32 %v4783_v8, %v1467_v56  ;;  %v2745_v15 = vsel %vm1977_vm7, %v1206_v60, 0.0  ;;  %vm1979_vm9 = vcmp.lt.s32.totalorder %v1723_v1, 3072  ;;  %v449_v56 = vld [vmem:[%s4761_s26 + $0x710] sm:$0xff]  ;;  %v706_v1 = vld [vmem:[%s4767_s7 + $0x718] sm:$0xff] }
 0x215   : > { %v2991_v18 = vadd.f32 %v2990_v10, %v2736_v4  ;;  %v953_v4 = vsub.f32 %v441_v54, %v697_v55  ;;  %v1469_v10 = vadd.s32 1760, %v4775_v2  ;;  %v1208_v14 = vmul.f32 %v952_v59, %v952_v59 }
 0x216   : > { %v1725_v19 = vadd.s32 %v4783_v8, %v1468_v0  ;;  %v2746_v23 = vsel %vm1978_vm8, %v1207_v5, 0.0  ;;  %vm1980_vm10 = vcmp.lt.s32.totalorder %v1724_v11, 3072  ;;  %v450_v0 = vld [vmem:[%s4761_s26 + $0x718] sm:$0xff]  ;;  %v707_v11 = vld [vmem:[%s4767_s7 + $0x720] sm:$0xff] }
 0x217   : > { %v2992_v26 = vadd.f32 %v2991_v18, %v2737_v13  ;;  %v954_v13 = vsub.f32 %v442_v62, %v698_v63  ;;  %v1470_v18 = vadd.s32 1768, %v4775_v2  ;;  %v1209_v22 = vmul.f32 %v953_v4, %v953_v4 }
 0x218   : > { %v1726_v27 = vadd.s32 %v4783_v8, %v1469_v10  ;;  %v2747_v31 = vsel %vm1979_vm9, %v1208_v14, 0.0  ;;  %vm1981_vm11 = vcmp.lt.s32.totalorder %v1725_v19, 3072  ;;  %v451_v10 = vld [vmem:[%s4761_s26 + $0x720] sm:$0xff]  ;;  %v708_v19 = vld [vmem:[%s4767_s7 + $0x728] sm:$0xff] }
 0x219   : > { %v2993_v34 = vadd.f32 %v2992_v26, %v2738_v21  ;;  %v955_v21 = vsub.f32 %v443_v7, %v699_v9  ;;  %v1471_v26 = vadd.s32 1776, %v4775_v2  ;;  %v1210_v30 = vmul.f32 %v954_v13, %v954_v13 }
 0x21a   : > { %v1727_v35 = vadd.s32 %v4783_v8, %v1470_v18  ;;  %v2748_v39 = vsel %vm1980_vm10, %v1209_v22, 0.0  ;;  %vm1982_vm12 = vcmp.lt.s32.totalorder %v1726_v27, 3072  ;;  %v452_v18 = vld [vmem:[%s4761_s26 + $0x728] sm:$0xff]  ;;  %v709_v27 = vld [vmem:[%s4767_s7 + $0x730] sm:$0xff] }
 0x21b   : > { %v2994_v42 = vadd.f32 %v2993_v34, %v2739_v29  ;;  %v956_v29 = vsub.f32 %v444_v16, %v700_v17  ;;  %v1472_v34 = vadd.s32 1784, %v4775_v2  ;;  %v1211_v38 = vmul.f32 %v955_v21, %v955_v21 }
 0x21c   : > { %v1728_v43 = vadd.s32 %v4783_v8, %v1471_v26  ;;  %v2749_v47 = vsel %vm1981_vm11, %v1210_v30, 0.0  ;;  %vm1983_vm13 = vcmp.lt.s32.totalorder %v1727_v35, 3072  ;;  %v453_v26 = vld [vmem:[%s4761_s26 + $0x730] sm:$0xff]  ;;  %v710_v35 = vld [vmem:[%s4767_s7 + $0x738] sm:$0xff] }
 0x21d   : > { %v2995_v50 = vadd.f32 %v2994_v42, %v2740_v37  ;;  %v957_v37 = vsub.f32 %v445_v24, %v701_v25  ;;  %v1473_v42 = vadd.s32 1792, %v4775_v2  ;;  %v1212_v46 = vmul.f32 %v956_v29, %v956_v29 }
 0x21e   : > { %v1729_v51 = vadd.s32 %v4783_v8, %v1472_v34  ;;  %v2750_v55 = vsel %vm1982_vm12, %v1211_v38, 0.0  ;;  %vm1984_vm14 = vcmp.lt.s32.totalorder %v1728_v43, 3072  ;;  %v454_v34 = vld [vmem:[%s4761_s26 + $0x738] sm:$0xff]  ;;  %v711_v43 = vld [vmem:[%s4767_s7 + $0x740] sm:$0xff] }
 0x21f   : > { %v2996_v58 = vadd.f32 %v2995_v50, %v2741_v45  ;;  %v958_v45 = vsub.f32 %v446_v32, %v702_v33  ;;  %v1474_v50 = vadd.s32 1800, %v4775_v2  ;;  %v1213_v54 = vmul.f32 %v957_v37, %v957_v37 }
 0x220   : > { %v1730_v59 = vadd.s32 %v4783_v8, %v1473_v42  ;;  %v2751_v63 = vsel %vm1983_vm13, %v1212_v46, 0.0  ;;  %vm1985_vm15 = vcmp.lt.s32.totalorder %v1729_v51, 3072  ;;  %v455_v42 = vld [vmem:[%s4761_s26 + $0x740] sm:$0xff]  ;;  %v712_v51 = vld [vmem:[%s4767_s7 + $0x748] sm:$0xff] }
 0x221   : > { %v2997_v3 = vadd.f32 %v2996_v58, %v2742_v53  ;;  %v959_v53 = vsub.f32 %v447_v40, %v703_v41  ;;  %v1475_v58 = vadd.s32 1808, %v4775_v2  ;;  %v1214_v62 = vmul.f32 %v958_v45, %v958_v45 }
 0x222   : > { %v1731_v4 = vadd.s32 %v4783_v8, %v1474_v50  ;;  %v2752_v9 = vsel %vm1984_vm14, %v1213_v54, 0.0  ;;  %vm1986_vm0 = vcmp.lt.s32.totalorder %v1730_v59, 3072  ;;  %v456_v50 = vld [vmem:[%s4761_s26 + $0x748] sm:$0xff]  ;;  %v713_v59 = vld [vmem:[%s4767_s7 + $0x750] sm:$0xff] }
 0x223   : > { %v2998_v12 = vadd.f32 %v2997_v3, %v2743_v61  ;;  %v960_v61 = vsub.f32 %v448_v48, %v704_v49  ;;  %v1476_v3 = vadd.s32 1816, %v4775_v2  ;;  %v1215_v7 = vmul.f32 %v959_v53, %v959_v53 }
 0x224   : > { %v1732_v13 = vadd.s32 %v4783_v8, %v1475_v58  ;;  %v2753_v17 = vsel %vm1985_vm15, %v1214_v62, 0.0  ;;  %vm1987_vm1 = vcmp.lt.s32.totalorder %v1731_v4, 3072  ;;  %v457_v58 = vld [vmem:[%s4761_s26 + $0x750] sm:$0xff]  ;;  %v714_v4 = vld [vmem:[%s4767_s7 + $0x758] sm:$0xff] }
 0x225   : > { %v2999_v20 = vadd.f32 %v2998_v12, %v2744_v6  ;;  %v961_v6 = vsub.f32 %v449_v56, %v705_v57  ;;  %v1477_v12 = vadd.s32 1824, %v4775_v2  ;;  %v1216_v16 = vmul.f32 %v960_v61, %v960_v61 }
 0x226   : > { %v1733_v21 = vadd.s32 %v4783_v8, %v1476_v3  ;;  %v2754_v25 = vsel %vm1986_vm0, %v1215_v7, 0.0  ;;  %vm1988_vm2 = vcmp.lt.s32.totalorder %v1732_v13, 3072  ;;  %v458_v3 = vld [vmem:[%s4761_s26 + $0x758] sm:$0xff]  ;;  %v715_v13 = vld [vmem:[%s4767_s7 + $0x760] sm:$0xff] }
 0x227   : > { %v3000_v28 = vadd.f32 %v2999_v20, %v2745_v15  ;;  %v962_v15 = vsub.f32 %v450_v0, %v706_v1  ;;  %v1478_v20 = vadd.s32 1832, %v4775_v2  ;;  %v1217_v24 = vmul.f32 %v961_v6, %v961_v6 }
 0x228   : > { %v1734_v29 = vadd.s32 %v4783_v8, %v1477_v12  ;;  %v2755_v33 = vsel %vm1987_vm1, %v1216_v16, 0.0  ;;  %vm1989_vm3 = vcmp.lt.s32.totalorder %v1733_v21, 3072  ;;  %v459_v12 = vld [vmem:[%s4761_s26 + $0x760] sm:$0xff]  ;;  %v716_v21 = vld [vmem:[%s4767_s7 + $0x768] sm:$0xff] }
 0x229   : > { %v3001_v36 = vadd.f32 %v3000_v28, %v2746_v23  ;;  %v963_v23 = vsub.f32 %v451_v10, %v707_v11  ;;  %v1479_v28 = vadd.s32 1840, %v4775_v2  ;;  %v1218_v32 = vmul.f32 %v962_v15, %v962_v15 }
 0x22a   : > { %v1735_v37 = vadd.s32 %v4783_v8, %v1478_v20  ;;  %v2756_v41 = vsel %vm1988_vm2, %v1217_v24, 0.0  ;;  %vm1990_vm4 = vcmp.lt.s32.totalorder %v1734_v29, 3072  ;;  %v460_v20 = vld [vmem:[%s4761_s26 + $0x768] sm:$0xff]  ;;  %v717_v29 = vld [vmem:[%s4767_s7 + $0x770] sm:$0xff] }
 0x22b   : > { %v3002_v44 = vadd.f32 %v3001_v36, %v2747_v31  ;;  %v964_v31 = vsub.f32 %v452_v18, %v708_v19  ;;  %v1480_v36 = vadd.s32 1848, %v4775_v2  ;;  %v1219_v40 = vmul.f32 %v963_v23, %v963_v23 }
 0x22c   : > { %v1736_v45 = vadd.s32 %v4783_v8, %v1479_v28  ;;  %v2757_v49 = vsel %vm1989_vm3, %v1218_v32, 0.0  ;;  %vm1991_vm5 = vcmp.lt.s32.totalorder %v1735_v37, 3072  ;;  %v461_v28 = vld [vmem:[%s4761_s26 + $0x770] sm:$0xff]  ;;  %v718_v37 = vld [vmem:[%s4767_s7 + $0x778] sm:$0xff] }
 0x22d   : > { %v3003_v52 = vadd.f32 %v3002_v44, %v2748_v39  ;;  %v965_v39 = vsub.f32 %v453_v26, %v709_v27  ;;  %v1481_v44 = vadd.s32 1856, %v4775_v2  ;;  %v1220_v48 = vmul.f32 %v964_v31, %v964_v31 }
 0x22e   : > { %v1737_v53 = vadd.s32 %v4783_v8, %v1480_v36  ;;  %v2758_v57 = vsel %vm1990_vm4, %v1219_v40, 0.0  ;;  %vm1992_vm6 = vcmp.lt.s32.totalorder %v1736_v45, 3072  ;;  %v462_v36 = vld [vmem:[%s4761_s26 + $0x778] sm:$0xff]  ;;  %v719_v45 = vld [vmem:[%s4767_s7 + $0x780] sm:$0xff] }
 0x22f   : > { %v3004_v60 = vadd.f32 %v3003_v52, %v2749_v47  ;;  %v966_v47 = vsub.f32 %v454_v34, %v710_v35  ;;  %v1482_v52 = vadd.s32 1864, %v4775_v2  ;;  %v1221_v56 = vmul.f32 %v965_v39, %v965_v39 }
 0x230   : > { %v1738_v61 = vadd.s32 %v4783_v8, %v1481_v44  ;;  %v2759_v1 = vsel %vm1991_vm5, %v1220_v48, 0.0  ;;  %vm1993_vm7 = vcmp.lt.s32.totalorder %v1737_v53, 3072  ;;  %v463_v44 = vld [vmem:[%s4761_s26 + $0x780] sm:$0xff]  ;;  %v720_v53 = vld [vmem:[%s4767_s7 + $0x788] sm:$0xff] }
 0x231   : > { %v3005_v5 = vadd.f32 %v3004_v60, %v2750_v55  ;;  %v967_v55 = vsub.f32 %v455_v42, %v711_v43  ;;  %v1483_v60 = vadd.s32 1872, %v4775_v2  ;;  %v1222_v0 = vmul.f32 %v966_v47, %v966_v47 }
 0x232   : > { %v1739_v6 = vadd.s32 %v4783_v8, %v1482_v52  ;;  %v2760_v11 = vsel %vm1992_vm6, %v1221_v56, 0.0  ;;  %vm1994_vm8 = vcmp.lt.s32.totalorder %v1738_v61, 3072  ;;  %v464_v52 = vld [vmem:[%s4761_s26 + $0x788] sm:$0xff]  ;;  %v721_v61 = vld [vmem:[%s4767_s7 + $0x790] sm:$0xff] }
 0x233   : > { %v3006_v14 = vadd.f32 %v3005_v5, %v2751_v63  ;;  %v968_v63 = vsub.f32 %v456_v50, %v712_v51  ;;  %v1484_v5 = vadd.s32 1880, %v4775_v2  ;;  %v1223_v10 = vmul.f32 %v967_v55, %v967_v55 }
 0x234   : > { %v1740_v15 = vadd.s32 %v4783_v8, %v1483_v60  ;;  %v2761_v19 = vsel %vm1993_vm7, %v1222_v0, 0.0  ;;  %vm1995_vm9 = vcmp.lt.s32.totalorder %v1739_v6, 3072  ;;  %v465_v60 = vld [vmem:[%s4761_s26 + $0x790] sm:$0xff]  ;;  %v722_v6 = vld [vmem:[%s4767_s7 + $0x798] sm:$0xff] }
 0x235   : > { %v3007_v22 = vadd.f32 %v3006_v14, %v2752_v9  ;;  %v969_v9 = vsub.f32 %v457_v58, %v713_v59  ;;  %v1485_v14 = vadd.s32 1888, %v4775_v2  ;;  %v1224_v18 = vmul.f32 %v968_v63, %v968_v63 }
 0x236   : > { %v1741_v23 = vadd.s32 %v4783_v8, %v1484_v5  ;;  %v2762_v27 = vsel %vm1994_vm8, %v1223_v10, 0.0  ;;  %vm1996_vm10 = vcmp.lt.s32.totalorder %v1740_v15, 3072  ;;  %v466_v5 = vld [vmem:[%s4761_s26 + $0x798] sm:$0xff]  ;;  %v723_v15 = vld [vmem:[%s4767_s7 + $0x7a0] sm:$0xff] }
 0x237   : > { %v3008_v30 = vadd.f32 %v3007_v22, %v2753_v17  ;;  %v970_v17 = vsub.f32 %v458_v3, %v714_v4  ;;  %v1486_v22 = vadd.s32 1896, %v4775_v2  ;;  %v1225_v26 = vmul.f32 %v969_v9, %v969_v9 }
 0x238   : > { %v1742_v31 = vadd.s32 %v4783_v8, %v1485_v14  ;;  %v2763_v35 = vsel %vm1995_vm9, %v1224_v18, 0.0  ;;  %vm1997_vm11 = vcmp.lt.s32.totalorder %v1741_v23, 3072  ;;  %v467_v14 = vld [vmem:[%s4761_s26 + $0x7a0] sm:$0xff]  ;;  %v724_v23 = vld [vmem:[%s4767_s7 + $0x7a8] sm:$0xff] }
 0x239   : > { %v3009_v38 = vadd.f32 %v3008_v30, %v2754_v25  ;;  %v971_v25 = vsub.f32 %v459_v12, %v715_v13  ;;  %v1487_v30 = vadd.s32 1904, %v4775_v2  ;;  %v1226_v34 = vmul.f32 %v970_v17, %v970_v17 }
 0x23a   : > { %v1743_v39 = vadd.s32 %v4783_v8, %v1486_v22  ;;  %v2764_v43 = vsel %vm1996_vm10, %v1225_v26, 0.0  ;;  %vm1998_vm12 = vcmp.lt.s32.totalorder %v1742_v31, 3072  ;;  %v468_v22 = vld [vmem:[%s4761_s26 + $0x7a8] sm:$0xff]  ;;  %v725_v31 = vld [vmem:[%s4767_s7 + $0x7b0] sm:$0xff] }
 0x23b   : > { %v3010_v46 = vadd.f32 %v3009_v38, %v2755_v33  ;;  %v972_v33 = vsub.f32 %v460_v20, %v716_v21  ;;  %v1488_v38 = vadd.s32 1912, %v4775_v2  ;;  %v1227_v42 = vmul.f32 %v971_v25, %v971_v25 }
 0x23c   : > { %v1744_v47 = vadd.s32 %v4783_v8, %v1487_v30  ;;  %v2765_v51 = vsel %vm1997_vm11, %v1226_v34, 0.0  ;;  %vm1999_vm13 = vcmp.lt.s32.totalorder %v1743_v39, 3072  ;;  %v469_v30 = vld [vmem:[%s4761_s26 + $0x7b0] sm:$0xff]  ;;  %v726_v39 = vld [vmem:[%s4767_s7 + $0x7b8] sm:$0xff] }
 0x23d   : > { %v3011_v54 = vadd.f32 %v3010_v46, %v2756_v41  ;;  %v973_v41 = vsub.f32 %v461_v28, %v717_v29  ;;  %v1489_v46 = vadd.s32 1920, %v4775_v2  ;;  %v1228_v50 = vmul.f32 %v972_v33, %v972_v33 }
 0x23e   : > { %v1745_v55 = vadd.s32 %v4783_v8, %v1488_v38  ;;  %v2766_v59 = vsel %vm1998_vm12, %v1227_v42, 0.0  ;;  %vm2000_vm14 = vcmp.lt.s32.totalorder %v1744_v47, 3072  ;;  %v470_v38 = vld [vmem:[%s4761_s26 + $0x7b8] sm:$0xff]  ;;  %v727_v47 = vld [vmem:[%s4767_s7 + $0x7c0] sm:$0xff] }
 0x23f   : > { %v3012_v62 = vadd.f32 %v3011_v54, %v2757_v49  ;;  %v974_v49 = vsub.f32 %v462_v36, %v718_v37  ;;  %v1490_v54 = vadd.s32 1928, %v4775_v2  ;;  %v1229_v58 = vmul.f32 %v973_v41, %v973_v41 }
 0x240   : > { %v1746_v63 = vadd.s32 %v4783_v8, %v1489_v46  ;;  %v2767_v4 = vsel %vm1999_vm13, %v1228_v50, 0.0  ;;  %vm2001_vm15 = vcmp.lt.s32.totalorder %v1745_v55, 3072  ;;  %v471_v46 = vld [vmem:[%s4761_s26 + $0x7c0] sm:$0xff]  ;;  %v728_v55 = vld [vmem:[%s4767_s7 + $0x7c8] sm:$0xff] }
 0x241   : > { %v3013_v7 = vadd.f32 %v3012_v62, %v2758_v57  ;;  %v975_v57 = vsub.f32 %v463_v44, %v719_v45  ;;  %v1491_v62 = vadd.s32 1936, %v4775_v2  ;;  %v1230_v3 = vmul.f32 %v974_v49, %v974_v49 }
 0x242   : > { %v1747_v9 = vadd.s32 %v4783_v8, %v1490_v54  ;;  %v2768_v13 = vsel %vm2000_vm14, %v1229_v58, 0.0  ;;  %vm2002_vm0 = vcmp.lt.s32.totalorder %v1746_v63, 3072  ;;  %v472_v54 = vld [vmem:[%s4761_s26 + $0x7c8] sm:$0xff]  ;;  %v729_v63 = vld [vmem:[%s4767_s7 + $0x7d0] sm:$0xff] }
 0x243   : > { %v3014_v16 = vadd.f32 %v3013_v7, %v2759_v1  ;;  %v976_v1 = vsub.f32 %v464_v52, %v720_v53  ;;  %v1492_v7 = vadd.s32 1944, %v4775_v2  ;;  %v1231_v12 = vmul.f32 %v975_v57, %v975_v57 }
 0x244   : > { %v1748_v17 = vadd.s32 %v4783_v8, %v1491_v62  ;;  %v2769_v21 = vsel %vm2001_vm15, %v1230_v3, 0.0  ;;  %vm2003_vm1 = vcmp.lt.s32.totalorder %v1747_v9, 3072  ;;  %v473_v62 = vld [vmem:[%s4761_s26 + $0x7d0] sm:$0xff]  ;;  %v730_v9 = vld [vmem:[%s4767_s7 + $0x7d8] sm:$0xff] }
 0x245   : > { %v3015_v24 = vadd.f32 %v3014_v16, %v2760_v11  ;;  %v977_v11 = vsub.f32 %v465_v60, %v721_v61  ;;  %v1493_v16 = vadd.s32 1952, %v4775_v2  ;;  %v1232_v20 = vmul.f32 %v976_v1, %v976_v1 }
 0x246   : > { %v1749_v25 = vadd.s32 %v4783_v8, %v1492_v7  ;;  %v2770_v29 = vsel %vm2002_vm0, %v1231_v12, 0.0  ;;  %vm2004_vm2 = vcmp.lt.s32.totalorder %v1748_v17, 3072  ;;  %v474_v7 = vld [vmem:[%s4761_s26 + $0x7d8] sm:$0xff]  ;;  %v731_v17 = vld [vmem:[%s4767_s7 + $0x7e0] sm:$0xff] }
 0x247   : > { %v3016_v32 = vadd.f32 %v3015_v24, %v2761_v19  ;;  %v978_v19 = vsub.f32 %v466_v5, %v722_v6  ;;  %v1494_v24 = vadd.s32 1960, %v4775_v2  ;;  %v1233_v28 = vmul.f32 %v977_v11, %v977_v11 }
 0x248   : > { %v1750_v33 = vadd.s32 %v4783_v8, %v1493_v16  ;;  %v2771_v37 = vsel %vm2003_vm1, %v1232_v20, 0.0  ;;  %vm2005_vm3 = vcmp.lt.s32.totalorder %v1749_v25, 3072  ;;  %v475_v16 = vld [vmem:[%s4761_s26 + $0x7e0] sm:$0xff]  ;;  %v732_v25 = vld [vmem:[%s4767_s7 + $0x7e8] sm:$0xff] }
 0x249   : > { %v3017_v40 = vadd.f32 %v3016_v32, %v2762_v27  ;;  %v979_v27 = vsub.f32 %v467_v14, %v723_v15  ;;  %v1495_v32 = vadd.s32 1968, %v4775_v2  ;;  %v1234_v36 = vmul.f32 %v978_v19, %v978_v19 }
 0x24a   : > { %v1751_v41 = vadd.s32 %v4783_v8, %v1494_v24  ;;  %v2772_v45 = vsel %vm2004_vm2, %v1233_v28, 0.0  ;;  %vm2006_vm4 = vcmp.lt.s32.totalorder %v1750_v33, 3072  ;;  %v476_v24 = vld [vmem:[%s4761_s26 + $0x7e8] sm:$0xff]  ;;  %v733_v33 = vld [vmem:[%s4767_s7 + $0x7f0] sm:$0xff] }
 0x24b   : > { %v3018_v48 = vadd.f32 %v3017_v40, %v2763_v35  ;;  %v980_v35 = vsub.f32 %v468_v22, %v724_v23  ;;  %v1496_v40 = vadd.s32 1976, %v4775_v2  ;;  %v1235_v44 = vmul.f32 %v979_v27, %v979_v27 }
 0x24c   : > { %v1752_v49 = vadd.s32 %v4783_v8, %v1495_v32  ;;  %v2773_v53 = vsel %vm2005_vm3, %v1234_v36, 0.0  ;;  %vm2007_vm5 = vcmp.lt.s32.totalorder %v1751_v41, 3072  ;;  %v477_v32 = vld [vmem:[%s4761_s26 + $0x7f0] sm:$0xff]  ;;  %v734_v41 = vld [vmem:[%s4767_s7 + $0x7f8] sm:$0xff] }
 0x24d   : > { %v3019_v56 = vadd.f32 %v3018_v48, %v2764_v43  ;;  %v981_v43 = vsub.f32 %v469_v30, %v725_v31  ;;  %v1497_v48 = vadd.s32 1984, %v4775_v2  ;;  %v1236_v52 = vmul.f32 %v980_v35, %v980_v35 }
 0x24e   : > { %v1753_v57 = vadd.s32 %v4783_v8, %v1496_v40  ;;  %v2774_v61 = vsel %vm2006_vm4, %v1235_v44, 0.0  ;;  %vm2008_vm6 = vcmp.lt.s32.totalorder %v1752_v49, 3072  ;;  %v478_v40 = vld [vmem:[%s4761_s26 + $0x7f8] sm:$0xff] }
 0x24f   : > { %v3020_v0 = vadd.f32 %v3019_v56, %v2765_v51  ;;  %v982_v51 = vsub.f32 %v470_v38, %v726_v39  ;;  %v1498_v56 = vadd.s32 1992, %v4775_v2  ;;  %v1237_v60 = vmul.f32 %v981_v43, %v981_v43 }
 0x250   : > { %v1754_v1 = vadd.s32 %v4783_v8, %v1497_v48  ;;  %v2775_v6 = vsel %vm2007_vm5, %v1236_v52, 0.0  ;;  %vm2009_vm7 = vcmp.lt.s32.totalorder %v1753_v57, 3072 }
 0x251   : > { %v3021_v10 = vadd.f32 %v3020_v0, %v2766_v59  ;;  %v983_v59 = vsub.f32 %v471_v46, %v727_v47  ;;  %v1499_v0 = vadd.s32 2000, %v4775_v2  ;;  %v1238_v5 = vmul.f32 %v982_v51, %v982_v51 }
 0x252   : > { %v1755_v11 = vadd.s32 %v4783_v8, %v1498_v56  ;;  %v2776_v15 = vsel %vm2008_vm6, %v1237_v60, 0.0  ;;  %vm2010_vm8 = vcmp.lt.s32.totalorder %v1754_v1, 3072 }
 0x253   : > { %v3022_v18 = vadd.f32 %v3021_v10, %v2767_v4  ;;  %v984_v4 = vsub.f32 %v472_v54, %v728_v55  ;;  %v1500_v10 = vadd.s32 2008, %v4775_v2  ;;  %v1239_v14 = vmul.f32 %v983_v59, %v983_v59 }
 0x254   : > { %v1756_v19 = vadd.s32 %v4783_v8, %v1499_v0  ;;  %v2777_v23 = vsel %vm2009_vm7, %v1238_v5, 0.0  ;;  %vm2011_vm9 = vcmp.lt.s32.totalorder %v1755_v11, 3072  ;;  %v222_v0 = vld [vmem:[#allocation7] sm:$0xff] }
 0x255   : > { %v3023_v26 = vadd.f32 %v3022_v18, %v2768_v13  ;;  %v985_v13 = vsub.f32 %v473_v62, %v729_v63  ;;  %v1501_v18 = vadd.s32 2016, %v4775_v2  ;;  %v1240_v22 = vmul.f32 %v984_v4, %v984_v4 }
 0x256   : > { %v1757_v27 = vadd.s32 %v4783_v8, %v1500_v10  ;;  %v2778_v31 = vsel %vm2010_vm8, %v1239_v14, 0.0  ;;  %vm2012_vm10 = vcmp.lt.s32.totalorder %v1756_v19, 3072 }
 0x257   : > { %v3024_v34 = vadd.f32 %v3023_v26, %v2769_v21  ;;  %v986_v21 = vsub.f32 %v474_v7, %v730_v9  ;;  %v1502_v26 = vadd.s32 2024, %v4775_v2  ;;  %v1241_v30 = vmul.f32 %v985_v13, %v985_v13 }
 0x258   : > { %v1758_v35 = vadd.s32 %v4783_v8, %v1501_v18  ;;  %v2779_v39 = vsel %vm2011_vm9, %v1240_v22, 0.0  ;;  %vm2013_vm11 = vcmp.lt.s32.totalorder %v1757_v27, 3072 }
 0x259   : > { %v3025_v42 = vadd.f32 %v3024_v34, %v2770_v29  ;;  %v987_v29 = vsub.f32 %v475_v16, %v731_v17  ;;  %v1503_v34 = vadd.s32 2032, %v4775_v2  ;;  %v1242_v38 = vmul.f32 %v986_v21, %v986_v21 }
 0x25a   : > { %v1759_v43 = vadd.s32 %v4783_v8, %v1502_v26  ;;  %v2780_v47 = vsel %vm2012_vm10, %v1241_v30, 0.0  ;;  %vm2014_vm12 = vcmp.lt.s32.totalorder %v1758_v35, 3072 }
 0x25b   : > { %v3026_v50 = vadd.f32 %v3025_v42, %v2771_v37  ;;  %v988_v37 = vsub.f32 %v476_v24, %v732_v25  ;;  %v1504_v42 = vadd.s32 2040, %v4775_v2  ;;  %v1243_v46 = vmul.f32 %v987_v29, %v987_v29 }
 0x25c   : > { %v1760_v48 = vadd.s32 %v4783_v8, %v1503_v34  ;;  %v2781_v52 = vsel %vm2013_vm11, %v1242_v38, 0.0  ;;  %vm2015_vm13 = vcmp.lt.s32.totalorder %v1759_v43, 3072 }
 0x25d   : > { %v3027_v58 = vadd.f32 %v3026_v50, %v2772_v45  ;;  %v989_v45 = vsub.f32 %v477_v32, %v733_v33  ;;  %v990_v50 = vsub.f32 %v478_v40, %v734_v41  ;;  %v1244_v51 = vmul.f32 %v988_v37, %v988_v37 }
 0x25e   : > { %v2782_v2 = vsel %vm2014_vm12, %v1243_v46, 0.0  ;;  %vm2016_vm14 = vcmp.lt.s32.totalorder %v1760_v48, 3072 }
 0x25f   : > { %v3028_v3 = vadd.f32 %v3027_v58, %v2773_v53  ;;  %v1761_v53 = vadd.s32 %v4783_v8, %v1504_v42  ;;  %v1245_v55 = vmul.f32 %v989_v45, %v989_v45  ;;  %v1246_v57 = vmul.f32 %v990_v50, %v990_v50 }
 0x260   : > { %v2783_v58 = vsel %vm2015_vm13, %v1244_v51, 0.0 }
 0x261   : > { %v3029_v12 = vadd.f32 %v3028_v3, %v2774_v61  ;;  %vm2017_vm15 = vcmp.lt.s32.totalorder %v1761_v53, 3072  ;;  %v2784_v60 = vsel %vm2016_vm14, %v1245_v55, 0.0 }
 0x262   : > { %v2785_v62 = vsel %vm2017_vm15, %v1246_v57, 0.0 }
 0x263   : > { %v3030_v20 = vadd.f32 %v3029_v12, %v2775_v6 }
 0x265   : > { %v3031_v28 = vadd.f32 %v3030_v20, %v2776_v15 }
 0x267   : > { %v3032_v36 = vadd.f32 %v3031_v28, %v2777_v23 }
 0x269   : > { %v3033_v44 = vadd.f32 %v3032_v36, %v2778_v31 }
 0x26b   : > { %v3034_v49 = vadd.f32 %v3033_v44, %v2779_v39 }
 0x26d   : > { %v3035_v54 = vadd.f32 %v3034_v49, %v2780_v47 }
 0x26f   : > { %v3036_v56 = vadd.f32 %v3035_v54, %v2781_v52 }
 0x271   : > { %v3037_v59 = vadd.f32 %v3036_v56, %v2782_v2 }
 0x273   : > { %v3038_v61 = vadd.f32 %v3037_v59, %v2783_v58 }
 0x275   : > { %v3039_v63 = vadd.f32 %v3038_v61, %v2784_v60 }
 0x277   : > { %v3040_v1 = vadd.f32 %v3039_v63, %v2785_v62 }
 0x279   : > { %v3041_v3 = vadd.f32 %v3040_v1, %v222_v0 }
 0x27b   : > { %3042 = vst [vmem:[#allocation7] sm:$0xff] %v3041_v3 }
 0x27c PF: > { %p4432_p6 = scmp.eq.s32.totalorder %s4647_s13, 1 }
 0x27e   : > { %3046 = sbr.rel (%p4432_p6) target bundleno = 1162 (0x48a), region = 48 }
 0x283   : > { %v3048_v8 = vld [vmem:[%s4761_s26] sm:$0xff]  ;;  %v3049_v4 = vld [vmem:[%s4761_s26 + $0x8] sm:$0xff]  ;;  %v3050_v7 = vld [vmem:[%s4761_s26 + $0x10] sm:$0xff] }
 0x284   : > { %v3304_v5 = vld [vmem:[%s4767_s7] sm:$0xff]  ;;  %v3305_v6 = vld [vmem:[%s4767_s7 + $0x8] sm:$0xff]  ;;  %v3306_v9 = vld [vmem:[%s4767_s7 + $0x10] sm:$0xff] }
 0x285   : > { %v3560_v10 = vsub.f32 %v3048_v8, %v3304_v5  ;;  %v3561_v11 = vsub.f32 %v3049_v4, %v3305_v6  ;;  %v3051_v12 = vld [vmem:[%s4761_s26 + $0x18] sm:$0xff]  ;;  %v3562_v14 = vsub.f32 %v3050_v7, %v3306_v9  ;;  %v3052_v15 = vld [vmem:[%s4761_s26 + $0x20] sm:$0xff]  ;;  %v3053_v20 = vld [vmem:[%s4761_s26 + $0x28] sm:$0xff] }
 0x286   : > { %v3307_v13 = vld [vmem:[%s4767_s7 + $0x18] sm:$0xff]  ;;  %v3308_v16 = vld [vmem:[%s4767_s7 + $0x20] sm:$0xff]  ;;  %v3309_v21 = vld [vmem:[%s4767_s7 + $0x28] sm:$0xff] }
 0x287   : > { %v3563_v17 = vsub.f32 %v3051_v12, %v3307_v13  ;;  %v3816_v18 = vmul.f32 %v3560_v10, %v3560_v10  ;;  %v3817_v19 = vmul.f32 %v3561_v11, %v3561_v11  ;;  %v3564_v22 = vsub.f32 %v3052_v15, %v3308_v16  ;;  %v3054_v24 = vld [vmem:[%s4761_s26 + $0x30] sm:$0xff]  ;;  %v3055_v29 = vld [vmem:[%s4761_s26 + $0x38] sm:$0xff]  ;;  %v3056_v34 = vld [vmem:[%s4761_s26 + $0x40] sm:$0xff] }
 0x288   : > { %v3818_v23 = vmul.f32 %v3562_v14, %v3562_v14  ;;  %v3310_v25 = vld [vmem:[%s4767_s7 + $0x30] sm:$0xff]  ;;  %v3565_v26 = vsub.f32 %v3053_v20, %v3309_v21  ;;  %v3311_v30 = vld [vmem:[%s4767_s7 + $0x38] sm:$0xff]  ;;  %v3312_v35 = vld [vmem:[%s4767_s7 + $0x40] sm:$0xff] }
 0x289   : > { %v3819_v27 = vmul.f32 %v3563_v17, %v3563_v17  ;;  %v4072_v28 = vadd.f32 %v3817_v19, %v3816_v18  ;;  %v3566_v31 = vsub.f32 %v3054_v24, %v3310_v25  ;;  %v3820_v32 = vmul.f32 %v3564_v22, %v3564_v22  ;;  %v3057_v39 = vld [vmem:[%s4761_s26 + $0x48] sm:$0xff]  ;;  %v3058_v44 = vld [vmem:[%s4761_s26 + $0x50] sm:$0xff]  ;;  %v3059_v49 = vld [vmem:[%s4761_s26 + $0x58] sm:$0xff] }
 0x28a   : > { %v3567_v36 = vsub.f32 %v3055_v29, %v3311_v30  ;;  %v3821_v37 = vmul.f32 %v3565_v26, %v3565_v26  ;;  %v3313_v40 = vld [vmem:[%s4767_s7 + $0x48] sm:$0xff]  ;;  %v3568_v41 = vsub.f32 %v3056_v34, %v3312_v35  ;;  %v3314_v45 = vld [vmem:[%s4767_s7 + $0x50] sm:$0xff]  ;;  %v3315_v50 = vld [vmem:[%s4767_s7 + $0x58] sm:$0xff] }
 0x28b   : > { %v4073_v33 = vadd.f32 %v4072_v28, %v3818_v23  ;;  %v3822_v42 = vmul.f32 %v3566_v31, %v3566_v31  ;;  %v3569_v46 = vsub.f32 %v3057_v39, %v3313_v40  ;;  %v3570_v51 = vsub.f32 %v3058_v44, %v3314_v45  ;;  %v3060_v54 = vld [vmem:[%s4761_s26 + $0x60] sm:$0xff]  ;;  %v3061_v58 = vld [vmem:[%s4761_s26 + $0x68] sm:$0xff]  ;;  %v3062_v63 = vld [vmem:[%s4761_s26 + $0x70] sm:$0xff] }
 0x28c   : > { %v3823_v47 = vmul.f32 %v3567_v36, %v3567_v36  ;;  %v3824_v52 = vmul.f32 %v3568_v41, %v3568_v41  ;;  %v3316_v55 = vld [vmem:[%s4767_s7 + $0x60] sm:$0xff]  ;;  %v3571_v2 = vsub.f32 %v3059_v49, %v3315_v50  ;;  %v3317_v59 = vld [vmem:[%s4767_s7 + $0x68] sm:$0xff]  ;;  %v3318_v0 = vld [vmem:[%s4767_s7 + $0x70] sm:$0xff] }
 0x28d   : > { %v4074_v38 = vadd.f32 %v4073_v33, %v3819_v27  ;;  %v3825_v56 = vmul.f32 %v3569_v46, %v3569_v46  ;;  %v3572_v60 = vsub.f32 %v3060_v54, %v3316_v55  ;;  %v3826_v61 = vmul.f32 %v3570_v51, %v3570_v51  ;;  %v3063_v4 = vld [vmem:[%s4761_s26 + $0x78] sm:$0xff]  ;;  %v3064_v10 = vld [vmem:[%s4761_s26 + $0x80] sm:$0xff]  ;;  %v3065_v15 = vld [vmem:[%s4761_s26 + $0x88] sm:$0xff] }
 0x28e   : > { %v3573_v1 = vsub.f32 %v3061_v58, %v3317_v59  ;;  %v3827_v3 = vmul.f32 %v3571_v2, %v3571_v2  ;;  %v3319_v5 = vld [vmem:[%s4767_s7 + $0x78] sm:$0xff]  ;;  %v3574_v6 = vsub.f32 %v3062_v63, %v3318_v0  ;;  %v3320_v11 = vld [vmem:[%s4767_s7 + $0x80] sm:$0xff]  ;;  %v3321_v16 = vld [vmem:[%s4767_s7 + $0x88] sm:$0xff] }
 0x28f   : > { %v4075_v43 = vadd.f32 %v4074_v38, %v3820_v32  ;;  %v3828_v7 = vmul.f32 %v3572_v60, %v3572_v60  ;;  %v3575_v12 = vsub.f32 %v3063_v4, %v3319_v5  ;;  %v3576_v17 = vsub.f32 %v3064_v10, %v3320_v11  ;;  %v3066_v20 = vld [vmem:[%s4761_s26 + $0x90] sm:$0xff]  ;;  %v3067_v25 = vld [vmem:[%s4761_s26 + $0x98] sm:$0xff]  ;;  %v3068_v30 = vld [vmem:[%s4761_s26 + $0xa0] sm:$0xff] }
 0x290   : > { %v3829_v13 = vmul.f32 %v3573_v1, %v3573_v1  ;;  %v3830_v18 = vmul.f32 %v3574_v6, %v3574_v6  ;;  %v3322_v21 = vld [vmem:[%s4767_s7 + $0x90] sm:$0xff]  ;;  %v3577_v22 = vsub.f32 %v3065_v15, %v3321_v16  ;;  %v3323_v26 = vld [vmem:[%s4767_s7 + $0x98] sm:$0xff]  ;;  %v3324_v31 = vld [vmem:[%s4767_s7 + $0xa0] sm:$0xff] }
 0x291   : > { %v4076_v48 = vadd.f32 %v4075_v43, %v3821_v37  ;;  %v3831_v23 = vmul.f32 %v3575_v12, %v3575_v12  ;;  %v3578_v27 = vsub.f32 %v3066_v20, %v3322_v21  ;;  %v3832_v28 = vmul.f32 %v3576_v17, %v3576_v17  ;;  %v3069_v35 = vld [vmem:[%s4761_s26 + $0xa8] sm:$0xff]  ;;  %v3070_v40 = vld [vmem:[%s4761_s26 + $0xb0] sm:$0xff]  ;;  %v3071_v45 = vld [vmem:[%s4761_s26 + $0xb8] sm:$0xff] }
 0x292   : > { %v3579_v32 = vsub.f32 %v3067_v25, %v3323_v26  ;;  %v3833_v33 = vmul.f32 %v3577_v22, %v3577_v22  ;;  %v3325_v36 = vld [vmem:[%s4767_s7 + $0xa8] sm:$0xff]  ;;  %v3580_v37 = vsub.f32 %v3068_v30, %v3324_v31  ;;  %v3326_v41 = vld [vmem:[%s4767_s7 + $0xb0] sm:$0xff]  ;;  %v3327_v46 = vld [vmem:[%s4767_s7 + $0xb8] sm:$0xff] }
 0x293   : > { %v4077_v53 = vadd.f32 %v4076_v48, %v3822_v42  ;;  %v3834_v38 = vmul.f32 %v3578_v27, %v3578_v27  ;;  %v3581_v42 = vsub.f32 %v3069_v35, %v3325_v36  ;;  %v3072_v50 = vld [vmem:[%s4761_s26 + $0xc0] sm:$0xff]  ;;  %v3073_v55 = vld [vmem:[%s4761_s26 + $0xc8] sm:$0xff]  ;;  %v3074_v59 = vld [vmem:[%s4761_s26 + $0xd0] sm:$0xff] }
 0x294   : > { %v3835_v43 = vmul.f32 %v3579_v32, %v3579_v32  ;;  %v3836_v48 = vmul.f32 %v3580_v37, %v3580_v37  ;;  %v3328_v51 = vld [vmem:[%s4767_s7 + $0xc0] sm:$0xff]  ;;  %v3329_v2 = vld [vmem:[%s4767_s7 + $0xc8] sm:$0xff]  ;;  %v3330_v60 = vld [vmem:[%s4767_s7 + $0xd0] sm:$0xff] }
 0x295   : > { %v4078_v57 = vadd.f32 %v4077_v53, %v3823_v47  ;;  %v3582_v47 = vsub.f32 %v3070_v40, %v3326_v41  ;;  %v3837_v53 = vmul.f32 %v3581_v42, %v3581_v42  ;;  %v3075_v0 = vld [vmem:[%s4761_s26 + $0xd8] sm:$0xff]  ;;  %v3076_v5 = vld [vmem:[%s4761_s26 + $0xe0] sm:$0xff]  ;;  %v3077_v11 = vld [vmem:[%s4761_s26 + $0xe8] sm:$0xff] }
 0x296   : > { %v3331_v1 = vld [vmem:[%s4767_s7 + $0xd8] sm:$0xff]  ;;  %v3332_v6 = vld [vmem:[%s4767_s7 + $0xe0] sm:$0xff]  ;;  %v3333_v12 = vld [vmem:[%s4767_s7 + $0xe8] sm:$0xff] }
 0x297   : > { %v4079_v62 = vadd.f32 %v4078_v57, %v3824_v52  ;;  %v3583_v52 = vsub.f32 %v3071_v45, %v3327_v46  ;;  %v3838_v57 = vmul.f32 %v3582_v47, %v3582_v47  ;;  %v3078_v16 = vld [vmem:[%s4761_s26 + $0xf0] sm:$0xff]  ;;  %v3079_v21 = vld [vmem:[%s4761_s26 + $0xf8] sm:$0xff]  ;;  %v3080_v26 = vld [vmem:[%s4761_s26 + $0x100] sm:$0xff] }
 0x298   : > { %v3334_v17 = vld [vmem:[%s4767_s7 + $0xf0] sm:$0xff]  ;;  %v3335_v22 = vld [vmem:[%s4767_s7 + $0xf8] sm:$0xff]  ;;  %v3336_v27 = vld [vmem:[%s4767_s7 + $0x100] sm:$0xff] }
 0x299   : > { %v4080_v8 = vadd.f32 %v4079_v62, %v3825_v56  ;;  %v3584_v56 = vsub.f32 %v3072_v50, %v3328_v51  ;;  %v3839_v62 = vmul.f32 %v3583_v52, %v3583_v52  ;;  %v3081_v31 = vld [vmem:[%s4761_s26 + $0x108] sm:$0xff]  ;;  %v3082_v36 = vld [vmem:[%s4761_s26 + $0x110] sm:$0xff]  ;;  %v3083_v41 = vld [vmem:[%s4761_s26 + $0x118] sm:$0xff] }
 0x29a   : > { %v3337_v32 = vld [vmem:[%s4767_s7 + $0x108] sm:$0xff]  ;;  %v3338_v37 = vld [vmem:[%s4767_s7 + $0x110] sm:$0xff]  ;;  %v3339_v42 = vld [vmem:[%s4767_s7 + $0x118] sm:$0xff] }
 0x29b   : > { %v4081_v9 = vadd.f32 %v4080_v8, %v3826_v61  ;;  %v3585_v61 = vsub.f32 %v3073_v55, %v3329_v2  ;;  %v3840_v8 = vmul.f32 %v3584_v56, %v3584_v56  ;;  %v3084_v46 = vld [vmem:[%s4761_s26 + $0x120] sm:$0xff]  ;;  %v3085_v51 = vld [vmem:[%s4761_s26 + $0x128] sm:$0xff]  ;;  %v3086_v2 = vld [vmem:[%s4761_s26 + $0x130] sm:$0xff] }
 0x29c   : > { %v3340_v47 = vld [vmem:[%s4767_s7 + $0x120] sm:$0xff]  ;;  %v3341_v52 = vld [vmem:[%s4767_s7 + $0x128] sm:$0xff]  ;;  %v3342_v56 = vld [vmem:[%s4767_s7 + $0x130] sm:$0xff] }
 0x29d   : > { %v4082_v14 = vadd.f32 %v4081_v9, %v3827_v3  ;;  %v3586_v3 = vsub.f32 %v3074_v59, %v3330_v60  ;;  %v3841_v9 = vmul.f32 %v3585_v61, %v3585_v61  ;;  %v3087_v60 = vld [vmem:[%s4761_s26 + $0x138] sm:$0xff] }
 0x29e   : > { %v3343_v61 = vld [vmem:[%s4767_s7 + $0x138] sm:$0xff] }
 0x29f   : > { %v4083_v19 = vadd.f32 %v4082_v14, %v3828_v7  ;;  %v3587_v7 = vsub.f32 %v3075_v0, %v3331_v1  ;;  %v3842_v14 = vmul.f32 %v3586_v3, %v3586_v3  ;;  %v3088_v1 = vld [vmem:[%s4761_s26 + $0x140] sm:$0xff] }
 0x2a0   : > { %v3344_v3 = vld [vmem:[%s4767_s7 + $0x140] sm:$0xff] }
 0x2a1   : > { %v4084_v24 = vadd.f32 %v4083_v19, %v3829_v13  ;;  %v3588_v13 = vsub.f32 %v3076_v5, %v3332_v6  ;;  %v3843_v19 = vmul.f32 %v3587_v7, %v3587_v7  ;;  %v3089_v6 = vld [vmem:[%s4761_s26 + $0x148] sm:$0xff] }
 0x2a2   : > { %v3345_v7 = vld [vmem:[%s4767_s7 + $0x148] sm:$0xff] }
 0x2a3   : > { %v4085_v29 = vadd.f32 %v4084_v24, %v3830_v18  ;;  %v3589_v18 = vsub.f32 %v3077_v11, %v3333_v12  ;;  %v3844_v24 = vmul.f32 %v3588_v13, %v3588_v13  ;;  %v3090_v12 = vld [vmem:[%s4761_s26 + $0x150] sm:$0xff] }
 0x2a4   : > { %v3346_v13 = vld [vmem:[%s4767_s7 + $0x150] sm:$0xff] }
 0x2a5   : > { %v4086_v34 = vadd.f32 %v4085_v29, %v3831_v23  ;;  %v3590_v23 = vsub.f32 %v3078_v16, %v3334_v17  ;;  %v3845_v29 = vmul.f32 %v3589_v18, %v3589_v18  ;;  %v3091_v17 = vld [vmem:[%s4761_s26 + $0x158] sm:$0xff] }
 0x2a6   : > { %v3347_v18 = vld [vmem:[%s4767_s7 + $0x158] sm:$0xff] }
 0x2a7   : > { %v4087_v39 = vadd.f32 %v4086_v34, %v3832_v28  ;;  %v3591_v28 = vsub.f32 %v3079_v21, %v3335_v22  ;;  %v3846_v34 = vmul.f32 %v3590_v23, %v3590_v23  ;;  %v3092_v22 = vld [vmem:[%s4761_s26 + $0x160] sm:$0xff] }
 0x2a8   : > { %v3348_v23 = vld [vmem:[%s4767_s7 + $0x160] sm:$0xff] }
 0x2a9   : > { %v4088_v44 = vadd.f32 %v4087_v39, %v3833_v33  ;;  %v3592_v33 = vsub.f32 %v3080_v26, %v3336_v27  ;;  %v3847_v39 = vmul.f32 %v3591_v28, %v3591_v28  ;;  %v3093_v27 = vld [vmem:[%s4761_s26 + $0x168] sm:$0xff] }
 0x2aa   : > { %v3349_v28 = vld [vmem:[%s4767_s7 + $0x168] sm:$0xff] }
 0x2ab   : > { %v4089_v49 = vadd.f32 %v4088_v44, %v3834_v38  ;;  %v3593_v38 = vsub.f32 %v3081_v31, %v3337_v32  ;;  %v3848_v44 = vmul.f32 %v3592_v33, %v3592_v33  ;;  %v3094_v32 = vld [vmem:[%s4761_s26 + $0x170] sm:$0xff] }
 0x2ac   : > { %v3350_v33 = vld [vmem:[%s4767_s7 + $0x170] sm:$0xff] }
 0x2ad   : > { %v4090_v54 = vadd.f32 %v4089_v49, %v3835_v43  ;;  %v3594_v43 = vsub.f32 %v3082_v36, %v3338_v37  ;;  %v3849_v49 = vmul.f32 %v3593_v38, %v3593_v38  ;;  %v3095_v37 = vld [vmem:[%s4761_s26 + $0x178] sm:$0xff] }
 0x2ae   : > { %v3351_v38 = vld [vmem:[%s4767_s7 + $0x178] sm:$0xff] }
 0x2af   : > { %v4091_v58 = vadd.f32 %v4090_v54, %v3836_v48  ;;  %v3595_v48 = vsub.f32 %v3083_v41, %v3339_v42  ;;  %v3850_v54 = vmul.f32 %v3594_v43, %v3594_v43  ;;  %v3096_v42 = vld [vmem:[%s4761_s26 + $0x180] sm:$0xff] }
 0x2b0   : > { %v3352_v43 = vld [vmem:[%s4767_s7 + $0x180] sm:$0xff] }
 0x2b1   : > { %v4092_v63 = vadd.f32 %v4091_v58, %v3837_v53  ;;  %v3596_v53 = vsub.f32 %v3084_v46, %v3340_v47  ;;  %v3851_v58 = vmul.f32 %v3595_v48, %v3595_v48  ;;  %v3097_v47 = vld [vmem:[%s4761_s26 + $0x188] sm:$0xff] }
 0x2b2   : > { %v3353_v48 = vld [vmem:[%s4767_s7 + $0x188] sm:$0xff] }
 0x2b3   : > { %v4093_v4 = vadd.f32 %v4092_v63, %v3838_v57  ;;  %v3597_v57 = vsub.f32 %v3085_v51, %v3341_v52  ;;  %v3852_v63 = vmul.f32 %v3596_v53, %v3596_v53  ;;  %v3098_v52 = vld [vmem:[%s4761_s26 + $0x190] sm:$0xff] }
 0x2b4   : > { %v3354_v53 = vld [vmem:[%s4767_s7 + $0x190] sm:$0xff] }
 0x2b5   : > { %v4094_v10 = vadd.f32 %v4093_v4, %v3839_v62  ;;  %v3598_v62 = vsub.f32 %v3086_v2, %v3342_v56  ;;  %v3853_v4 = vmul.f32 %v3597_v57, %v3597_v57  ;;  %v3099_v56 = vld [vmem:[%s4761_s26 + $0x198] sm:$0xff] }
 0x2b6   : > { %v3355_v57 = vld [vmem:[%s4767_s7 + $0x198] sm:$0xff] }
 0x2b7   : > { %v4095_v15 = vadd.f32 %v4094_v10, %v3840_v8  ;;  %v3599_v8 = vsub.f32 %v3087_v60, %v3343_v61  ;;  %v3854_v10 = vmul.f32 %v3598_v62, %v3598_v62  ;;  %v3100_v61 = vld [vmem:[%s4761_s26 + $0x1a0] sm:$0xff] }
 0x2b8   : > { %v3356_v62 = vld [vmem:[%s4767_s7 + $0x1a0] sm:$0xff] }
 0x2b9   : > { %v4096_v20 = vadd.f32 %v4095_v15, %v3841_v9  ;;  %v3600_v9 = vsub.f32 %v3088_v1, %v3344_v3  ;;  %v3855_v15 = vmul.f32 %v3599_v8, %v3599_v8  ;;  %v3101_v3 = vld [vmem:[%s4761_s26 + $0x1a8] sm:$0xff] }
 0x2ba   : > { %v3357_v8 = vld [vmem:[%s4767_s7 + $0x1a8] sm:$0xff] }
 0x2bb   : > { %v4097_v25 = vadd.f32 %v4096_v20, %v3842_v14  ;;  %v3601_v14 = vsub.f32 %v3089_v6, %v3345_v7  ;;  %v3856_v20 = vmul.f32 %v3600_v9, %v3600_v9  ;;  %v3102_v7 = vld [vmem:[%s4761_s26 + $0x1b0] sm:$0xff] }
 0x2bc   : > { %v3358_v9 = vld [vmem:[%s4767_s7 + $0x1b0] sm:$0xff] }
 0x2bd   : > { %v4098_v30 = vadd.f32 %v4097_v25, %v3843_v19  ;;  %v3602_v19 = vsub.f32 %v3090_v12, %v3346_v13  ;;  %v3857_v25 = vmul.f32 %v3601_v14, %v3601_v14  ;;  %v3103_v13 = vld [vmem:[%s4761_s26 + $0x1b8] sm:$0xff] }
 0x2be   : > { %v3359_v14 = vld [vmem:[%s4767_s7 + $0x1b8] sm:$0xff] }
 0x2bf   : > { %v4099_v35 = vadd.f32 %v4098_v30, %v3844_v24  ;;  %v3603_v24 = vsub.f32 %v3091_v17, %v3347_v18  ;;  %v3858_v30 = vmul.f32 %v3602_v19, %v3602_v19  ;;  %v3104_v18 = vld [vmem:[%s4761_s26 + $0x1c0] sm:$0xff] }
 0x2c0   : > { %v3360_v19 = vld [vmem:[%s4767_s7 + $0x1c0] sm:$0xff] }
 0x2c1   : > { %v4100_v40 = vadd.f32 %v4099_v35, %v3845_v29  ;;  %v3604_v29 = vsub.f32 %v3092_v22, %v3348_v23  ;;  %v3859_v35 = vmul.f32 %v3603_v24, %v3603_v24  ;;  %v3105_v23 = vld [vmem:[%s4761_s26 + $0x1c8] sm:$0xff] }
 0x2c2   : > { %v3361_v24 = vld [vmem:[%s4767_s7 + $0x1c8] sm:$0xff] }
 0x2c3   : > { %v4101_v45 = vadd.f32 %v4100_v40, %v3846_v34  ;;  %v3605_v34 = vsub.f32 %v3093_v27, %v3349_v28  ;;  %v3860_v40 = vmul.f32 %v3604_v29, %v3604_v29  ;;  %v3106_v28 = vld [vmem:[%s4761_s26 + $0x1d0] sm:$0xff] }
 0x2c4   : > { %v3362_v29 = vld [vmem:[%s4767_s7 + $0x1d0] sm:$0xff] }
 0x2c5   : > { %v4102_v50 = vadd.f32 %v4101_v45, %v3847_v39  ;;  %v3606_v39 = vsub.f32 %v3094_v32, %v3350_v33  ;;  %v3861_v45 = vmul.f32 %v3605_v34, %v3605_v34  ;;  %v3107_v33 = vld [vmem:[%s4761_s26 + $0x1d8] sm:$0xff] }
 0x2c6   : > { %v3363_v34 = vld [vmem:[%s4767_s7 + $0x1d8] sm:$0xff] }
 0x2c7   : > { %v4103_v55 = vadd.f32 %v4102_v50, %v3848_v44  ;;  %v3607_v44 = vsub.f32 %v3095_v37, %v3351_v38  ;;  %v3862_v50 = vmul.f32 %v3606_v39, %v3606_v39  ;;  %v3108_v38 = vld [vmem:[%s4761_s26 + $0x1e0] sm:$0xff] }
 0x2c8   : > { %v3364_v39 = vld [vmem:[%s4767_s7 + $0x1e0] sm:$0xff] }
 0x2c9   : > { %v4104_v59 = vadd.f32 %v4103_v55, %v3849_v49  ;;  %v3608_v49 = vsub.f32 %v3096_v42, %v3352_v43  ;;  %v3863_v55 = vmul.f32 %v3607_v44, %v3607_v44  ;;  %v3109_v43 = vld [vmem:[%s4761_s26 + $0x1e8] sm:$0xff] }
 0x2ca   : > { %v3365_v44 = vld [vmem:[%s4767_s7 + $0x1e8] sm:$0xff] }
 0x2cb   : > { %v4105_v0 = vadd.f32 %v4104_v59, %v3850_v54  ;;  %v3609_v54 = vsub.f32 %v3097_v47, %v3353_v48  ;;  %v3864_v59 = vmul.f32 %v3608_v49, %v3608_v49  ;;  %v3110_v48 = vld [vmem:[%s4761_s26 + $0x1f0] sm:$0xff] }
 0x2cc   : > { %v3366_v49 = vld [vmem:[%s4767_s7 + $0x1f0] sm:$0xff] }
 0x2cd   : > { %v4106_v5 = vadd.f32 %v4105_v0, %v3851_v58  ;;  %v3610_v58 = vsub.f32 %v3098_v52, %v3354_v53  ;;  %v3865_v0 = vmul.f32 %v3609_v54, %v3609_v54  ;;  %v3111_v53 = vld [vmem:[%s4761_s26 + $0x1f8] sm:$0xff] }
 0x2ce   : > { %v3367_v54 = vld [vmem:[%s4767_s7 + $0x1f8] sm:$0xff] }
 0x2cf   : > { %v4107_v11 = vadd.f32 %v4106_v5, %v3852_v63  ;;  %v3611_v63 = vsub.f32 %v3099_v56, %v3355_v57  ;;  %v3866_v5 = vmul.f32 %v3610_v58, %v3610_v58  ;;  %v3112_v57 = vld [vmem:[%s4761_s26 + $0x200] sm:$0xff] }
 0x2d0   : > { %v3368_v58 = vld [vmem:[%s4767_s7 + $0x200] sm:$0xff] }
 0x2d1   : > { %v4108_v16 = vadd.f32 %v4107_v11, %v3853_v4  ;;  %v3612_v4 = vsub.f32 %v3100_v61, %v3356_v62  ;;  %v3867_v11 = vmul.f32 %v3611_v63, %v3611_v63  ;;  %v3113_v62 = vld [vmem:[%s4761_s26 + $0x208] sm:$0xff] }
 0x2d2   : > { %v3369_v63 = vld [vmem:[%s4767_s7 + $0x208] sm:$0xff] }
 0x2d3   : > { %v4109_v21 = vadd.f32 %v4108_v16, %v3854_v10  ;;  %v3613_v10 = vsub.f32 %v3101_v3, %v3357_v8  ;;  %v3868_v16 = vmul.f32 %v3612_v4, %v3612_v4  ;;  %v3114_v8 = vld [vmem:[%s4761_s26 + $0x210] sm:$0xff] }
 0x2d4   : > { %v3370_v4 = vld [vmem:[%s4767_s7 + $0x210] sm:$0xff] }
 0x2d5   : > { %v4110_v26 = vadd.f32 %v4109_v21, %v3855_v15  ;;  %v3614_v15 = vsub.f32 %v3102_v7, %v3358_v9  ;;  %v3869_v21 = vmul.f32 %v3613_v10, %v3613_v10  ;;  %v3115_v9 = vld [vmem:[%s4761_s26 + $0x218] sm:$0xff] }
 0x2d6   : > { %v3371_v10 = vld [vmem:[%s4767_s7 + $0x218] sm:$0xff] }
 0x2d7   : > { %v4111_v31 = vadd.f32 %v4110_v26, %v3856_v20  ;;  %v3615_v20 = vsub.f32 %v3103_v13, %v3359_v14  ;;  %v3870_v26 = vmul.f32 %v3614_v15, %v3614_v15  ;;  %v3116_v14 = vld [vmem:[%s4761_s26 + $0x220] sm:$0xff] }
 0x2d8   : > { %v3372_v15 = vld [vmem:[%s4767_s7 + $0x220] sm:$0xff] }
 0x2d9   : > { %v4112_v36 = vadd.f32 %v4111_v31, %v3857_v25  ;;  %v3616_v25 = vsub.f32 %v3104_v18, %v3360_v19  ;;  %v3871_v31 = vmul.f32 %v3615_v20, %v3615_v20  ;;  %v3117_v19 = vld [vmem:[%s4761_s26 + $0x228] sm:$0xff] }
 0x2da   : > { %v3373_v20 = vld [vmem:[%s4767_s7 + $0x228] sm:$0xff] }
 0x2db   : > { %v4113_v41 = vadd.f32 %v4112_v36, %v3858_v30  ;;  %v3617_v30 = vsub.f32 %v3105_v23, %v3361_v24  ;;  %v3872_v36 = vmul.f32 %v3616_v25, %v3616_v25  ;;  %v3118_v24 = vld [vmem:[%s4761_s26 + $0x230] sm:$0xff] }
 0x2dc   : > { %v3374_v25 = vld [vmem:[%s4767_s7 + $0x230] sm:$0xff] }
 0x2dd   : > { %v4114_v46 = vadd.f32 %v4113_v41, %v3859_v35  ;;  %v3618_v35 = vsub.f32 %v3106_v28, %v3362_v29  ;;  %v3873_v41 = vmul.f32 %v3617_v30, %v3617_v30  ;;  %v3119_v29 = vld [vmem:[%s4761_s26 + $0x238] sm:$0xff] }
 0x2de   : > { %v3375_v30 = vld [vmem:[%s4767_s7 + $0x238] sm:$0xff] }
 0x2df   : > { %v4115_v51 = vadd.f32 %v4114_v46, %v3860_v40  ;;  %v3619_v40 = vsub.f32 %v3107_v33, %v3363_v34  ;;  %v3874_v46 = vmul.f32 %v3618_v35, %v3618_v35  ;;  %v3120_v34 = vld [vmem:[%s4761_s26 + $0x240] sm:$0xff] }
 0x2e0   : > { %v3376_v35 = vld [vmem:[%s4767_s7 + $0x240] sm:$0xff] }
 0x2e1   : > { %v4116_v2 = vadd.f32 %v4115_v51, %v3861_v45  ;;  %v3620_v45 = vsub.f32 %v3108_v38, %v3364_v39  ;;  %v3875_v51 = vmul.f32 %v3619_v40, %v3619_v40  ;;  %v3121_v39 = vld [vmem:[%s4761_s26 + $0x248] sm:$0xff] }
 0x2e2   : > { %v3377_v40 = vld [vmem:[%s4767_s7 + $0x248] sm:$0xff] }
 0x2e3   : > { %v4117_v60 = vadd.f32 %v4116_v2, %v3862_v50  ;;  %v3621_v50 = vsub.f32 %v3109_v43, %v3365_v44  ;;  %v3876_v2 = vmul.f32 %v3620_v45, %v3620_v45  ;;  %v3122_v44 = vld [vmem:[%s4761_s26 + $0x250] sm:$0xff] }
 0x2e4   : > { %v3378_v45 = vld [vmem:[%s4767_s7 + $0x250] sm:$0xff] }
 0x2e5   : > { %v4118_v1 = vadd.f32 %v4117_v60, %v3863_v55  ;;  %v3622_v55 = vsub.f32 %v3110_v48, %v3366_v49  ;;  %v3877_v60 = vmul.f32 %v3621_v50, %v3621_v50  ;;  %v3123_v49 = vld [vmem:[%s4761_s26 + $0x258] sm:$0xff] }
 0x2e6   : > { %v3379_v50 = vld [vmem:[%s4767_s7 + $0x258] sm:$0xff] }
 0x2e7   : > { %v4119_v6 = vadd.f32 %v4118_v1, %v3864_v59  ;;  %v3623_v59 = vsub.f32 %v3111_v53, %v3367_v54  ;;  %v3878_v1 = vmul.f32 %v3622_v55, %v3622_v55  ;;  %v3124_v54 = vld [vmem:[%s4761_s26 + $0x260] sm:$0xff] }
 0x2e8   : > { %v3380_v55 = vld [vmem:[%s4767_s7 + $0x260] sm:$0xff] }
 0x2e9   : > { %v4120_v12 = vadd.f32 %v4119_v6, %v3865_v0  ;;  %v3624_v0 = vsub.f32 %v3112_v57, %v3368_v58  ;;  %v3879_v6 = vmul.f32 %v3623_v59, %v3623_v59  ;;  %v3125_v58 = vld [vmem:[%s4761_s26 + $0x268] sm:$0xff] }
 0x2ea   : > { %v3381_v59 = vld [vmem:[%s4767_s7 + $0x268] sm:$0xff] }
 0x2eb   : > { %v4121_v17 = vadd.f32 %v4120_v12, %v3866_v5  ;;  %v3625_v5 = vsub.f32 %v3113_v62, %v3369_v63  ;;  %v3880_v12 = vmul.f32 %v3624_v0, %v3624_v0  ;;  %v3126_v63 = vld [vmem:[%s4761_s26 + $0x270] sm:$0xff] }
 0x2ec   : > { %v3382_v0 = vld [vmem:[%s4767_s7 + $0x270] sm:$0xff] }
 0x2ed   : > { %v4122_v22 = vadd.f32 %v4121_v17, %v3867_v11  ;;  %v3626_v11 = vsub.f32 %v3114_v8, %v3370_v4  ;;  %v3881_v17 = vmul.f32 %v3625_v5, %v3625_v5  ;;  %v3127_v4 = vld [vmem:[%s4761_s26 + $0x278] sm:$0xff] }
 0x2ee   : > { %v3383_v5 = vld [vmem:[%s4767_s7 + $0x278] sm:$0xff] }
 0x2ef   : > { %v4123_v27 = vadd.f32 %v4122_v22, %v3868_v16  ;;  %v3627_v16 = vsub.f32 %v3115_v9, %v3371_v10  ;;  %v3882_v22 = vmul.f32 %v3626_v11, %v3626_v11  ;;  %v3128_v10 = vld [vmem:[%s4761_s26 + $0x280] sm:$0xff] }
 0x2f0   : > { %v3384_v11 = vld [vmem:[%s4767_s7 + $0x280] sm:$0xff] }
 0x2f1   : > { %v4124_v32 = vadd.f32 %v4123_v27, %v3869_v21  ;;  %v3628_v21 = vsub.f32 %v3116_v14, %v3372_v15  ;;  %v3883_v27 = vmul.f32 %v3627_v16, %v3627_v16  ;;  %v3129_v15 = vld [vmem:[%s4761_s26 + $0x288] sm:$0xff] }
 0x2f2   : > { %v3385_v16 = vld [vmem:[%s4767_s7 + $0x288] sm:$0xff] }
 0x2f3   : > { %v4125_v37 = vadd.f32 %v4124_v32, %v3870_v26  ;;  %v3629_v26 = vsub.f32 %v3117_v19, %v3373_v20  ;;  %v3884_v32 = vmul.f32 %v3628_v21, %v3628_v21  ;;  %v3130_v20 = vld [vmem:[%s4761_s26 + $0x290] sm:$0xff] }
 0x2f4   : > { %v3386_v21 = vld [vmem:[%s4767_s7 + $0x290] sm:$0xff] }
 0x2f5   : > { %v4126_v42 = vadd.f32 %v4125_v37, %v3871_v31  ;;  %v3630_v31 = vsub.f32 %v3118_v24, %v3374_v25  ;;  %v3885_v37 = vmul.f32 %v3629_v26, %v3629_v26  ;;  %v3131_v25 = vld [vmem:[%s4761_s26 + $0x298] sm:$0xff] }
 0x2f6   : > { %v3387_v26 = vld [vmem:[%s4767_s7 + $0x298] sm:$0xff] }
 0x2f7   : > { %v4127_v47 = vadd.f32 %v4126_v42, %v3872_v36  ;;  %v3631_v36 = vsub.f32 %v3119_v29, %v3375_v30  ;;  %v3886_v42 = vmul.f32 %v3630_v31, %v3630_v31  ;;  %v3132_v30 = vld [vmem:[%s4761_s26 + $0x2a0] sm:$0xff] }
 0x2f8   : > { %v3388_v31 = vld [vmem:[%s4767_s7 + $0x2a0] sm:$0xff] }
 0x2f9   : > { %v4128_v52 = vadd.f32 %v4127_v47, %v3873_v41  ;;  %v3632_v41 = vsub.f32 %v3120_v34, %v3376_v35  ;;  %v3887_v47 = vmul.f32 %v3631_v36, %v3631_v36  ;;  %v3133_v35 = vld [vmem:[%s4761_s26 + $0x2a8] sm:$0xff] }
 0x2fa   : > { %v3389_v36 = vld [vmem:[%s4767_s7 + $0x2a8] sm:$0xff] }
 0x2fb   : > { %v4129_v56 = vadd.f32 %v4128_v52, %v3874_v46  ;;  %v3633_v46 = vsub.f32 %v3121_v39, %v3377_v40  ;;  %v3888_v52 = vmul.f32 %v3632_v41, %v3632_v41  ;;  %v3134_v40 = vld [vmem:[%s4761_s26 + $0x2b0] sm:$0xff] }
 0x2fc   : > { %v3390_v41 = vld [vmem:[%s4767_s7 + $0x2b0] sm:$0xff] }
 0x2fd   : > { %v4130_v61 = vadd.f32 %v4129_v56, %v3875_v51  ;;  %v3634_v51 = vsub.f32 %v3122_v44, %v3378_v45  ;;  %v3889_v56 = vmul.f32 %v3633_v46, %v3633_v46  ;;  %v3135_v45 = vld [vmem:[%s4761_s26 + $0x2b8] sm:$0xff] }
 0x2fe   : > { %v3391_v46 = vld [vmem:[%s4767_s7 + $0x2b8] sm:$0xff] }
 0x2ff   : > { %v4131_v3 = vadd.f32 %v4130_v61, %v3876_v2  ;;  %v3635_v2 = vsub.f32 %v3123_v49, %v3379_v50  ;;  %v3890_v61 = vmul.f32 %v3634_v51, %v3634_v51  ;;  %v3136_v50 = vld [vmem:[%s4761_s26 + $0x2c0] sm:$0xff] }
 0x300   : > { %v3392_v51 = vld [vmem:[%s4767_s7 + $0x2c0] sm:$0xff] }
 0x301   : > { %v4132_v7 = vadd.f32 %v4131_v3, %v3877_v60  ;;  %v3636_v60 = vsub.f32 %v3124_v54, %v3380_v55  ;;  %v3891_v3 = vmul.f32 %v3635_v2, %v3635_v2  ;;  %v3137_v55 = vld [vmem:[%s4761_s26 + $0x2c8] sm:$0xff] }
 0x302   : > { %v3393_v2 = vld [vmem:[%s4767_s7 + $0x2c8] sm:$0xff] }
 0x303   : > { %v4133_v13 = vadd.f32 %v4132_v7, %v3878_v1  ;;  %v3637_v1 = vsub.f32 %v3125_v58, %v3381_v59  ;;  %v3892_v7 = vmul.f32 %v3636_v60, %v3636_v60  ;;  %v3138_v59 = vld [vmem:[%s4761_s26 + $0x2d0] sm:$0xff] }
 0x304   : > { %v3394_v60 = vld [vmem:[%s4767_s7 + $0x2d0] sm:$0xff] }
 0x305   : > { %v4134_v18 = vadd.f32 %v4133_v13, %v3879_v6  ;;  %v3638_v6 = vsub.f32 %v3126_v63, %v3382_v0  ;;  %v3893_v13 = vmul.f32 %v3637_v1, %v3637_v1  ;;  %v3139_v0 = vld [vmem:[%s4761_s26 + $0x2d8] sm:$0xff] }
 0x306   : > { %v3395_v1 = vld [vmem:[%s4767_s7 + $0x2d8] sm:$0xff] }
 0x307   : > { %v4135_v23 = vadd.f32 %v4134_v18, %v3880_v12  ;;  %v3639_v12 = vsub.f32 %v3127_v4, %v3383_v5  ;;  %v3894_v18 = vmul.f32 %v3638_v6, %v3638_v6  ;;  %v3140_v5 = vld [vmem:[%s4761_s26 + $0x2e0] sm:$0xff] }
 0x308   : > { %v3396_v6 = vld [vmem:[%s4767_s7 + $0x2e0] sm:$0xff] }
 0x309   : > { %v4136_v28 = vadd.f32 %v4135_v23, %v3881_v17  ;;  %v3640_v17 = vsub.f32 %v3128_v10, %v3384_v11  ;;  %v3895_v23 = vmul.f32 %v3639_v12, %v3639_v12  ;;  %v3141_v11 = vld [vmem:[%s4761_s26 + $0x2e8] sm:$0xff] }
 0x30a   : > { %v3397_v12 = vld [vmem:[%s4767_s7 + $0x2e8] sm:$0xff] }
 0x30b   : > { %v4137_v33 = vadd.f32 %v4136_v28, %v3882_v22  ;;  %v3641_v22 = vsub.f32 %v3129_v15, %v3385_v16  ;;  %v3896_v28 = vmul.f32 %v3640_v17, %v3640_v17  ;;  %v3142_v16 = vld [vmem:[%s4761_s26 + $0x2f0] sm:$0xff] }
 0x30c   : > { %v3398_v17 = vld [vmem:[%s4767_s7 + $0x2f0] sm:$0xff] }
 0x30d   : > { %v4138_v38 = vadd.f32 %v4137_v33, %v3883_v27  ;;  %v3642_v27 = vsub.f32 %v3130_v20, %v3386_v21  ;;  %v3897_v33 = vmul.f32 %v3641_v22, %v3641_v22  ;;  %v3143_v21 = vld [vmem:[%s4761_s26 + $0x2f8] sm:$0xff] }
 0x30e   : > { %v3399_v22 = vld [vmem:[%s4767_s7 + $0x2f8] sm:$0xff] }
 0x30f   : > { %v4139_v43 = vadd.f32 %v4138_v38, %v3884_v32  ;;  %v3643_v32 = vsub.f32 %v3131_v25, %v3387_v26  ;;  %v3898_v38 = vmul.f32 %v3642_v27, %v3642_v27  ;;  %v3144_v26 = vld [vmem:[%s4761_s26 + $0x300] sm:$0xff] }
 0x310   : > { %v3400_v27 = vld [vmem:[%s4767_s7 + $0x300] sm:$0xff] }
 0x311   : > { %v4140_v48 = vadd.f32 %v4139_v43, %v3885_v37  ;;  %v3644_v37 = vsub.f32 %v3132_v30, %v3388_v31  ;;  %v3899_v43 = vmul.f32 %v3643_v32, %v3643_v32  ;;  %v3145_v31 = vld [vmem:[%s4761_s26 + $0x308] sm:$0xff] }
 0x312   : > { %v3401_v32 = vld [vmem:[%s4767_s7 + $0x308] sm:$0xff] }
 0x313   : > { %v4141_v53 = vadd.f32 %v4140_v48, %v3886_v42  ;;  %v3645_v42 = vsub.f32 %v3133_v35, %v3389_v36  ;;  %v3900_v48 = vmul.f32 %v3644_v37, %v3644_v37  ;;  %v3146_v36 = vld [vmem:[%s4761_s26 + $0x310] sm:$0xff] }
 0x314   : > { %v3402_v37 = vld [vmem:[%s4767_s7 + $0x310] sm:$0xff] }
 0x315   : > { %v4142_v57 = vadd.f32 %v4141_v53, %v3887_v47  ;;  %v3646_v47 = vsub.f32 %v3134_v40, %v3390_v41  ;;  %v3901_v53 = vmul.f32 %v3645_v42, %v3645_v42  ;;  %v3147_v41 = vld [vmem:[%s4761_s26 + $0x318] sm:$0xff] }
 0x316   : > { %v3403_v42 = vld [vmem:[%s4767_s7 + $0x318] sm:$0xff] }
 0x317   : > { %v4143_v62 = vadd.f32 %v4142_v57, %v3888_v52  ;;  %v3647_v52 = vsub.f32 %v3135_v45, %v3391_v46  ;;  %v3902_v57 = vmul.f32 %v3646_v47, %v3646_v47  ;;  %v3148_v46 = vld [vmem:[%s4761_s26 + $0x320] sm:$0xff] }
 0x318   : > { %v3404_v47 = vld [vmem:[%s4767_s7 + $0x320] sm:$0xff] }
 0x319   : > { %v4144_v8 = vadd.f32 %v4143_v62, %v3889_v56  ;;  %v3648_v56 = vsub.f32 %v3136_v50, %v3392_v51  ;;  %v3903_v62 = vmul.f32 %v3647_v52, %v3647_v52  ;;  %v3149_v51 = vld [vmem:[%s4761_s26 + $0x328] sm:$0xff] }
 0x31a   : > { %v3405_v52 = vld [vmem:[%s4767_s7 + $0x328] sm:$0xff] }
 0x31b   : > { %v4145_v9 = vadd.f32 %v4144_v8, %v3890_v61  ;;  %v3649_v61 = vsub.f32 %v3137_v55, %v3393_v2  ;;  %v3904_v8 = vmul.f32 %v3648_v56, %v3648_v56  ;;  %v3150_v2 = vld [vmem:[%s4761_s26 + $0x330] sm:$0xff] }
 0x31c   : > { %v3406_v56 = vld [vmem:[%s4767_s7 + $0x330] sm:$0xff] }
 0x31d   : > { %v4146_v14 = vadd.f32 %v4145_v9, %v3891_v3  ;;  %v3650_v3 = vsub.f32 %v3138_v59, %v3394_v60  ;;  %v3905_v9 = vmul.f32 %v3649_v61, %v3649_v61  ;;  %v3151_v60 = vld [vmem:[%s4761_s26 + $0x338] sm:$0xff] }
 0x31e   : > { %v3407_v61 = vld [vmem:[%s4767_s7 + $0x338] sm:$0xff] }
 0x31f   : > { %v4147_v19 = vadd.f32 %v4146_v14, %v3892_v7  ;;  %v3651_v7 = vsub.f32 %v3139_v0, %v3395_v1  ;;  %v3906_v14 = vmul.f32 %v3650_v3, %v3650_v3  ;;  %v3152_v1 = vld [vmem:[%s4761_s26 + $0x340] sm:$0xff] }
 0x320   : > { %v3408_v3 = vld [vmem:[%s4767_s7 + $0x340] sm:$0xff] }
 0x321   : > { %v4148_v24 = vadd.f32 %v4147_v19, %v3893_v13  ;;  %v3652_v13 = vsub.f32 %v3140_v5, %v3396_v6  ;;  %v3907_v19 = vmul.f32 %v3651_v7, %v3651_v7  ;;  %v3153_v6 = vld [vmem:[%s4761_s26 + $0x348] sm:$0xff] }
 0x322   : > { %v3409_v7 = vld [vmem:[%s4767_s7 + $0x348] sm:$0xff] }
 0x323   : > { %v4149_v29 = vadd.f32 %v4148_v24, %v3894_v18  ;;  %v3653_v18 = vsub.f32 %v3141_v11, %v3397_v12  ;;  %v3908_v24 = vmul.f32 %v3652_v13, %v3652_v13  ;;  %v3154_v12 = vld [vmem:[%s4761_s26 + $0x350] sm:$0xff] }
 0x324   : > { %v3410_v13 = vld [vmem:[%s4767_s7 + $0x350] sm:$0xff] }
 0x325   : > { %v4150_v34 = vadd.f32 %v4149_v29, %v3895_v23  ;;  %v3654_v23 = vsub.f32 %v3142_v16, %v3398_v17  ;;  %v3909_v29 = vmul.f32 %v3653_v18, %v3653_v18  ;;  %v3155_v17 = vld [vmem:[%s4761_s26 + $0x358] sm:$0xff] }
 0x326   : > { %v3411_v18 = vld [vmem:[%s4767_s7 + $0x358] sm:$0xff] }
 0x327   : > { %v4151_v39 = vadd.f32 %v4150_v34, %v3896_v28  ;;  %v3655_v28 = vsub.f32 %v3143_v21, %v3399_v22  ;;  %v3910_v34 = vmul.f32 %v3654_v23, %v3654_v23  ;;  %v3156_v22 = vld [vmem:[%s4761_s26 + $0x360] sm:$0xff] }
 0x328   : > { %v3412_v23 = vld [vmem:[%s4767_s7 + $0x360] sm:$0xff] }
 0x329   : > { %v4152_v44 = vadd.f32 %v4151_v39, %v3897_v33  ;;  %v3656_v33 = vsub.f32 %v3144_v26, %v3400_v27  ;;  %v3911_v39 = vmul.f32 %v3655_v28, %v3655_v28  ;;  %v3157_v27 = vld [vmem:[%s4761_s26 + $0x368] sm:$0xff] }
 0x32a   : > { %v3413_v28 = vld [vmem:[%s4767_s7 + $0x368] sm:$0xff] }
 0x32b   : > { %v4153_v49 = vadd.f32 %v4152_v44, %v3898_v38  ;;  %v3657_v38 = vsub.f32 %v3145_v31, %v3401_v32  ;;  %v3912_v44 = vmul.f32 %v3656_v33, %v3656_v33  ;;  %v3158_v32 = vld [vmem:[%s4761_s26 + $0x370] sm:$0xff] }
 0x32c   : > { %v3414_v33 = vld [vmem:[%s4767_s7 + $0x370] sm:$0xff] }
 0x32d   : > { %v4154_v54 = vadd.f32 %v4153_v49, %v3899_v43  ;;  %v3658_v43 = vsub.f32 %v3146_v36, %v3402_v37  ;;  %v3913_v49 = vmul.f32 %v3657_v38, %v3657_v38  ;;  %v3159_v37 = vld [vmem:[%s4761_s26 + $0x378] sm:$0xff] }
 0x32e   : > { %v3415_v38 = vld [vmem:[%s4767_s7 + $0x378] sm:$0xff] }
 0x32f   : > { %v4155_v58 = vadd.f32 %v4154_v54, %v3900_v48  ;;  %v3659_v48 = vsub.f32 %v3147_v41, %v3403_v42  ;;  %v3914_v54 = vmul.f32 %v3658_v43, %v3658_v43  ;;  %v3160_v42 = vld [vmem:[%s4761_s26 + $0x380] sm:$0xff] }
 0x330   : > { %v3416_v43 = vld [vmem:[%s4767_s7 + $0x380] sm:$0xff] }
 0x331   : > { %v4156_v63 = vadd.f32 %v4155_v58, %v3901_v53  ;;  %v3660_v53 = vsub.f32 %v3148_v46, %v3404_v47  ;;  %v3915_v58 = vmul.f32 %v3659_v48, %v3659_v48  ;;  %v3161_v47 = vld [vmem:[%s4761_s26 + $0x388] sm:$0xff] }
 0x332   : > { %v3417_v48 = vld [vmem:[%s4767_s7 + $0x388] sm:$0xff] }
 0x333   : > { %v4157_v4 = vadd.f32 %v4156_v63, %v3902_v57  ;;  %v3661_v57 = vsub.f32 %v3149_v51, %v3405_v52  ;;  %v3916_v63 = vmul.f32 %v3660_v53, %v3660_v53  ;;  %v3162_v52 = vld [vmem:[%s4761_s26 + $0x390] sm:$0xff] }
 0x334   : > { %v3418_v53 = vld [vmem:[%s4767_s7 + $0x390] sm:$0xff] }
 0x335   : > { %v4158_v10 = vadd.f32 %v4157_v4, %v3903_v62  ;;  %v3662_v62 = vsub.f32 %v3150_v2, %v3406_v56  ;;  %v3917_v4 = vmul.f32 %v3661_v57, %v3661_v57  ;;  %v3163_v56 = vld [vmem:[%s4761_s26 + $0x398] sm:$0xff] }
 0x336   : > { %v3419_v57 = vld [vmem:[%s4767_s7 + $0x398] sm:$0xff] }
 0x337   : > { %v4159_v15 = vadd.f32 %v4158_v10, %v3904_v8  ;;  %v3663_v8 = vsub.f32 %v3151_v60, %v3407_v61  ;;  %v3918_v10 = vmul.f32 %v3662_v62, %v3662_v62  ;;  %v3164_v61 = vld [vmem:[%s4761_s26 + $0x3a0] sm:$0xff] }
 0x338   : > { %v3420_v62 = vld [vmem:[%s4767_s7 + $0x3a0] sm:$0xff] }
 0x339   : > { %v4160_v20 = vadd.f32 %v4159_v15, %v3905_v9  ;;  %v3664_v9 = vsub.f32 %v3152_v1, %v3408_v3  ;;  %v3919_v15 = vmul.f32 %v3663_v8, %v3663_v8  ;;  %v3165_v3 = vld [vmem:[%s4761_s26 + $0x3a8] sm:$0xff] }
 0x33a   : > { %v3421_v8 = vld [vmem:[%s4767_s7 + $0x3a8] sm:$0xff] }
 0x33b   : > { %v4161_v25 = vadd.f32 %v4160_v20, %v3906_v14  ;;  %v3665_v14 = vsub.f32 %v3153_v6, %v3409_v7  ;;  %v3920_v20 = vmul.f32 %v3664_v9, %v3664_v9  ;;  %v3166_v7 = vld [vmem:[%s4761_s26 + $0x3b0] sm:$0xff] }
 0x33c   : > { %v3422_v9 = vld [vmem:[%s4767_s7 + $0x3b0] sm:$0xff] }
 0x33d   : > { %v4162_v30 = vadd.f32 %v4161_v25, %v3907_v19  ;;  %v3666_v19 = vsub.f32 %v3154_v12, %v3410_v13  ;;  %v3921_v25 = vmul.f32 %v3665_v14, %v3665_v14  ;;  %v3167_v13 = vld [vmem:[%s4761_s26 + $0x3b8] sm:$0xff] }
 0x33e   : > { %v3423_v14 = vld [vmem:[%s4767_s7 + $0x3b8] sm:$0xff] }
 0x33f   : > { %v4163_v35 = vadd.f32 %v4162_v30, %v3908_v24  ;;  %v3667_v24 = vsub.f32 %v3155_v17, %v3411_v18  ;;  %v3922_v30 = vmul.f32 %v3666_v19, %v3666_v19  ;;  %v3168_v18 = vld [vmem:[%s4761_s26 + $0x3c0] sm:$0xff] }
 0x340   : > { %v3424_v19 = vld [vmem:[%s4767_s7 + $0x3c0] sm:$0xff] }
 0x341   : > { %v4164_v40 = vadd.f32 %v4163_v35, %v3909_v29  ;;  %v3668_v29 = vsub.f32 %v3156_v22, %v3412_v23  ;;  %v3923_v35 = vmul.f32 %v3667_v24, %v3667_v24  ;;  %v3169_v23 = vld [vmem:[%s4761_s26 + $0x3c8] sm:$0xff] }
 0x342   : > { %v3425_v24 = vld [vmem:[%s4767_s7 + $0x3c8] sm:$0xff] }
 0x343   : > { %v4165_v45 = vadd.f32 %v4164_v40, %v3910_v34  ;;  %v3669_v34 = vsub.f32 %v3157_v27, %v3413_v28  ;;  %v3924_v40 = vmul.f32 %v3668_v29, %v3668_v29  ;;  %v3170_v28 = vld [vmem:[%s4761_s26 + $0x3d0] sm:$0xff] }
 0x344   : > { %v3426_v29 = vld [vmem:[%s4767_s7 + $0x3d0] sm:$0xff] }
 0x345   : > { %v4166_v50 = vadd.f32 %v4165_v45, %v3911_v39  ;;  %v3670_v39 = vsub.f32 %v3158_v32, %v3414_v33  ;;  %v3925_v45 = vmul.f32 %v3669_v34, %v3669_v34  ;;  %v3171_v33 = vld [vmem:[%s4761_s26 + $0x3d8] sm:$0xff] }
 0x346   : > { %v3427_v34 = vld [vmem:[%s4767_s7 + $0x3d8] sm:$0xff] }
 0x347   : > { %v4167_v55 = vadd.f32 %v4166_v50, %v3912_v44  ;;  %v3671_v44 = vsub.f32 %v3159_v37, %v3415_v38  ;;  %v3926_v50 = vmul.f32 %v3670_v39, %v3670_v39  ;;  %v3172_v38 = vld [vmem:[%s4761_s26 + $0x3e0] sm:$0xff] }
 0x348   : > { %v3428_v39 = vld [vmem:[%s4767_s7 + $0x3e0] sm:$0xff] }
 0x349   : > { %v4168_v59 = vadd.f32 %v4167_v55, %v3913_v49  ;;  %v3672_v49 = vsub.f32 %v3160_v42, %v3416_v43  ;;  %v3927_v55 = vmul.f32 %v3671_v44, %v3671_v44  ;;  %v3173_v43 = vld [vmem:[%s4761_s26 + $0x3e8] sm:$0xff] }
 0x34a   : > { %v3429_v44 = vld [vmem:[%s4767_s7 + $0x3e8] sm:$0xff] }
 0x34b   : > { %v4169_v0 = vadd.f32 %v4168_v59, %v3914_v54  ;;  %v3673_v54 = vsub.f32 %v3161_v47, %v3417_v48  ;;  %v3928_v59 = vmul.f32 %v3672_v49, %v3672_v49  ;;  %v3174_v48 = vld [vmem:[%s4761_s26 + $0x3f0] sm:$0xff] }
 0x34c   : > { %v3430_v49 = vld [vmem:[%s4767_s7 + $0x3f0] sm:$0xff] }
 0x34d   : > { %v4170_v5 = vadd.f32 %v4169_v0, %v3915_v58  ;;  %v3674_v58 = vsub.f32 %v3162_v52, %v3418_v53  ;;  %v3929_v0 = vmul.f32 %v3673_v54, %v3673_v54  ;;  %v3175_v53 = vld [vmem:[%s4761_s26 + $0x3f8] sm:$0xff] }
 0x34e   : > { %v3431_v54 = vld [vmem:[%s4767_s7 + $0x3f8] sm:$0xff] }
 0x34f   : > { %v4171_v11 = vadd.f32 %v4170_v5, %v3916_v63  ;;  %v3675_v63 = vsub.f32 %v3163_v56, %v3419_v57  ;;  %v3930_v5 = vmul.f32 %v3674_v58, %v3674_v58  ;;  %v3176_v57 = vld [vmem:[%s4761_s26 + $0x400] sm:$0xff] }
 0x350   : > { %v3432_v58 = vld [vmem:[%s4767_s7 + $0x400] sm:$0xff] }
 0x351   : > { %v4172_v16 = vadd.f32 %v4171_v11, %v3917_v4  ;;  %v3676_v4 = vsub.f32 %v3164_v61, %v3420_v62  ;;  %v3931_v11 = vmul.f32 %v3675_v63, %v3675_v63  ;;  %v3177_v62 = vld [vmem:[%s4761_s26 + $0x408] sm:$0xff] }
 0x352   : > { %v3433_v63 = vld [vmem:[%s4767_s7 + $0x408] sm:$0xff] }
 0x353   : > { %v4173_v21 = vadd.f32 %v4172_v16, %v3918_v10  ;;  %v3677_v10 = vsub.f32 %v3165_v3, %v3421_v8  ;;  %v3932_v16 = vmul.f32 %v3676_v4, %v3676_v4  ;;  %v3178_v8 = vld [vmem:[%s4761_s26 + $0x410] sm:$0xff] }
 0x354   : > { %v3434_v4 = vld [vmem:[%s4767_s7 + $0x410] sm:$0xff] }
 0x355   : > { %v4174_v26 = vadd.f32 %v4173_v21, %v3919_v15  ;;  %v3678_v15 = vsub.f32 %v3166_v7, %v3422_v9  ;;  %v3933_v21 = vmul.f32 %v3677_v10, %v3677_v10  ;;  %v3179_v9 = vld [vmem:[%s4761_s26 + $0x418] sm:$0xff] }
 0x356   : > { %v3435_v10 = vld [vmem:[%s4767_s7 + $0x418] sm:$0xff] }
 0x357   : > { %v4175_v31 = vadd.f32 %v4174_v26, %v3920_v20  ;;  %v3679_v20 = vsub.f32 %v3167_v13, %v3423_v14  ;;  %v3934_v26 = vmul.f32 %v3678_v15, %v3678_v15  ;;  %v3180_v14 = vld [vmem:[%s4761_s26 + $0x420] sm:$0xff] }
 0x358   : > { %v3436_v15 = vld [vmem:[%s4767_s7 + $0x420] sm:$0xff] }
 0x359   : > { %v4176_v36 = vadd.f32 %v4175_v31, %v3921_v25  ;;  %v3680_v25 = vsub.f32 %v3168_v18, %v3424_v19  ;;  %v3935_v31 = vmul.f32 %v3679_v20, %v3679_v20  ;;  %v3181_v19 = vld [vmem:[%s4761_s26 + $0x428] sm:$0xff] }
 0x35a   : > { %v3437_v20 = vld [vmem:[%s4767_s7 + $0x428] sm:$0xff] }
 0x35b   : > { %v4177_v41 = vadd.f32 %v4176_v36, %v3922_v30  ;;  %v3681_v30 = vsub.f32 %v3169_v23, %v3425_v24  ;;  %v3936_v36 = vmul.f32 %v3680_v25, %v3680_v25  ;;  %v3182_v24 = vld [vmem:[%s4761_s26 + $0x430] sm:$0xff] }
 0x35c   : > { %v3438_v25 = vld [vmem:[%s4767_s7 + $0x430] sm:$0xff] }
 0x35d   : > { %v4178_v46 = vadd.f32 %v4177_v41, %v3923_v35  ;;  %v3682_v35 = vsub.f32 %v3170_v28, %v3426_v29  ;;  %v3937_v41 = vmul.f32 %v3681_v30, %v3681_v30  ;;  %v3183_v29 = vld [vmem:[%s4761_s26 + $0x438] sm:$0xff] }
 0x35e   : > { %v3439_v30 = vld [vmem:[%s4767_s7 + $0x438] sm:$0xff] }
 0x35f   : > { %v4179_v51 = vadd.f32 %v4178_v46, %v3924_v40  ;;  %v3683_v40 = vsub.f32 %v3171_v33, %v3427_v34  ;;  %v3938_v46 = vmul.f32 %v3682_v35, %v3682_v35  ;;  %v3184_v34 = vld [vmem:[%s4761_s26 + $0x440] sm:$0xff] }
 0x360   : > { %v3440_v35 = vld [vmem:[%s4767_s7 + $0x440] sm:$0xff] }
 0x361   : > { %v4180_v2 = vadd.f32 %v4179_v51, %v3925_v45  ;;  %v3684_v45 = vsub.f32 %v3172_v38, %v3428_v39  ;;  %v3939_v51 = vmul.f32 %v3683_v40, %v3683_v40  ;;  %v3185_v39 = vld [vmem:[%s4761_s26 + $0x448] sm:$0xff] }
 0x362   : > { %v3441_v40 = vld [vmem:[%s4767_s7 + $0x448] sm:$0xff] }
 0x363   : > { %v4181_v60 = vadd.f32 %v4180_v2, %v3926_v50  ;;  %v3685_v50 = vsub.f32 %v3173_v43, %v3429_v44  ;;  %v3940_v2 = vmul.f32 %v3684_v45, %v3684_v45  ;;  %v3186_v44 = vld [vmem:[%s4761_s26 + $0x450] sm:$0xff] }
 0x364   : > { %v3442_v45 = vld [vmem:[%s4767_s7 + $0x450] sm:$0xff] }
 0x365   : > { %v4182_v1 = vadd.f32 %v4181_v60, %v3927_v55  ;;  %v3686_v55 = vsub.f32 %v3174_v48, %v3430_v49  ;;  %v3941_v60 = vmul.f32 %v3685_v50, %v3685_v50  ;;  %v3187_v49 = vld [vmem:[%s4761_s26 + $0x458] sm:$0xff] }
 0x366   : > { %v3443_v50 = vld [vmem:[%s4767_s7 + $0x458] sm:$0xff] }
 0x367   : > { %v4183_v6 = vadd.f32 %v4182_v1, %v3928_v59  ;;  %v3687_v59 = vsub.f32 %v3175_v53, %v3431_v54  ;;  %v3942_v1 = vmul.f32 %v3686_v55, %v3686_v55  ;;  %v3188_v54 = vld [vmem:[%s4761_s26 + $0x460] sm:$0xff] }
 0x368   : > { %v3444_v55 = vld [vmem:[%s4767_s7 + $0x460] sm:$0xff] }
 0x369   : > { %v4184_v12 = vadd.f32 %v4183_v6, %v3929_v0  ;;  %v3688_v0 = vsub.f32 %v3176_v57, %v3432_v58  ;;  %v3943_v6 = vmul.f32 %v3687_v59, %v3687_v59  ;;  %v3189_v58 = vld [vmem:[%s4761_s26 + $0x468] sm:$0xff] }
 0x36a   : > { %v3445_v59 = vld [vmem:[%s4767_s7 + $0x468] sm:$0xff] }
 0x36b   : > { %v4185_v17 = vadd.f32 %v4184_v12, %v3930_v5  ;;  %v3689_v5 = vsub.f32 %v3177_v62, %v3433_v63  ;;  %v3944_v12 = vmul.f32 %v3688_v0, %v3688_v0  ;;  %v3190_v63 = vld [vmem:[%s4761_s26 + $0x470] sm:$0xff] }
 0x36c   : > { %v3446_v0 = vld [vmem:[%s4767_s7 + $0x470] sm:$0xff] }
 0x36d   : > { %v4186_v22 = vadd.f32 %v4185_v17, %v3931_v11  ;;  %v3690_v11 = vsub.f32 %v3178_v8, %v3434_v4  ;;  %v3945_v17 = vmul.f32 %v3689_v5, %v3689_v5  ;;  %v3191_v4 = vld [vmem:[%s4761_s26 + $0x478] sm:$0xff] }
 0x36e   : > { %v3447_v5 = vld [vmem:[%s4767_s7 + $0x478] sm:$0xff] }
 0x36f   : > { %v4187_v27 = vadd.f32 %v4186_v22, %v3932_v16  ;;  %v3691_v16 = vsub.f32 %v3179_v9, %v3435_v10  ;;  %v3946_v22 = vmul.f32 %v3690_v11, %v3690_v11  ;;  %v3192_v10 = vld [vmem:[%s4761_s26 + $0x480] sm:$0xff] }
 0x370   : > { %v3448_v11 = vld [vmem:[%s4767_s7 + $0x480] sm:$0xff] }
 0x371   : > { %v4188_v32 = vadd.f32 %v4187_v27, %v3933_v21  ;;  %v3692_v21 = vsub.f32 %v3180_v14, %v3436_v15  ;;  %v3947_v27 = vmul.f32 %v3691_v16, %v3691_v16  ;;  %v3193_v15 = vld [vmem:[%s4761_s26 + $0x488] sm:$0xff] }
 0x372   : > { %v3449_v16 = vld [vmem:[%s4767_s7 + $0x488] sm:$0xff] }
 0x373   : > { %v4189_v37 = vadd.f32 %v4188_v32, %v3934_v26  ;;  %v3693_v26 = vsub.f32 %v3181_v19, %v3437_v20  ;;  %v3948_v32 = vmul.f32 %v3692_v21, %v3692_v21  ;;  %v3194_v20 = vld [vmem:[%s4761_s26 + $0x490] sm:$0xff] }
 0x374   : > { %v3450_v21 = vld [vmem:[%s4767_s7 + $0x490] sm:$0xff] }
 0x375   : > { %v4190_v42 = vadd.f32 %v4189_v37, %v3935_v31  ;;  %v3694_v31 = vsub.f32 %v3182_v24, %v3438_v25  ;;  %v3949_v37 = vmul.f32 %v3693_v26, %v3693_v26  ;;  %v3195_v25 = vld [vmem:[%s4761_s26 + $0x498] sm:$0xff] }
 0x376   : > { %v3451_v26 = vld [vmem:[%s4767_s7 + $0x498] sm:$0xff] }
 0x377   : > { %v4191_v47 = vadd.f32 %v4190_v42, %v3936_v36  ;;  %v3695_v36 = vsub.f32 %v3183_v29, %v3439_v30  ;;  %v3950_v42 = vmul.f32 %v3694_v31, %v3694_v31  ;;  %v3196_v30 = vld [vmem:[%s4761_s26 + $0x4a0] sm:$0xff] }
 0x378   : > { %v3452_v31 = vld [vmem:[%s4767_s7 + $0x4a0] sm:$0xff] }
 0x379   : > { %v4192_v52 = vadd.f32 %v4191_v47, %v3937_v41  ;;  %v3696_v41 = vsub.f32 %v3184_v34, %v3440_v35  ;;  %v3951_v47 = vmul.f32 %v3695_v36, %v3695_v36  ;;  %v3197_v35 = vld [vmem:[%s4761_s26 + $0x4a8] sm:$0xff] }
 0x37a   : > { %v3453_v36 = vld [vmem:[%s4767_s7 + $0x4a8] sm:$0xff] }
 0x37b   : > { %v4193_v56 = vadd.f32 %v4192_v52, %v3938_v46  ;;  %v3697_v46 = vsub.f32 %v3185_v39, %v3441_v40  ;;  %v3952_v52 = vmul.f32 %v3696_v41, %v3696_v41  ;;  %v3198_v40 = vld [vmem:[%s4761_s26 + $0x4b0] sm:$0xff] }
 0x37c   : > { %v3454_v41 = vld [vmem:[%s4767_s7 + $0x4b0] sm:$0xff] }
 0x37d   : > { %v4194_v61 = vadd.f32 %v4193_v56, %v3939_v51  ;;  %v3698_v51 = vsub.f32 %v3186_v44, %v3442_v45  ;;  %v3953_v56 = vmul.f32 %v3697_v46, %v3697_v46  ;;  %v3199_v45 = vld [vmem:[%s4761_s26 + $0x4b8] sm:$0xff] }
 0x37e   : > { %v3455_v46 = vld [vmem:[%s4767_s7 + $0x4b8] sm:$0xff] }
 0x37f   : > { %v4195_v3 = vadd.f32 %v4194_v61, %v3940_v2  ;;  %v3699_v2 = vsub.f32 %v3187_v49, %v3443_v50  ;;  %v3954_v61 = vmul.f32 %v3698_v51, %v3698_v51  ;;  %v3200_v50 = vld [vmem:[%s4761_s26 + $0x4c0] sm:$0xff] }
 0x380   : > { %v3456_v51 = vld [vmem:[%s4767_s7 + $0x4c0] sm:$0xff] }
 0x381   : > { %v4196_v7 = vadd.f32 %v4195_v3, %v3941_v60  ;;  %v3700_v60 = vsub.f32 %v3188_v54, %v3444_v55  ;;  %v3955_v3 = vmul.f32 %v3699_v2, %v3699_v2  ;;  %v3201_v55 = vld [vmem:[%s4761_s26 + $0x4c8] sm:$0xff] }
 0x382   : > { %v3457_v2 = vld [vmem:[%s4767_s7 + $0x4c8] sm:$0xff] }
 0x383   : > { %v4197_v13 = vadd.f32 %v4196_v7, %v3942_v1  ;;  %v3701_v1 = vsub.f32 %v3189_v58, %v3445_v59  ;;  %v3956_v7 = vmul.f32 %v3700_v60, %v3700_v60  ;;  %v3202_v59 = vld [vmem:[%s4761_s26 + $0x4d0] sm:$0xff] }
 0x384   : > { %v3458_v60 = vld [vmem:[%s4767_s7 + $0x4d0] sm:$0xff] }
 0x385   : > { %v4198_v18 = vadd.f32 %v4197_v13, %v3943_v6  ;;  %v3702_v6 = vsub.f32 %v3190_v63, %v3446_v0  ;;  %v3957_v13 = vmul.f32 %v3701_v1, %v3701_v1  ;;  %v3203_v0 = vld [vmem:[%s4761_s26 + $0x4d8] sm:$0xff] }
 0x386   : > { %v3459_v1 = vld [vmem:[%s4767_s7 + $0x4d8] sm:$0xff] }
 0x387   : > { %v4199_v23 = vadd.f32 %v4198_v18, %v3944_v12  ;;  %v3703_v12 = vsub.f32 %v3191_v4, %v3447_v5  ;;  %v3958_v18 = vmul.f32 %v3702_v6, %v3702_v6  ;;  %v3204_v5 = vld [vmem:[%s4761_s26 + $0x4e0] sm:$0xff] }
 0x388   : > { %v3460_v6 = vld [vmem:[%s4767_s7 + $0x4e0] sm:$0xff] }
 0x389   : > { %v4200_v28 = vadd.f32 %v4199_v23, %v3945_v17  ;;  %v3704_v17 = vsub.f32 %v3192_v10, %v3448_v11  ;;  %v3959_v23 = vmul.f32 %v3703_v12, %v3703_v12  ;;  %v3205_v11 = vld [vmem:[%s4761_s26 + $0x4e8] sm:$0xff] }
 0x38a   : > { %v3461_v12 = vld [vmem:[%s4767_s7 + $0x4e8] sm:$0xff] }
 0x38b   : > { %v4201_v33 = vadd.f32 %v4200_v28, %v3946_v22  ;;  %v3705_v22 = vsub.f32 %v3193_v15, %v3449_v16  ;;  %v3960_v28 = vmul.f32 %v3704_v17, %v3704_v17  ;;  %v3206_v16 = vld [vmem:[%s4761_s26 + $0x4f0] sm:$0xff] }
 0x38c   : > { %v3462_v17 = vld [vmem:[%s4767_s7 + $0x4f0] sm:$0xff] }
 0x38d   : > { %v4202_v38 = vadd.f32 %v4201_v33, %v3947_v27  ;;  %v3706_v27 = vsub.f32 %v3194_v20, %v3450_v21  ;;  %v3961_v33 = vmul.f32 %v3705_v22, %v3705_v22  ;;  %v3207_v21 = vld [vmem:[%s4761_s26 + $0x4f8] sm:$0xff] }
 0x38e   : > { %v3463_v22 = vld [vmem:[%s4767_s7 + $0x4f8] sm:$0xff] }
 0x38f   : > { %v4203_v43 = vadd.f32 %v4202_v38, %v3948_v32  ;;  %v3707_v32 = vsub.f32 %v3195_v25, %v3451_v26  ;;  %v3962_v38 = vmul.f32 %v3706_v27, %v3706_v27  ;;  %v3208_v26 = vld [vmem:[%s4761_s26 + $0x500] sm:$0xff] }
 0x390   : > { %v3464_v27 = vld [vmem:[%s4767_s7 + $0x500] sm:$0xff] }
 0x391   : > { %v4204_v48 = vadd.f32 %v4203_v43, %v3949_v37  ;;  %v3708_v37 = vsub.f32 %v3196_v30, %v3452_v31  ;;  %v3963_v43 = vmul.f32 %v3707_v32, %v3707_v32  ;;  %v3209_v31 = vld [vmem:[%s4761_s26 + $0x508] sm:$0xff] }
 0x392   : > { %v3465_v32 = vld [vmem:[%s4767_s7 + $0x508] sm:$0xff] }
 0x393   : > { %v4205_v53 = vadd.f32 %v4204_v48, %v3950_v42  ;;  %v3709_v42 = vsub.f32 %v3197_v35, %v3453_v36  ;;  %v3964_v48 = vmul.f32 %v3708_v37, %v3708_v37  ;;  %v3210_v36 = vld [vmem:[%s4761_s26 + $0x510] sm:$0xff] }
 0x394   : > { %v3466_v37 = vld [vmem:[%s4767_s7 + $0x510] sm:$0xff] }
 0x395   : > { %v4206_v57 = vadd.f32 %v4205_v53, %v3951_v47  ;;  %v3710_v47 = vsub.f32 %v3198_v40, %v3454_v41  ;;  %v3965_v53 = vmul.f32 %v3709_v42, %v3709_v42  ;;  %v3211_v41 = vld [vmem:[%s4761_s26 + $0x518] sm:$0xff] }
 0x396   : > { %v3467_v42 = vld [vmem:[%s4767_s7 + $0x518] sm:$0xff] }
 0x397   : > { %v4207_v62 = vadd.f32 %v4206_v57, %v3952_v52  ;;  %v3711_v52 = vsub.f32 %v3199_v45, %v3455_v46  ;;  %v3966_v57 = vmul.f32 %v3710_v47, %v3710_v47  ;;  %v3212_v46 = vld [vmem:[%s4761_s26 + $0x520] sm:$0xff] }
 0x398   : > { %v3468_v47 = vld [vmem:[%s4767_s7 + $0x520] sm:$0xff] }
 0x399   : > { %v4208_v8 = vadd.f32 %v4207_v62, %v3953_v56  ;;  %v3712_v56 = vsub.f32 %v3200_v50, %v3456_v51  ;;  %v3967_v62 = vmul.f32 %v3711_v52, %v3711_v52  ;;  %v3213_v51 = vld [vmem:[%s4761_s26 + $0x528] sm:$0xff] }
 0x39a   : > { %v3469_v52 = vld [vmem:[%s4767_s7 + $0x528] sm:$0xff] }
 0x39b   : > { %v4209_v9 = vadd.f32 %v4208_v8, %v3954_v61  ;;  %v3713_v61 = vsub.f32 %v3201_v55, %v3457_v2  ;;  %v3968_v8 = vmul.f32 %v3712_v56, %v3712_v56  ;;  %v3214_v2 = vld [vmem:[%s4761_s26 + $0x530] sm:$0xff] }
 0x39c   : > { %v3470_v56 = vld [vmem:[%s4767_s7 + $0x530] sm:$0xff] }
 0x39d   : > { %v4210_v14 = vadd.f32 %v4209_v9, %v3955_v3  ;;  %v3714_v3 = vsub.f32 %v3202_v59, %v3458_v60  ;;  %v3969_v9 = vmul.f32 %v3713_v61, %v3713_v61  ;;  %v3215_v60 = vld [vmem:[%s4761_s26 + $0x538] sm:$0xff] }
 0x39e   : > { %v3471_v61 = vld [vmem:[%s4767_s7 + $0x538] sm:$0xff] }
 0x39f   : > { %v4211_v19 = vadd.f32 %v4210_v14, %v3956_v7  ;;  %v3715_v7 = vsub.f32 %v3203_v0, %v3459_v1  ;;  %v3970_v14 = vmul.f32 %v3714_v3, %v3714_v3  ;;  %v3216_v1 = vld [vmem:[%s4761_s26 + $0x540] sm:$0xff] }
 0x3a0   : > { %v3472_v3 = vld [vmem:[%s4767_s7 + $0x540] sm:$0xff] }
 0x3a1   : > { %v4212_v24 = vadd.f32 %v4211_v19, %v3957_v13  ;;  %v3716_v13 = vsub.f32 %v3204_v5, %v3460_v6  ;;  %v3971_v19 = vmul.f32 %v3715_v7, %v3715_v7  ;;  %v3217_v6 = vld [vmem:[%s4761_s26 + $0x548] sm:$0xff] }
 0x3a2   : > { %v3473_v7 = vld [vmem:[%s4767_s7 + $0x548] sm:$0xff] }
 0x3a3   : > { %v4213_v29 = vadd.f32 %v4212_v24, %v3958_v18  ;;  %v3717_v18 = vsub.f32 %v3205_v11, %v3461_v12  ;;  %v3972_v24 = vmul.f32 %v3716_v13, %v3716_v13  ;;  %v3218_v12 = vld [vmem:[%s4761_s26 + $0x550] sm:$0xff] }
 0x3a4   : > { %v3474_v13 = vld [vmem:[%s4767_s7 + $0x550] sm:$0xff] }
 0x3a5   : > { %v4214_v34 = vadd.f32 %v4213_v29, %v3959_v23  ;;  %v3718_v23 = vsub.f32 %v3206_v16, %v3462_v17  ;;  %v3973_v29 = vmul.f32 %v3717_v18, %v3717_v18  ;;  %v3219_v17 = vld [vmem:[%s4761_s26 + $0x558] sm:$0xff] }
 0x3a6   : > { %v3475_v18 = vld [vmem:[%s4767_s7 + $0x558] sm:$0xff] }
 0x3a7   : > { %v4215_v39 = vadd.f32 %v4214_v34, %v3960_v28  ;;  %v3719_v28 = vsub.f32 %v3207_v21, %v3463_v22  ;;  %v3974_v34 = vmul.f32 %v3718_v23, %v3718_v23  ;;  %v3220_v22 = vld [vmem:[%s4761_s26 + $0x560] sm:$0xff] }
 0x3a8   : > { %v3476_v23 = vld [vmem:[%s4767_s7 + $0x560] sm:$0xff] }
 0x3a9   : > { %v4216_v44 = vadd.f32 %v4215_v39, %v3961_v33  ;;  %v3720_v33 = vsub.f32 %v3208_v26, %v3464_v27  ;;  %v3975_v39 = vmul.f32 %v3719_v28, %v3719_v28  ;;  %v3221_v27 = vld [vmem:[%s4761_s26 + $0x568] sm:$0xff] }
 0x3aa   : > { %v3477_v28 = vld [vmem:[%s4767_s7 + $0x568] sm:$0xff] }
 0x3ab   : > { %v4217_v49 = vadd.f32 %v4216_v44, %v3962_v38  ;;  %v3721_v38 = vsub.f32 %v3209_v31, %v3465_v32  ;;  %v3976_v44 = vmul.f32 %v3720_v33, %v3720_v33  ;;  %v3222_v32 = vld [vmem:[%s4761_s26 + $0x570] sm:$0xff] }
 0x3ac   : > { %v3478_v33 = vld [vmem:[%s4767_s7 + $0x570] sm:$0xff] }
 0x3ad   : > { %v4218_v54 = vadd.f32 %v4217_v49, %v3963_v43  ;;  %v3722_v43 = vsub.f32 %v3210_v36, %v3466_v37  ;;  %v3977_v49 = vmul.f32 %v3721_v38, %v3721_v38  ;;  %v3223_v37 = vld [vmem:[%s4761_s26 + $0x578] sm:$0xff] }
 0x3ae   : > { %v3479_v38 = vld [vmem:[%s4767_s7 + $0x578] sm:$0xff] }
 0x3af   : > { %v4219_v58 = vadd.f32 %v4218_v54, %v3964_v48  ;;  %v3723_v48 = vsub.f32 %v3211_v41, %v3467_v42  ;;  %v3978_v54 = vmul.f32 %v3722_v43, %v3722_v43  ;;  %v3224_v42 = vld [vmem:[%s4761_s26 + $0x580] sm:$0xff] }
 0x3b0   : > { %v3480_v43 = vld [vmem:[%s4767_s7 + $0x580] sm:$0xff] }
 0x3b1   : > { %v4220_v63 = vadd.f32 %v4219_v58, %v3965_v53  ;;  %v3724_v53 = vsub.f32 %v3212_v46, %v3468_v47  ;;  %v3979_v58 = vmul.f32 %v3723_v48, %v3723_v48  ;;  %v3225_v47 = vld [vmem:[%s4761_s26 + $0x588] sm:$0xff] }
 0x3b2   : > { %v3481_v48 = vld [vmem:[%s4767_s7 + $0x588] sm:$0xff] }
 0x3b3   : > { %v4221_v4 = vadd.f32 %v4220_v63, %v3966_v57  ;;  %v3725_v57 = vsub.f32 %v3213_v51, %v3469_v52  ;;  %v3980_v63 = vmul.f32 %v3724_v53, %v3724_v53  ;;  %v3226_v52 = vld [vmem:[%s4761_s26 + $0x590] sm:$0xff] }
 0x3b4   : > { %v3482_v53 = vld [vmem:[%s4767_s7 + $0x590] sm:$0xff] }
 0x3b5   : > { %v4222_v10 = vadd.f32 %v4221_v4, %v3967_v62  ;;  %v3726_v62 = vsub.f32 %v3214_v2, %v3470_v56  ;;  %v3981_v4 = vmul.f32 %v3725_v57, %v3725_v57  ;;  %v3227_v56 = vld [vmem:[%s4761_s26 + $0x598] sm:$0xff] }
 0x3b6   : > { %v3483_v57 = vld [vmem:[%s4767_s7 + $0x598] sm:$0xff] }
 0x3b7   : > { %v4223_v15 = vadd.f32 %v4222_v10, %v3968_v8  ;;  %v3727_v8 = vsub.f32 %v3215_v60, %v3471_v61  ;;  %v3982_v10 = vmul.f32 %v3726_v62, %v3726_v62  ;;  %v3228_v61 = vld [vmem:[%s4761_s26 + $0x5a0] sm:$0xff] }
 0x3b8   : > { %v3484_v62 = vld [vmem:[%s4767_s7 + $0x5a0] sm:$0xff] }
 0x3b9   : > { %v4224_v20 = vadd.f32 %v4223_v15, %v3969_v9  ;;  %v3728_v9 = vsub.f32 %v3216_v1, %v3472_v3  ;;  %v3983_v15 = vmul.f32 %v3727_v8, %v3727_v8  ;;  %v3229_v3 = vld [vmem:[%s4761_s26 + $0x5a8] sm:$0xff] }
 0x3ba   : > { %v3485_v8 = vld [vmem:[%s4767_s7 + $0x5a8] sm:$0xff] }
 0x3bb   : > { %v4225_v25 = vadd.f32 %v4224_v20, %v3970_v14  ;;  %v3729_v14 = vsub.f32 %v3217_v6, %v3473_v7  ;;  %v3984_v20 = vmul.f32 %v3728_v9, %v3728_v9  ;;  %v3230_v7 = vld [vmem:[%s4761_s26 + $0x5b0] sm:$0xff] }
 0x3bc   : > { %v3486_v9 = vld [vmem:[%s4767_s7 + $0x5b0] sm:$0xff] }
 0x3bd   : > { %v4226_v30 = vadd.f32 %v4225_v25, %v3971_v19  ;;  %v3730_v19 = vsub.f32 %v3218_v12, %v3474_v13  ;;  %v3985_v25 = vmul.f32 %v3729_v14, %v3729_v14  ;;  %v3231_v13 = vld [vmem:[%s4761_s26 + $0x5b8] sm:$0xff] }
 0x3be   : > { %v3487_v14 = vld [vmem:[%s4767_s7 + $0x5b8] sm:$0xff] }
 0x3bf   : > { %v4227_v35 = vadd.f32 %v4226_v30, %v3972_v24  ;;  %v3731_v24 = vsub.f32 %v3219_v17, %v3475_v18  ;;  %v3986_v30 = vmul.f32 %v3730_v19, %v3730_v19  ;;  %v3232_v18 = vld [vmem:[%s4761_s26 + $0x5c0] sm:$0xff] }
 0x3c0   : > { %v3488_v19 = vld [vmem:[%s4767_s7 + $0x5c0] sm:$0xff] }
 0x3c1   : > { %v4228_v40 = vadd.f32 %v4227_v35, %v3973_v29  ;;  %v3732_v29 = vsub.f32 %v3220_v22, %v3476_v23  ;;  %v3987_v35 = vmul.f32 %v3731_v24, %v3731_v24  ;;  %v3233_v23 = vld [vmem:[%s4761_s26 + $0x5c8] sm:$0xff] }
 0x3c2   : > { %v3489_v24 = vld [vmem:[%s4767_s7 + $0x5c8] sm:$0xff] }
 0x3c3   : > { %v4229_v45 = vadd.f32 %v4228_v40, %v3974_v34  ;;  %v3733_v34 = vsub.f32 %v3221_v27, %v3477_v28  ;;  %v3988_v40 = vmul.f32 %v3732_v29, %v3732_v29  ;;  %v3234_v28 = vld [vmem:[%s4761_s26 + $0x5d0] sm:$0xff] }
 0x3c4   : > { %v3490_v29 = vld [vmem:[%s4767_s7 + $0x5d0] sm:$0xff] }
 0x3c5   : > { %v4230_v50 = vadd.f32 %v4229_v45, %v3975_v39  ;;  %v3734_v39 = vsub.f32 %v3222_v32, %v3478_v33  ;;  %v3989_v45 = vmul.f32 %v3733_v34, %v3733_v34  ;;  %v3235_v33 = vld [vmem:[%s4761_s26 + $0x5d8] sm:$0xff] }
 0x3c6   : > { %v3491_v34 = vld [vmem:[%s4767_s7 + $0x5d8] sm:$0xff] }
 0x3c7   : > { %v4231_v55 = vadd.f32 %v4230_v50, %v3976_v44  ;;  %v3735_v44 = vsub.f32 %v3223_v37, %v3479_v38  ;;  %v3990_v50 = vmul.f32 %v3734_v39, %v3734_v39  ;;  %v3236_v38 = vld [vmem:[%s4761_s26 + $0x5e0] sm:$0xff] }
 0x3c8   : > { %v3492_v39 = vld [vmem:[%s4767_s7 + $0x5e0] sm:$0xff] }
 0x3c9   : > { %v4232_v59 = vadd.f32 %v4231_v55, %v3977_v49  ;;  %v3736_v49 = vsub.f32 %v3224_v42, %v3480_v43  ;;  %v3991_v55 = vmul.f32 %v3735_v44, %v3735_v44  ;;  %v3237_v43 = vld [vmem:[%s4761_s26 + $0x5e8] sm:$0xff] }
 0x3ca   : > { %v3493_v44 = vld [vmem:[%s4767_s7 + $0x5e8] sm:$0xff] }
 0x3cb   : > { %v4233_v0 = vadd.f32 %v4232_v59, %v3978_v54  ;;  %v3737_v54 = vsub.f32 %v3225_v47, %v3481_v48  ;;  %v3992_v59 = vmul.f32 %v3736_v49, %v3736_v49  ;;  %v3238_v48 = vld [vmem:[%s4761_s26 + $0x5f0] sm:$0xff] }
 0x3cc   : > { %v3494_v49 = vld [vmem:[%s4767_s7 + $0x5f0] sm:$0xff] }
 0x3cd   : > { %v4234_v5 = vadd.f32 %v4233_v0, %v3979_v58  ;;  %v3738_v58 = vsub.f32 %v3226_v52, %v3482_v53  ;;  %v3993_v0 = vmul.f32 %v3737_v54, %v3737_v54  ;;  %v3239_v53 = vld [vmem:[%s4761_s26 + $0x5f8] sm:$0xff] }
 0x3ce   : > { %v3495_v54 = vld [vmem:[%s4767_s7 + $0x5f8] sm:$0xff] }
 0x3cf   : > { %v4235_v11 = vadd.f32 %v4234_v5, %v3980_v63  ;;  %v3739_v63 = vsub.f32 %v3227_v56, %v3483_v57  ;;  %v3994_v5 = vmul.f32 %v3738_v58, %v3738_v58  ;;  %v3240_v57 = vld [vmem:[%s4761_s26 + $0x600] sm:$0xff] }
 0x3d0   : > { %v3496_v58 = vld [vmem:[%s4767_s7 + $0x600] sm:$0xff] }
 0x3d1   : > { %v4236_v16 = vadd.f32 %v4235_v11, %v3981_v4  ;;  %v3740_v4 = vsub.f32 %v3228_v61, %v3484_v62  ;;  %v3995_v11 = vmul.f32 %v3739_v63, %v3739_v63  ;;  %v3241_v62 = vld [vmem:[%s4761_s26 + $0x608] sm:$0xff] }
 0x3d2   : > { %v3497_v63 = vld [vmem:[%s4767_s7 + $0x608] sm:$0xff] }
 0x3d3   : > { %v4237_v21 = vadd.f32 %v4236_v16, %v3982_v10  ;;  %v3741_v10 = vsub.f32 %v3229_v3, %v3485_v8  ;;  %v3996_v16 = vmul.f32 %v3740_v4, %v3740_v4  ;;  %v3242_v8 = vld [vmem:[%s4761_s26 + $0x610] sm:$0xff] }
 0x3d4   : > { %v3498_v4 = vld [vmem:[%s4767_s7 + $0x610] sm:$0xff] }
 0x3d5   : > { %v4238_v26 = vadd.f32 %v4237_v21, %v3983_v15  ;;  %v3742_v15 = vsub.f32 %v3230_v7, %v3486_v9  ;;  %v3997_v21 = vmul.f32 %v3741_v10, %v3741_v10  ;;  %v3243_v9 = vld [vmem:[%s4761_s26 + $0x618] sm:$0xff] }
 0x3d6   : > { %v3499_v10 = vld [vmem:[%s4767_s7 + $0x618] sm:$0xff] }
 0x3d7   : > { %v4239_v31 = vadd.f32 %v4238_v26, %v3984_v20  ;;  %v3743_v20 = vsub.f32 %v3231_v13, %v3487_v14  ;;  %v3998_v26 = vmul.f32 %v3742_v15, %v3742_v15  ;;  %v3244_v14 = vld [vmem:[%s4761_s26 + $0x620] sm:$0xff] }
 0x3d8   : > { %v3500_v15 = vld [vmem:[%s4767_s7 + $0x620] sm:$0xff] }
 0x3d9   : > { %v4240_v36 = vadd.f32 %v4239_v31, %v3985_v25  ;;  %v3744_v25 = vsub.f32 %v3232_v18, %v3488_v19  ;;  %v3999_v31 = vmul.f32 %v3743_v20, %v3743_v20  ;;  %v3245_v19 = vld [vmem:[%s4761_s26 + $0x628] sm:$0xff] }
 0x3da   : > { %v3501_v20 = vld [vmem:[%s4767_s7 + $0x628] sm:$0xff] }
 0x3db   : > { %v4241_v41 = vadd.f32 %v4240_v36, %v3986_v30  ;;  %v3745_v30 = vsub.f32 %v3233_v23, %v3489_v24  ;;  %v4000_v36 = vmul.f32 %v3744_v25, %v3744_v25  ;;  %v3246_v24 = vld [vmem:[%s4761_s26 + $0x630] sm:$0xff] }
 0x3dc   : > { %v3502_v25 = vld [vmem:[%s4767_s7 + $0x630] sm:$0xff] }
 0x3dd   : > { %v4242_v46 = vadd.f32 %v4241_v41, %v3987_v35  ;;  %v3746_v35 = vsub.f32 %v3234_v28, %v3490_v29  ;;  %v4001_v41 = vmul.f32 %v3745_v30, %v3745_v30  ;;  %v3247_v29 = vld [vmem:[%s4761_s26 + $0x638] sm:$0xff] }
 0x3de   : > { %v3503_v30 = vld [vmem:[%s4767_s7 + $0x638] sm:$0xff] }
 0x3df   : > { %v4243_v51 = vadd.f32 %v4242_v46, %v3988_v40  ;;  %v3747_v40 = vsub.f32 %v3235_v33, %v3491_v34  ;;  %v4002_v46 = vmul.f32 %v3746_v35, %v3746_v35  ;;  %v3248_v34 = vld [vmem:[%s4761_s26 + $0x640] sm:$0xff] }
 0x3e0   : > { %v3504_v35 = vld [vmem:[%s4767_s7 + $0x640] sm:$0xff] }
 0x3e1   : > { %v4244_v2 = vadd.f32 %v4243_v51, %v3989_v45  ;;  %v3748_v45 = vsub.f32 %v3236_v38, %v3492_v39  ;;  %v4003_v51 = vmul.f32 %v3747_v40, %v3747_v40  ;;  %v3249_v39 = vld [vmem:[%s4761_s26 + $0x648] sm:$0xff] }
 0x3e2   : > { %v3505_v40 = vld [vmem:[%s4767_s7 + $0x648] sm:$0xff] }
 0x3e3   : > { %v4245_v60 = vadd.f32 %v4244_v2, %v3990_v50  ;;  %v3749_v50 = vsub.f32 %v3237_v43, %v3493_v44  ;;  %v4004_v2 = vmul.f32 %v3748_v45, %v3748_v45  ;;  %v3250_v44 = vld [vmem:[%s4761_s26 + $0x650] sm:$0xff] }
 0x3e4   : > { %v3506_v45 = vld [vmem:[%s4767_s7 + $0x650] sm:$0xff] }
 0x3e5   : > { %v4246_v1 = vadd.f32 %v4245_v60, %v3991_v55  ;;  %v3750_v55 = vsub.f32 %v3238_v48, %v3494_v49  ;;  %v4005_v60 = vmul.f32 %v3749_v50, %v3749_v50  ;;  %v3251_v49 = vld [vmem:[%s4761_s26 + $0x658] sm:$0xff] }
 0x3e6   : > { %v3507_v50 = vld [vmem:[%s4767_s7 + $0x658] sm:$0xff] }
 0x3e7   : > { %v4247_v6 = vadd.f32 %v4246_v1, %v3992_v59  ;;  %v3751_v59 = vsub.f32 %v3239_v53, %v3495_v54  ;;  %v4006_v1 = vmul.f32 %v3750_v55, %v3750_v55  ;;  %v3252_v54 = vld [vmem:[%s4761_s26 + $0x660] sm:$0xff] }
 0x3e8   : > { %v3508_v55 = vld [vmem:[%s4767_s7 + $0x660] sm:$0xff] }
 0x3e9   : > { %v4248_v12 = vadd.f32 %v4247_v6, %v3993_v0  ;;  %v3752_v0 = vsub.f32 %v3240_v57, %v3496_v58  ;;  %v4007_v6 = vmul.f32 %v3751_v59, %v3751_v59  ;;  %v3253_v58 = vld [vmem:[%s4761_s26 + $0x668] sm:$0xff] }
 0x3ea   : > { %v3509_v59 = vld [vmem:[%s4767_s7 + $0x668] sm:$0xff] }
 0x3eb   : > { %v4249_v17 = vadd.f32 %v4248_v12, %v3994_v5  ;;  %v3753_v5 = vsub.f32 %v3241_v62, %v3497_v63  ;;  %v4008_v12 = vmul.f32 %v3752_v0, %v3752_v0  ;;  %v3254_v63 = vld [vmem:[%s4761_s26 + $0x670] sm:$0xff] }
 0x3ec   : > { %v3510_v0 = vld [vmem:[%s4767_s7 + $0x670] sm:$0xff] }
 0x3ed   : > { %v4250_v22 = vadd.f32 %v4249_v17, %v3995_v11  ;;  %v3754_v11 = vsub.f32 %v3242_v8, %v3498_v4  ;;  %v4009_v17 = vmul.f32 %v3753_v5, %v3753_v5  ;;  %v3255_v4 = vld [vmem:[%s4761_s26 + $0x678] sm:$0xff] }
 0x3ee   : > { %v3511_v5 = vld [vmem:[%s4767_s7 + $0x678] sm:$0xff] }
 0x3ef   : > { %v4251_v27 = vadd.f32 %v4250_v22, %v3996_v16  ;;  %v3755_v16 = vsub.f32 %v3243_v9, %v3499_v10  ;;  %v4010_v22 = vmul.f32 %v3754_v11, %v3754_v11  ;;  %v3256_v10 = vld [vmem:[%s4761_s26 + $0x680] sm:$0xff] }
 0x3f0   : > { %v3512_v11 = vld [vmem:[%s4767_s7 + $0x680] sm:$0xff] }
 0x3f1   : > { %v4252_v32 = vadd.f32 %v4251_v27, %v3997_v21  ;;  %v3756_v21 = vsub.f32 %v3244_v14, %v3500_v15  ;;  %v4011_v27 = vmul.f32 %v3755_v16, %v3755_v16  ;;  %v3257_v15 = vld [vmem:[%s4761_s26 + $0x688] sm:$0xff] }
 0x3f2   : > { %v3513_v16 = vld [vmem:[%s4767_s7 + $0x688] sm:$0xff] }
 0x3f3   : > { %v4253_v37 = vadd.f32 %v4252_v32, %v3998_v26  ;;  %v3757_v26 = vsub.f32 %v3245_v19, %v3501_v20  ;;  %v4012_v32 = vmul.f32 %v3756_v21, %v3756_v21  ;;  %v3258_v20 = vld [vmem:[%s4761_s26 + $0x690] sm:$0xff] }
 0x3f4   : > { %v3514_v21 = vld [vmem:[%s4767_s7 + $0x690] sm:$0xff] }
 0x3f5   : > { %v4254_v42 = vadd.f32 %v4253_v37, %v3999_v31  ;;  %v3758_v31 = vsub.f32 %v3246_v24, %v3502_v25  ;;  %v4013_v37 = vmul.f32 %v3757_v26, %v3757_v26  ;;  %v3259_v25 = vld [vmem:[%s4761_s26 + $0x698] sm:$0xff] }
 0x3f6   : > { %v3515_v26 = vld [vmem:[%s4767_s7 + $0x698] sm:$0xff] }
 0x3f7   : > { %v4255_v47 = vadd.f32 %v4254_v42, %v4000_v36  ;;  %v3759_v36 = vsub.f32 %v3247_v29, %v3503_v30  ;;  %v4014_v42 = vmul.f32 %v3758_v31, %v3758_v31  ;;  %v3260_v30 = vld [vmem:[%s4761_s26 + $0x6a0] sm:$0xff] }
 0x3f8   : > { %v3516_v31 = vld [vmem:[%s4767_s7 + $0x6a0] sm:$0xff] }
 0x3f9   : > { %v4256_v52 = vadd.f32 %v4255_v47, %v4001_v41  ;;  %v3760_v41 = vsub.f32 %v3248_v34, %v3504_v35  ;;  %v4015_v47 = vmul.f32 %v3759_v36, %v3759_v36  ;;  %v3261_v35 = vld [vmem:[%s4761_s26 + $0x6a8] sm:$0xff] }
 0x3fa   : > { %v3517_v36 = vld [vmem:[%s4767_s7 + $0x6a8] sm:$0xff] }
 0x3fb   : > { %v4257_v56 = vadd.f32 %v4256_v52, %v4002_v46  ;;  %v3761_v46 = vsub.f32 %v3249_v39, %v3505_v40  ;;  %v4016_v52 = vmul.f32 %v3760_v41, %v3760_v41  ;;  %v3262_v40 = vld [vmem:[%s4761_s26 + $0x6b0] sm:$0xff] }
 0x3fc   : > { %v3518_v41 = vld [vmem:[%s4767_s7 + $0x6b0] sm:$0xff] }
 0x3fd   : > { %v4258_v61 = vadd.f32 %v4257_v56, %v4003_v51  ;;  %v3762_v51 = vsub.f32 %v3250_v44, %v3506_v45  ;;  %v4017_v56 = vmul.f32 %v3761_v46, %v3761_v46  ;;  %v3263_v45 = vld [vmem:[%s4761_s26 + $0x6b8] sm:$0xff] }
 0x3fe   : > { %v3519_v46 = vld [vmem:[%s4767_s7 + $0x6b8] sm:$0xff] }
 0x3ff   : > { %v4259_v3 = vadd.f32 %v4258_v61, %v4004_v2  ;;  %v3763_v2 = vsub.f32 %v3251_v49, %v3507_v50  ;;  %v4018_v61 = vmul.f32 %v3762_v51, %v3762_v51  ;;  %v3264_v50 = vld [vmem:[%s4761_s26 + $0x6c0] sm:$0xff] }
 0x400   : > { %v3520_v51 = vld [vmem:[%s4767_s7 + $0x6c0] sm:$0xff] }
 0x401   : > { %v4260_v7 = vadd.f32 %v4259_v3, %v4005_v60  ;;  %v3764_v60 = vsub.f32 %v3252_v54, %v3508_v55  ;;  %v4019_v3 = vmul.f32 %v3763_v2, %v3763_v2  ;;  %v3265_v55 = vld [vmem:[%s4761_s26 + $0x6c8] sm:$0xff] }
 0x402   : > { %v3521_v2 = vld [vmem:[%s4767_s7 + $0x6c8] sm:$0xff] }
 0x403   : > { %v4261_v13 = vadd.f32 %v4260_v7, %v4006_v1  ;;  %v3765_v1 = vsub.f32 %v3253_v58, %v3509_v59  ;;  %v4020_v7 = vmul.f32 %v3764_v60, %v3764_v60  ;;  %v3266_v59 = vld [vmem:[%s4761_s26 + $0x6d0] sm:$0xff] }
 0x404   : > { %v3522_v60 = vld [vmem:[%s4767_s7 + $0x6d0] sm:$0xff] }
 0x405   : > { %v4262_v18 = vadd.f32 %v4261_v13, %v4007_v6  ;;  %v3766_v6 = vsub.f32 %v3254_v63, %v3510_v0  ;;  %v4021_v13 = vmul.f32 %v3765_v1, %v3765_v1  ;;  %v3267_v0 = vld [vmem:[%s4761_s26 + $0x6d8] sm:$0xff] }
 0x406   : > { %v3523_v1 = vld [vmem:[%s4767_s7 + $0x6d8] sm:$0xff] }
 0x407   : > { %v4263_v23 = vadd.f32 %v4262_v18, %v4008_v12  ;;  %v3767_v12 = vsub.f32 %v3255_v4, %v3511_v5  ;;  %v4022_v18 = vmul.f32 %v3766_v6, %v3766_v6  ;;  %v3268_v5 = vld [vmem:[%s4761_s26 + $0x6e0] sm:$0xff] }
 0x408   : > { %v3524_v6 = vld [vmem:[%s4767_s7 + $0x6e0] sm:$0xff] }
 0x409   : > { %v4264_v28 = vadd.f32 %v4263_v23, %v4009_v17  ;;  %v3768_v17 = vsub.f32 %v3256_v10, %v3512_v11  ;;  %v4023_v23 = vmul.f32 %v3767_v12, %v3767_v12  ;;  %v3269_v11 = vld [vmem:[%s4761_s26 + $0x6e8] sm:$0xff] }
 0x40a   : > { %v3525_v12 = vld [vmem:[%s4767_s7 + $0x6e8] sm:$0xff] }
 0x40b   : > { %v4265_v33 = vadd.f32 %v4264_v28, %v4010_v22  ;;  %v3769_v22 = vsub.f32 %v3257_v15, %v3513_v16  ;;  %v4024_v28 = vmul.f32 %v3768_v17, %v3768_v17  ;;  %v3270_v16 = vld [vmem:[%s4761_s26 + $0x6f0] sm:$0xff] }
 0x40c   : > { %v3526_v17 = vld [vmem:[%s4767_s7 + $0x6f0] sm:$0xff] }
 0x40d   : > { %v4266_v38 = vadd.f32 %v4265_v33, %v4011_v27  ;;  %v3770_v27 = vsub.f32 %v3258_v20, %v3514_v21  ;;  %v4025_v33 = vmul.f32 %v3769_v22, %v3769_v22  ;;  %v3271_v21 = vld [vmem:[%s4761_s26 + $0x6f8] sm:$0xff] }
 0x40e   : > { %v3527_v22 = vld [vmem:[%s4767_s7 + $0x6f8] sm:$0xff] }
 0x40f   : > { %v4267_v43 = vadd.f32 %v4266_v38, %v4012_v32  ;;  %v3771_v32 = vsub.f32 %v3259_v25, %v3515_v26  ;;  %v4026_v38 = vmul.f32 %v3770_v27, %v3770_v27  ;;  %v3272_v26 = vld [vmem:[%s4761_s26 + $0x700] sm:$0xff] }
 0x410   : > { %v3528_v27 = vld [vmem:[%s4767_s7 + $0x700] sm:$0xff] }
 0x411   : > { %v4268_v48 = vadd.f32 %v4267_v43, %v4013_v37  ;;  %v3772_v37 = vsub.f32 %v3260_v30, %v3516_v31  ;;  %v4027_v43 = vmul.f32 %v3771_v32, %v3771_v32  ;;  %v3273_v31 = vld [vmem:[%s4761_s26 + $0x708] sm:$0xff] }
 0x412   : > { %v3529_v32 = vld [vmem:[%s4767_s7 + $0x708] sm:$0xff] }
 0x413   : > { %v4269_v53 = vadd.f32 %v4268_v48, %v4014_v42  ;;  %v3773_v42 = vsub.f32 %v3261_v35, %v3517_v36  ;;  %v4028_v48 = vmul.f32 %v3772_v37, %v3772_v37  ;;  %v3274_v36 = vld [vmem:[%s4761_s26 + $0x710] sm:$0xff] }
 0x414   : > { %v3530_v37 = vld [vmem:[%s4767_s7 + $0x710] sm:$0xff] }
 0x415   : > { %v4270_v57 = vadd.f32 %v4269_v53, %v4015_v47  ;;  %v3774_v47 = vsub.f32 %v3262_v40, %v3518_v41  ;;  %v4029_v53 = vmul.f32 %v3773_v42, %v3773_v42  ;;  %v3275_v41 = vld [vmem:[%s4761_s26 + $0x718] sm:$0xff] }
 0x416   : > { %v3531_v42 = vld [vmem:[%s4767_s7 + $0x718] sm:$0xff] }
 0x417   : > { %v4271_v62 = vadd.f32 %v4270_v57, %v4016_v52  ;;  %v3775_v52 = vsub.f32 %v3263_v45, %v3519_v46  ;;  %v4030_v57 = vmul.f32 %v3774_v47, %v3774_v47  ;;  %v3276_v46 = vld [vmem:[%s4761_s26 + $0x720] sm:$0xff] }
 0x418   : > { %v3532_v47 = vld [vmem:[%s4767_s7 + $0x720] sm:$0xff] }
 0x419   : > { %v4272_v8 = vadd.f32 %v4271_v62, %v4017_v56  ;;  %v3776_v56 = vsub.f32 %v3264_v50, %v3520_v51  ;;  %v4031_v62 = vmul.f32 %v3775_v52, %v3775_v52  ;;  %v3277_v51 = vld [vmem:[%s4761_s26 + $0x728] sm:$0xff] }
 0x41a   : > { %v3533_v52 = vld [vmem:[%s4767_s7 + $0x728] sm:$0xff] }
 0x41b   : > { %v4273_v9 = vadd.f32 %v4272_v8, %v4018_v61  ;;  %v3777_v61 = vsub.f32 %v3265_v55, %v3521_v2  ;;  %v4032_v8 = vmul.f32 %v3776_v56, %v3776_v56  ;;  %v3278_v2 = vld [vmem:[%s4761_s26 + $0x730] sm:$0xff] }
 0x41c   : > { %v3534_v56 = vld [vmem:[%s4767_s7 + $0x730] sm:$0xff] }
 0x41d   : > { %v4274_v14 = vadd.f32 %v4273_v9, %v4019_v3  ;;  %v3778_v3 = vsub.f32 %v3266_v59, %v3522_v60  ;;  %v4033_v9 = vmul.f32 %v3777_v61, %v3777_v61  ;;  %v3279_v60 = vld [vmem:[%s4761_s26 + $0x738] sm:$0xff] }
 0x41e   : > { %v3535_v61 = vld [vmem:[%s4767_s7 + $0x738] sm:$0xff] }
 0x41f   : > { %v4275_v19 = vadd.f32 %v4274_v14, %v4020_v7  ;;  %v3779_v7 = vsub.f32 %v3267_v0, %v3523_v1  ;;  %v4034_v14 = vmul.f32 %v3778_v3, %v3778_v3  ;;  %v3280_v1 = vld [vmem:[%s4761_s26 + $0x740] sm:$0xff] }
 0x420   : > { %v3536_v3 = vld [vmem:[%s4767_s7 + $0x740] sm:$0xff] }
 0x421   : > { %v4276_v24 = vadd.f32 %v4275_v19, %v4021_v13  ;;  %v3780_v13 = vsub.f32 %v3268_v5, %v3524_v6  ;;  %v4035_v19 = vmul.f32 %v3779_v7, %v3779_v7  ;;  %v3281_v6 = vld [vmem:[%s4761_s26 + $0x748] sm:$0xff] }
 0x422   : > { %v3537_v7 = vld [vmem:[%s4767_s7 + $0x748] sm:$0xff] }
 0x423   : > { %v4277_v29 = vadd.f32 %v4276_v24, %v4022_v18  ;;  %v3781_v18 = vsub.f32 %v3269_v11, %v3525_v12  ;;  %v4036_v24 = vmul.f32 %v3780_v13, %v3780_v13  ;;  %v3282_v12 = vld [vmem:[%s4761_s26 + $0x750] sm:$0xff] }
 0x424   : > { %v3538_v13 = vld [vmem:[%s4767_s7 + $0x750] sm:$0xff] }
 0x425   : > { %v4278_v34 = vadd.f32 %v4277_v29, %v4023_v23  ;;  %v3782_v23 = vsub.f32 %v3270_v16, %v3526_v17  ;;  %v4037_v29 = vmul.f32 %v3781_v18, %v3781_v18  ;;  %v3283_v17 = vld [vmem:[%s4761_s26 + $0x758] sm:$0xff] }
 0x426   : > { %v3539_v18 = vld [vmem:[%s4767_s7 + $0x758] sm:$0xff] }
 0x427   : > { %v4279_v39 = vadd.f32 %v4278_v34, %v4024_v28  ;;  %v3783_v28 = vsub.f32 %v3271_v21, %v3527_v22  ;;  %v4038_v34 = vmul.f32 %v3782_v23, %v3782_v23  ;;  %v3284_v22 = vld [vmem:[%s4761_s26 + $0x760] sm:$0xff] }
 0x428   : > { %v3540_v23 = vld [vmem:[%s4767_s7 + $0x760] sm:$0xff] }
 0x429   : > { %v4280_v44 = vadd.f32 %v4279_v39, %v4025_v33  ;;  %v3784_v33 = vsub.f32 %v3272_v26, %v3528_v27  ;;  %v4039_v39 = vmul.f32 %v3783_v28, %v3783_v28  ;;  %v3285_v27 = vld [vmem:[%s4761_s26 + $0x768] sm:$0xff] }
 0x42a   : > { %v3541_v28 = vld [vmem:[%s4767_s7 + $0x768] sm:$0xff] }
 0x42b   : > { %v4281_v49 = vadd.f32 %v4280_v44, %v4026_v38  ;;  %v3785_v38 = vsub.f32 %v3273_v31, %v3529_v32  ;;  %v4040_v44 = vmul.f32 %v3784_v33, %v3784_v33  ;;  %v3286_v32 = vld [vmem:[%s4761_s26 + $0x770] sm:$0xff] }
 0x42c   : > { %v3542_v33 = vld [vmem:[%s4767_s7 + $0x770] sm:$0xff] }
 0x42d   : > { %v4282_v54 = vadd.f32 %v4281_v49, %v4027_v43  ;;  %v3786_v43 = vsub.f32 %v3274_v36, %v3530_v37  ;;  %v4041_v49 = vmul.f32 %v3785_v38, %v3785_v38  ;;  %v3287_v37 = vld [vmem:[%s4761_s26 + $0x778] sm:$0xff] }
 0x42e   : > { %v3543_v38 = vld [vmem:[%s4767_s7 + $0x778] sm:$0xff] }
 0x42f   : > { %v4283_v58 = vadd.f32 %v4282_v54, %v4028_v48  ;;  %v3787_v48 = vsub.f32 %v3275_v41, %v3531_v42  ;;  %v4042_v54 = vmul.f32 %v3786_v43, %v3786_v43  ;;  %v3288_v42 = vld [vmem:[%s4761_s26 + $0x780] sm:$0xff] }
 0x430   : > { %v3544_v43 = vld [vmem:[%s4767_s7 + $0x780] sm:$0xff] }
 0x431   : > { %v4284_v63 = vadd.f32 %v4283_v58, %v4029_v53  ;;  %v3788_v53 = vsub.f32 %v3276_v46, %v3532_v47  ;;  %v4043_v58 = vmul.f32 %v3787_v48, %v3787_v48  ;;  %v3289_v47 = vld [vmem:[%s4761_s26 + $0x788] sm:$0xff] }
 0x432   : > { %v3545_v48 = vld [vmem:[%s4767_s7 + $0x788] sm:$0xff] }
 0x433   : > { %v4285_v4 = vadd.f32 %v4284_v63, %v4030_v57  ;;  %v3789_v57 = vsub.f32 %v3277_v51, %v3533_v52  ;;  %v4044_v63 = vmul.f32 %v3788_v53, %v3788_v53  ;;  %v3290_v52 = vld [vmem:[%s4761_s26 + $0x790] sm:$0xff] }
 0x434   : > { %v3546_v53 = vld [vmem:[%s4767_s7 + $0x790] sm:$0xff] }
 0x435   : > { %v4286_v10 = vadd.f32 %v4285_v4, %v4031_v62  ;;  %v3790_v62 = vsub.f32 %v3278_v2, %v3534_v56  ;;  %v4045_v4 = vmul.f32 %v3789_v57, %v3789_v57  ;;  %v3291_v56 = vld [vmem:[%s4761_s26 + $0x798] sm:$0xff] }
 0x436   : > { %v3547_v57 = vld [vmem:[%s4767_s7 + $0x798] sm:$0xff] }
 0x437   : > { %v4287_v15 = vadd.f32 %v4286_v10, %v4032_v8  ;;  %v3791_v8 = vsub.f32 %v3279_v60, %v3535_v61  ;;  %v4046_v10 = vmul.f32 %v3790_v62, %v3790_v62  ;;  %v3292_v61 = vld [vmem:[%s4761_s26 + $0x7a0] sm:$0xff] }
 0x438   : > { %v3548_v62 = vld [vmem:[%s4767_s7 + $0x7a0] sm:$0xff] }
 0x439   : > { %v4288_v20 = vadd.f32 %v4287_v15, %v4033_v9  ;;  %v3792_v9 = vsub.f32 %v3280_v1, %v3536_v3  ;;  %v4047_v15 = vmul.f32 %v3791_v8, %v3791_v8  ;;  %v3293_v3 = vld [vmem:[%s4761_s26 + $0x7a8] sm:$0xff] }
 0x43a   : > { %v3549_v8 = vld [vmem:[%s4767_s7 + $0x7a8] sm:$0xff] }
 0x43b   : > { %v4289_v25 = vadd.f32 %v4288_v20, %v4034_v14  ;;  %v3793_v14 = vsub.f32 %v3281_v6, %v3537_v7  ;;  %v4048_v20 = vmul.f32 %v3792_v9, %v3792_v9  ;;  %v3294_v7 = vld [vmem:[%s4761_s26 + $0x7b0] sm:$0xff] }
 0x43c   : > { %v3550_v9 = vld [vmem:[%s4767_s7 + $0x7b0] sm:$0xff] }
 0x43d   : > { %v4290_v30 = vadd.f32 %v4289_v25, %v4035_v19  ;;  %v3794_v19 = vsub.f32 %v3282_v12, %v3538_v13  ;;  %v4049_v25 = vmul.f32 %v3793_v14, %v3793_v14  ;;  %v3295_v13 = vld [vmem:[%s4761_s26 + $0x7b8] sm:$0xff] }
 0x43e   : > { %v3551_v14 = vld [vmem:[%s4767_s7 + $0x7b8] sm:$0xff] }
 0x43f   : > { %v4291_v35 = vadd.f32 %v4290_v30, %v4036_v24  ;;  %v3795_v24 = vsub.f32 %v3283_v17, %v3539_v18  ;;  %v4050_v30 = vmul.f32 %v3794_v19, %v3794_v19  ;;  %v3296_v18 = vld [vmem:[%s4761_s26 + $0x7c0] sm:$0xff] }
 0x440   : > { %v3552_v19 = vld [vmem:[%s4767_s7 + $0x7c0] sm:$0xff] }
 0x441   : > { %v4292_v40 = vadd.f32 %v4291_v35, %v4037_v29  ;;  %v3796_v29 = vsub.f32 %v3284_v22, %v3540_v23  ;;  %v4051_v35 = vmul.f32 %v3795_v24, %v3795_v24  ;;  %v3297_v23 = vld [vmem:[%s4761_s26 + $0x7c8] sm:$0xff] }
 0x442   : > { %v3553_v24 = vld [vmem:[%s4767_s7 + $0x7c8] sm:$0xff] }
 0x443   : > { %v4293_v45 = vadd.f32 %v4292_v40, %v4038_v34  ;;  %v3797_v34 = vsub.f32 %v3285_v27, %v3541_v28  ;;  %v4052_v40 = vmul.f32 %v3796_v29, %v3796_v29  ;;  %v3298_v28 = vld [vmem:[%s4761_s26 + $0x7d0] sm:$0xff] }
 0x444   : > { %v3554_v29 = vld [vmem:[%s4767_s7 + $0x7d0] sm:$0xff] }
 0x445   : > { %v4294_v50 = vadd.f32 %v4293_v45, %v4039_v39  ;;  %v3798_v39 = vsub.f32 %v3286_v32, %v3542_v33  ;;  %v4053_v45 = vmul.f32 %v3797_v34, %v3797_v34  ;;  %v3299_v33 = vld [vmem:[%s4761_s26 + $0x7d8] sm:$0xff] }
 0x446   : > { %v3555_v34 = vld [vmem:[%s4767_s7 + $0x7d8] sm:$0xff] }
 0x447   : > { %v4295_v55 = vadd.f32 %v4294_v50, %v4040_v44  ;;  %v3799_v44 = vsub.f32 %v3287_v37, %v3543_v38  ;;  %v4054_v50 = vmul.f32 %v3798_v39, %v3798_v39  ;;  %v3300_v38 = vld [vmem:[%s4761_s26 + $0x7e0] sm:$0xff] }
 0x448   : > { %v3556_v39 = vld [vmem:[%s4767_s7 + $0x7e0] sm:$0xff] }
 0x449   : > { %v4296_v59 = vadd.f32 %v4295_v55, %v4041_v49  ;;  %v3800_v49 = vsub.f32 %v3288_v42, %v3544_v43  ;;  %v4055_v55 = vmul.f32 %v3799_v44, %v3799_v44  ;;  %v3301_v43 = vld [vmem:[%s4761_s26 + $0x7e8] sm:$0xff] }
 0x44a   : > { %v3557_v44 = vld [vmem:[%s4767_s7 + $0x7e8] sm:$0xff] }
 0x44b   : > { %v4297_v0 = vadd.f32 %v4296_v59, %v4042_v54  ;;  %v3801_v54 = vsub.f32 %v3289_v47, %v3545_v48  ;;  %v4056_v59 = vmul.f32 %v3800_v49, %v3800_v49  ;;  %v3302_v48 = vld [vmem:[%s4761_s26 + $0x7f0] sm:$0xff] }
 0x44c   : > { %v3558_v49 = vld [vmem:[%s4767_s7 + $0x7f0] sm:$0xff] }
 0x44d   : > { %v4298_v5 = vadd.f32 %v4297_v0, %v4043_v58  ;;  %v3802_v58 = vsub.f32 %v3290_v52, %v3546_v53  ;;  %v4057_v0 = vmul.f32 %v3801_v54, %v3801_v54  ;;  %v3303_v53 = vld [vmem:[%s4761_s26 + $0x7f8] sm:$0xff] }
 0x44e   : > { %v3559_v54 = vld [vmem:[%s4767_s7 + $0x7f8] sm:$0xff] }
 0x44f   : > { %v4299_v11 = vadd.f32 %v4298_v5, %v4044_v63  ;;  %v3803_v63 = vsub.f32 %v3291_v56, %v3547_v57  ;;  %v4058_v5 = vmul.f32 %v3802_v58, %v3802_v58  ;;  %v3815_v57 = vsub.f32 %v3303_v53, %v3559_v54 }
 0x451   : > { %v4300_v16 = vadd.f32 %v4299_v11, %v4045_v4  ;;  %v3804_v4 = vsub.f32 %v3292_v61, %v3548_v62  ;;  %v4059_v11 = vmul.f32 %v3803_v63, %v3803_v63  ;;  %v4071_v62 = vmul.f32 %v3815_v57, %v3815_v57 }
 0x453   : > { %v4301_v21 = vadd.f32 %v4300_v16, %v4046_v10  ;;  %v3805_v10 = vsub.f32 %v3293_v3, %v3549_v8  ;;  %v4060_v16 = vmul.f32 %v3804_v4, %v3804_v4 }
 0x455   : > { %v4302_v26 = vadd.f32 %v4301_v21, %v4047_v15  ;;  %v3806_v15 = vsub.f32 %v3294_v7, %v3550_v9  ;;  %v4061_v21 = vmul.f32 %v3805_v10, %v3805_v10 }
 0x457   : > { %v4303_v31 = vadd.f32 %v4302_v26, %v4048_v20  ;;  %v3807_v20 = vsub.f32 %v3295_v13, %v3551_v14  ;;  %v4062_v26 = vmul.f32 %v3806_v15, %v3806_v15 }
 0x459   : > { %v4304_v36 = vadd.f32 %v4303_v31, %v4049_v25  ;;  %v3808_v25 = vsub.f32 %v3296_v18, %v3552_v19  ;;  %v4063_v31 = vmul.f32 %v3807_v20, %v3807_v20 }
 0x45b   : > { %v4305_v41 = vadd.f32 %v4304_v36, %v4050_v30  ;;  %v3809_v30 = vsub.f32 %v3297_v23, %v3553_v24  ;;  %v4064_v36 = vmul.f32 %v3808_v25, %v3808_v25 }
 0x45d   : > { %v4306_v46 = vadd.f32 %v4305_v41, %v4051_v35  ;;  %v3810_v35 = vsub.f32 %v3298_v28, %v3554_v29  ;;  %v4065_v41 = vmul.f32 %v3809_v30, %v3809_v30 }
 0x45f   : > { %v4307_v51 = vadd.f32 %v4306_v46, %v4052_v40  ;;  %v3811_v40 = vsub.f32 %v3299_v33, %v3555_v34  ;;  %v4066_v46 = vmul.f32 %v3810_v35, %v3810_v35 }
 0x461   : > { %v4308_v2 = vadd.f32 %v4307_v51, %v4053_v45  ;;  %v3812_v45 = vsub.f32 %v3300_v38, %v3556_v39  ;;  %v4067_v51 = vmul.f32 %v3811_v40, %v3811_v40 }
 0x463   : > { %v4309_v60 = vadd.f32 %v4308_v2, %v4054_v50  ;;  %v3813_v50 = vsub.f32 %v3301_v43, %v3557_v44  ;;  %v4068_v2 = vmul.f32 %v3812_v45, %v3812_v45 }
 0x465   : > { %v4310_v1 = vadd.f32 %v4309_v60, %v4055_v55  ;;  %v3814_v55 = vsub.f32 %v3302_v48, %v3558_v49  ;;  %v4069_v58 = vmul.f32 %v3813_v50, %v3813_v50 }
 0x467   : > { %v4311_v6 = vadd.f32 %v4310_v1, %v4056_v59  ;;  %v4070_v60 = vmul.f32 %v3814_v55, %v3814_v55  ;;  %v3047_v1 = vld [vmem:[#allocation7] sm:$0xff] }
 0x469   : > { %v4312_v12 = vadd.f32 %v4311_v6, %v4057_v0 }
 0x46b   : > { %v4313_v17 = vadd.f32 %v4312_v12, %v4058_v5 }
 0x46d   : > { %v4314_v22 = vadd.f32 %v4313_v17, %v4059_v11 }
 0x46f   : > { %v4315_v27 = vadd.f32 %v4314_v22, %v4060_v16 }
 0x471   : > { %v4316_v32 = vadd.f32 %v4315_v27, %v4061_v21 }
 0x473   : > { %v4317_v37 = vadd.f32 %v4316_v32, %v4062_v26 }
 0x475   : > { %v4318_v42 = vadd.f32 %v4317_v37, %v4063_v31 }
 0x477   : > { %v4319_v47 = vadd.f32 %v4318_v42, %v4064_v36 }
 0x479   : > { %v4320_v52 = vadd.f32 %v4319_v47, %v4065_v41 }
 0x47b   : > { %v4321_v56 = vadd.f32 %v4320_v52, %v4066_v46 }
 0x47d   : > { %v4322_v59 = vadd.f32 %v4321_v56, %v4067_v51 }
 0x47f   : > { %v4323_v61 = vadd.f32 %v4322_v59, %v4068_v2 }
 0x481   : > { %v4324_v63 = vadd.f32 %v4323_v61, %v4069_v58 }
 0x483   : > { %v4325_v0 = vadd.f32 %v4324_v63, %v4070_v60 }
 0x485   : > { %v4326_v3 = vadd.f32 %v4325_v0, %v4071_v62 }
 0x487   : > { %v4327_v8 = vadd.f32 %v4326_v3, %v3047_v1 }
 0x489   : > { %4328 = vst [vmem:[#allocation7] sm:$0xff] %v4327_v8 }
 0x48a PF: > { %s4612_s19 = smov [#allocation7]  }
 0x48b   : > { %s4336_s3 = sshll.u32 %s4612_s19, 4  ;;  %s4337_s3 = int_to_ptr.vmem [resolvable:$true] %s4336_s3 }
 0x48c   : > { %s4537_s4 = scalar_lea.vmem %s4337_s3, 128  ;;  %p4544_p11 = scmp.lt.s32.totalorder %s4337_s3, %s4337_s3 }
 0x48d   : > { %p4538_p7 = scmp.ne.s32.totalorder %s4337_s3, %s4537_s4  ;;  %p4545_p13 = scmp.lt.s32.totalorder %s4537_s4, %s4537_s4 }
 0x48f   : > { %p4539_p8 = pnand %p4538_p7, %p4432_p6  ;;  %p4546_p12 = por %p4545_p13, %p4544_p11 }
 0x491   : > { %p4540_p10 = pneg %p4539_p8 }
 0x493   : > { %p4547_p9 = pnand %p4546_p12, %p4540_p10 }
 0x495   : > { %4550 = shalt.err (!%p4547_p9)
}
 0x496   : > { %4442 = dma.vmem_to_hbm [thread:$0]  (%p4432_p6), %s4337_s3, 128, %s6345_s2, [#allocation4]  }
 0x497   : > { %4586 = dma.done.wait (%p4432_p6), [#allocation4], 128  }
 0x498   : > { %4588 = vsyncadd (%p4432_p6), [#allocation4], 4294967168 }
 0x499 PF: > { %p16_p0 = scmp.ge.s32.totalorder %s4650_s14, 4   ;;  %s6348_s9 = smov %s4595_s10 }
 0x49a   : > { %s6349_s10 = smov %s4599_s11  ;;  %s6350_s11 = smov %s4660_s17 }
 0x49b   : > { %s6351_s12 = smov %s4650_s14  ;;  %18 = sbr.rel (!%p16_p0) target bundleno = 6 (0x6), region = 90 }
 0x4a0   :  { %4349 = vsyncpa [#allocation3], 1 }
 0x4a1   :  { %4351 = vsyncpa [#allocation3 + $0x1], 1 }
 0x4a2   :  { %4352 = vsyncpa [#allocation6], 1 }
 0x4a3   :  { %4354 = vsyncpa [#allocation6 + $0x1], 1 }
 0x4a4   :  { %4355 = vsyncpa [#allocation4], 1 }
 0x4a5   :  { %4357 = vsyncpa [#allocation4 + $0x1], 1 }

</bundles_post_ra>
